<compile_context>
chip_gen: v7x
topology: tpu7x:2x2x1
jax: 0.10.0
libtpu: 0.0.40
codegen_flags: <defaults>
</compile_context>

<pallas_src>
import jax
import jax.numpy as jnp
from jax import lax
from jax.experimental import pallas as pl
from jax.experimental.pallas import tpu as pltpu

# ----------------------------- configuration -----------------------------
OBS_VOCAB = 32
ACT_VOCAB = 4
EMBED_DIM = 4
TOKENS_PER_BLOCK = 17
NUM_OBS_TOKENS = TOKENS_PER_BLOCK - 1                # 16
HIDDEN_DIM = EMBED_DIM * TOKENS_PER_BLOCK            # hidden_layers_output_dim = 68
NCP_UNITS = 96
NUM_LAYERS = 2
B = 2                                                # batch
T = 4                                                # number of blocks (sequence)
TB = T * B
LN_EPS = 1e-5
OBS_HEAD_OUT = OBS_VOCAB * NUM_OBS_TOKENS            # 512
HEAD1_OUT = HIDDEN_DIM + 2 * EMBED_DIM               # 76   ([obs|rew|end] hidden)
HEAD2_OUT = OBS_HEAD_OUT + 3 + 2                     # 517  ([obs|rew|end] logits)

# AutoNCP neuron split (motor = output size, command = 40% of remainder)
N_MOTOR = HIDDEN_DIM
_REM = NCP_UNITS - N_MOTOR
N_CMD = max(int(0.4 * _REM), 1)
N_INTER = _REM - N_CMD
assert N_INTER > 0 and N_CMD > 0


# ------------------------------- kernel ----------------------------------
def wm_kernel(tokens_ref, sel_ref, w_obs_blk_ref, w_act_blk_ref,
              ln_g_ref, ln_b_ref,
              wi0_ref, wh0_ref, b0_ref,
              wi1_ref, wh1_ref, b1_ref,
              wi2_ref, wh2_ref, b2_ref,
              whd1_ref, bhd1_ref, whd2_ref, bhd2_ref,
              out_seq_ref, lobs_ref, lrew_ref, lend_ref, hidden_ref):
    f32 = jnp.float32
    tok = tokens_ref[...]                                        # (TB, 17), rows b*T+t

    # ----------------- embedding: 2 fused one-hot matmuls -----------------
    tok_obs_f = tok[:, :NUM_OBS_TOKENS].astype(f32)              # (TB, 16)
    tok_rep = jnp.dot(tok_obs_f, sel_ref[...],
                      preferred_element_type=f32)                # (TB, 512)
    vocab = (lax.broadcasted_iota(jnp.int32,
                                  (TB, NUM_OBS_TOKENS * OBS_VOCAB), 1)
             & (OBS_VOCAB - 1)).astype(f32)
    oh_obs = (jnp.abs(tok_rep - vocab) < 0.5).astype(f32)        # (TB, 512)
    oh_act = (tok[:, NUM_OBS_TOKENS:] ==
              lax.broadcasted_iota(jnp.int32, (TB, ACT_VOCAB), 1)
              ).astype(f32)                                      # (TB, 4)
    x = (jnp.dot(oh_obs, w_obs_blk_ref[...], preferred_element_type=f32)
         + jnp.dot(oh_act, w_act_blk_ref[...], preferred_element_type=f32))
    # embed dropout: identity (eval)

    # row-index iotas used for in-register row gathers / scatters
    row_x = lax.broadcasted_iota(jnp.int32, (TB, HIDDEN_DIM), 0)
    row_z = lax.broadcasted_iota(jnp.int32, (B, 3 * N_INTER), 0)

    def cell_pre(z_in, h, w_h_ref, l, dh):
        # input projection (incl. bias) precomputed; only h @ W_h on the path
        z = z_in + jnp.dot(h, w_h_ref[l], preferred_element_type=f32)
        ff1 = jnp.tanh(z[:, :dh])
        ff2 = jnp.tanh(z[:, dh:2 * dh])
        ti = jax.nn.sigmoid(z[:, 2 * dh:])                       # ts = 1.0
        return ff1 * (1.0 - ti) + ti * ff2

    def cell(inp, h, w_in_ref, w_h_ref, b_ref, l, dh):
        # weights loaded from VMEM per step (no value hoisting across the
        # unrolled loop -> no vreg spill pressure); adjacent dots into one z
        z = (jnp.dot(inp, w_in_ref[l], preferred_element_type=f32)
             + jnp.dot(h, w_h_ref[l], preferred_element_type=f32)
             + b_ref[l])
        ff1 = jnp.tanh(z[:, :dh])
        ff2 = jnp.tanh(z[:, dh:2 * dh])
        ti = jax.nn.sigmoid(z[:, 2 * dh:])
        return ff1 * (1.0 - ti) + ti * ff2

    # ---------------- NCP layers (LayerNorm + wired CfC) ----------------
    for l in range(NUM_LAYERS):
        # one-pass LayerNorm with a single folded lane reduction:
        # reduce [x ; x*x] -> (mu, E[x^2]) in one cross-lane pass
        stacked = jnp.concatenate([x, x * x], axis=0)            # (2*TB, 68)
        sums = jnp.sum(stacked, axis=-1, keepdims=True) * (1.0 / HIDDEN_DIM)
        mu = sums[:TB]
        ex2 = sums[TB:]
        xn = ((x - mu) * lax.rsqrt(ex2 - mu * mu + LN_EPS)) * ln_g_ref[l] + ln_b_ref[l]

        # hoisted cell-0 input projection: one (TB,68)x(68,3*N_INTER) GEMM
        zin0 = jnp.dot(xn, wi0_ref[l], preferred_element_type=f32) + b0_ref[l]

        h0 = jnp.zeros((B, N_INTER), f32)
        h1 = jnp.zeros((B, N_CMD), f32)
        h2 = jnp.zeros((B, N_MOTOR), f32)
        x_new = jnp.zeros((TB, HIDDEN_DIM), f32)
        for t in range(T):                    # fully-unrolled recurrence (T static)
            # gather rows {b*T + t} of zin0 (b-major) in registers (exact selects)
            z0t = jnp.broadcast_to(zin0[t:t + 1], (B, 3 * N_INTER))
            for b in range(1, B):
                z0t = jnp.where(row_z == b,
                                zin0[b * T + t:b * T + t + 1], z0t)
            h0 = cell_pre(z0t, h0, wh0_ref, l, N_INTER)               # inter
            h1 = cell(h0, h1, wi1_ref, wh1_ref, b1_ref, l, N_CMD)     # command
            h2 = cell(h1, h2, wi2_ref, wh2_ref, b2_ref, l, N_MOTOR)   # motor
            # scatter h2 rows to x_new rows {b*T + t} (stays in registers)
            for b in range(B):
                x_new = jnp.where(row_x == b * T + t, h2[b:b + 1], x_new)
        hidden_ref[l] = jnp.concatenate([h0, h1, h2], axis=1)    # (B, units)
        x = x_new
        # blocks dropout: identity (eval)

    # ----------------------------- heads --------------------------------
    out_seq_ref[...] = x                                          # already (b, t) order

    # fused head first layer: [wo1 | wr1 | we1] -> one GEMM + one ReLU
    hf = jnp.maximum(jnp.dot(x, whd1_ref[...], preferred_element_type=f32)
                     + bhd1_ref[...], 0.0)                        # (TB, 76)
    # fused head second layer: block-diag(wo2, wr2, we2) -> one GEMM
    logits = (jnp.dot(hf, whd2_ref[...], preferred_element_type=f32)
              + bhd2_ref[...])                                    # (TB, 517)
    lobs_ref[...] = logits[:, :OBS_HEAD_OUT]
    lrew_ref[...] = logits[:, OBS_HEAD_OUT:OBS_HEAD_OUT + 3]
    lend_ref[...] = logits[:, OBS_HEAD_OUT + 3:]


# ------------------------ one-time weight preparation -----------------------
def _prep_cell(w, b, din):
    """(L,4,din+dh,dh) -> fused [ff1|ff2|ta+tb] split into W_in / W_h / bias."""
    wf = jnp.concatenate([w[:, 0], w[:, 1], w[:, 2] + w[:, 3]], axis=-1)  # (L, din+dh, 3dh)
    bf = jnp.concatenate([b[:, 0], b[:, 1], b[:, 2] + b[:, 3]], axis=-1)  # (L, 1, 3dh)
    return wf[:, :din, :], wf[:, din:, :], bf


def prepare_params(p):
    """All weight fusion / layout prep, executed ONCE (not per forward call)."""
    f32 = jnp.float32
    # embedding prep: selection matrix + block-diagonal embedding tables
    eye16 = jnp.eye(NUM_OBS_TOKENS, dtype=f32)
    sel = jnp.repeat(eye16, OBS_VOCAB, axis=1)                     # (16, 512)
    w_obs_blk = jnp.einsum('st,ve->svte', eye16, p['obs_emb']).reshape(
        NUM_OBS_TOKENS * OBS_VOCAB, NUM_OBS_TOKENS * EMBED_DIM)    # (512, 64)
    w_obs_blk = jnp.pad(w_obs_blk, ((0, 0), (0, EMBED_DIM)))       # (512, 68)
    w_act_blk = jnp.pad(p['act_emb'], ((0, 0), (NUM_OBS_TOKENS * EMBED_DIM, 0)))  # (4, 68)

    # CfC gate fusion (per cell)
    wi0, wh0, b0 = _prep_cell(p['w0'], p['b0'], HIDDEN_DIM)
    wi1, wh1, b1 = _prep_cell(p['w1'], p['b1'], N_INTER)
    wi2, wh2, b2 = _prep_cell(p['w2'], p['b2'], N_CMD)

    # head first-layer fusion
    whd1 = jnp.concatenate([p['wo1'], p['wr1'], p['we1']], axis=1)  # (68, 76)
    bhd1 = jnp.concatenate([p['bo1'], p['br1'], p['be1']], axis=1)  # (1, 76)
    # head second-layer block-diagonal fusion
    whd2 = jnp.zeros((HEAD1_OUT, HEAD2_OUT), f32)
    whd2 = whd2.at[:HIDDEN_DIM, :OBS_HEAD_OUT].set(p['wo2'])
    whd2 = whd2.at[HIDDEN_DIM:HIDDEN_DIM + EMBED_DIM,
                   OBS_HEAD_OUT:OBS_HEAD_OUT + 3].set(p['wr2'])
    whd2 = whd2.at[HIDDEN_DIM + EMBED_DIM:, OBS_HEAD_OUT + 3:].set(p['we2'])
    bhd2 = jnp.concatenate([p['bo2'], p['br2'], p['be2']], axis=1)  # (1, 517)

    prep = dict(sel=sel, w_obs_blk=w_obs_blk, w_act_blk=w_act_blk,
                ln_g=p['ln_g'], ln_b=p['ln_b'],
                wi0=wi0, wh0=wh0, b0=b0,
                wi1=wi1, wh1=wh1, b1=b1,
                wi2=wi2, wh2=wh2, b2=b2,
                whd1=whd1, bhd1=bhd1, whd2=whd2, bhd2=bhd2)
    return jax.tree_util.tree_map(lambda a: jnp.asarray(a, jnp.float32), prep)


# ------------------------------ forward wrapper ------------------------------
@jax.jit
def world_model_forward(tokens_btS, prep):
    """tokens_btS: int32 (B, T, 17); prep: output of prepare_params()."""
    # b-major row order (b*T + t) == plain row-major flatten: no transpose needed
    tok = tokens_btS.astype(jnp.int32).reshape(TB, TOKENS_PER_BLOCK)

    inputs = (tok, prep['sel'], prep['w_obs_blk'], prep['w_act_blk'],
              prep['ln_g'], prep['ln_b'],
              prep['wi0'], prep['wh0'], prep['b0'],
              prep['wi1'], prep['wh1'], prep['b1'],
              prep['wi2'], prep['wh2'], prep['b2'],
              prep['whd1'], prep['bhd1'], prep['whd2'], prep['bhd2'])

    out_shapes = (
        jax.ShapeDtypeStruct((TB, HIDDEN_DIM), jnp.float32),
        jax.ShapeDtypeStruct((TB, OBS_HEAD_OUT), jnp.float32),
        jax.ShapeDtypeStruct((TB, 3), jnp.float32),
        jax.ShapeDtypeStruct((TB, 2), jnp.float32),
        jax.ShapeDtypeStruct((NUM_LAYERS, B, NCP_UNITS), jnp.float32),
    )
    vmem = pltpu.MemorySpace.VMEM
    out_seq, lobs, lrew, lend, hidden = pl.pallas_call(
        wm_kernel,
        out_shape=out_shapes,
        in_specs=[pl.BlockSpec(memory_space=vmem)] * len(inputs),
        out_specs=tuple(pl.BlockSpec(memory_space=vmem) for _ in out_shapes),
    )(*inputs)

    # outputs already in (b, t) row order -> reshapes only, no transposes
    output_sequence = out_seq.reshape(B, T, HIDDEN_DIM)
    logits_observations = lobs.reshape(B, T, NUM_OBS_TOKENS, OBS_VOCAB)
    logits_rewards = lrew.reshape(B, T, 3)
    logits_ends = lend.reshape(B, T, 2)
    hidden_states = [hidden[i] for i in range(NUM_LAYERS)]
    return output_sequence, logits_observations, logits_rewards, logits_ends, hidden_states


# --------------------------- parameter init --------------------------------
def init_params(key):
    ks = jax.random.split(key, 32)
    def w(k, shape, scale=0.05):
        return (scale * jax.random.normal(k, shape)).astype(jnp.float32)
    p = {}
    p['obs_emb'] = w(ks[0], (OBS_VOCAB, EMBED_DIM), 0.5)
    p['act_emb'] = w(ks[1], (ACT_VOCAB, EMBED_DIM), 0.5)
    p['ln_g'] = jnp.ones((NUM_LAYERS, 1, HIDDEN_DIM), jnp.float32)
    p['ln_b'] = jnp.zeros((NUM_LAYERS, 1, HIDDEN_DIM), jnp.float32)
    dims = [(HIDDEN_DIM, N_INTER), (N_INTER, N_CMD), (N_CMD, N_MOTOR)]
    for j, (din, dh) in enumerate(dims):
        p[f'w{j}'] = w(ks[2 + 2 * j], (NUM_LAYERS, 4, din + dh, dh), 0.1)
        p[f'b{j}'] = w(ks[3 + 2 * j], (NUM_LAYERS, 4, 1, dh), 0.05)
    p['wo1'] = w(ks[10], (HIDDEN_DIM, HIDDEN_DIM));        p['bo1'] = w(ks[11], (1, HIDDEN_DIM), 0.02)
    p['wo2'] = w(ks[12], (HIDDEN_DIM, OBS_HEAD_OUT));      p['bo2'] = w(ks[13], (1, OBS_HEAD_OUT), 0.02)
    p['wr1'] = w(ks[14], (HIDDEN_DIM, EMBED_DIM));         p['br1'] = w(ks[15], (1, EMBED_DIM), 0.02)
    p['wr2'] = w(ks[16], (EMBED_DIM, 3));                  p['br2'] = w(ks[17], (1, 3), 0.02)
    p['we1'] = w(ks[18], (HIDDEN_DIM, EMBED_DIM));         p['be1'] = w(ks[19], (1, EMBED_DIM), 0.02)
    p['we2'] = w(ks[20], (EMBED_DIM, 2));                  p['be2'] = w(ks[21], (1, 2), 0.02)
    return p


# -------------------------- pure-JAX reference ------------------------------
def reference_forward(tokens_btS, p):
    tok = tokens_btS.astype(jnp.int32)
    Bq, Tq, _ = tok.shape
    obs_e = p['obs_emb'][tok[:, :, :16]]                       # (B,T,16,E)
    act_e = p['act_emb'][tok[:, :, 16]]                        # (B,T,E)
    x = jnp.concatenate([obs_e.reshape(Bq, Tq, 16 * EMBED_DIM), act_e], axis=-1)
    hiddens = []
    for l in range(NUM_LAYERS):
        g = p['ln_g'][l, 0]; bt = p['ln_b'][l, 0]
        mu = x.mean(-1, keepdims=True)
        var = ((x - mu) ** 2).mean(-1, keepdims=True)
        xn = (x - mu) / jnp.sqrt(var + LN_EPS) * g + bt
        W0, B0 = p['w0'][l], p['b0'][l]
        W1, B1 = p['w1'][l], p['b1'][l]
        W2, B2 = p['w2'][l], p['b2'][l]

        def cell(inp, h, W, bias):
            xc = jnp.concatenate([inp, h], axis=-1)
            ff1 = jnp.tanh(xc @ W[0] + bias[0])
            ff2 = jnp.tanh(xc @ W[1] + bias[1])
            ti = jax.nn.sigmoid((xc @ W[2] + bias[2]) + (xc @ W[3] + bias[3]))
            return ff1 * (1.0 - ti) + ti * ff2

        h0 = jnp.zeros((Bq, N_INTER)); h1 = jnp.zeros((Bq, N_CMD)); h2 = jnp.zeros((Bq, N_MOTOR))
        outs = []
        for t in range(Tq):
            h0 = cell(xn[:, t], h0, W0, B0)
            h1 = cell(h0, h1, W1, B1)
            h2 = cell(h1, h2, W2, B2)
            outs.append(h2)
        x = jnp.stack(outs, axis=1)
        hiddens.append(jnp.concatenate([h0, h1, h2], axis=-1))
    relu = lambda v: jnp.maximum(v, 0.0)
    lo = relu(x @ p['wo1'] + p['bo1'][0]) @ p['wo2'] + p['bo2'][0]
    lr = relu(x @ p['wr1'] + p['br1'][0]) @ p['wr2'] + p['br2'][0]
    le = relu(x @ p['we1'] + p['be1'][0]) @ p['we2'] + p['be2'][0]
    return x, lo.reshape(Bq, Tq, 16, OBS_VOCAB), lr, le, hiddens


# --------------------------------- main -------------------------------------
if __name__ == "__main__":
    key = jax.random.PRNGKey(0)
    kp, ko, ka = jax.random.split(key, 3)
    params = init_params(kp)
    prep = prepare_params(params)        # one-time weight fusion (not per call)

    obs_tokens = jax.random.randint(ko, (B, T, 16), 0, OBS_VOCAB, dtype=jnp.int32)
    act_tokens = jax.random.randint(ka, (B, T, 1), 0, ACT_VOCAB, dtype=jnp.int32)
    tokens = jnp.concatenate([obs_tokens, act_tokens], axis=2)   # (B, T, 17)

    out_seq, l_obs, l_rew, l_end, hiddens = world_model_forward(tokens, prep)
    jax.block_until_ready(out_seq)

    # shape checks (mirror the PyTorch module's outputs)
    assert out_seq.shape == (B, T, HIDDEN_DIM)
    assert l_obs.shape == (B, T, 16, OBS_VOCAB)
    assert l_rew.shape == (B, T, 3)
    assert l_end.shape == (B, T, 2)
    assert len(hiddens) == NUM_LAYERS and hiddens[0].shape == (B, NCP_UNITS)

    # numerical check against pure-JAX reference (unfused parameterization)
    r_seq, r_obs, r_rew, r_end, r_hid = reference_forward(tokens, params)
    ok = True
    for a, b in [(out_seq, r_seq), (l_obs, r_obs), (l_rew, r_rew), (l_end, r_end)]:
        ok &= bool(jnp.allclose(a, b, atol=1e-3, rtol=1e-3))
    for a, b in zip(hiddens, r_hid):
        ok &= bool(jnp.allclose(a, b, atol=1e-3, rtol=1e-3))
    if not ok:
        raise AssertionError("Pallas kernel output mismatch vs reference")

    print("KERNEL_OK")
</pallas_src>

<mosaic_0001>
module attributes {stable_mosaic.version = 11 : i64} {
  func.func @wm_kernel(%arg0: memref<8x17xi32, #tpu.memory_space<vmem>>, %arg1: memref<16x512xf32, #tpu.memory_space<vmem>>, %arg2: memref<512x68xf32, #tpu.memory_space<vmem>>, %arg3: memref<4x68xf32, #tpu.memory_space<vmem>>, %arg4: memref<2x1x68xf32, #tpu.memory_space<vmem>>, %arg5: memref<2x1x68xf32, #tpu.memory_space<vmem>>, %arg6: memref<2x68x51xf32, #tpu.memory_space<vmem>>, %arg7: memref<2x17x51xf32, #tpu.memory_space<vmem>>, %arg8: memref<2x1x51xf32, #tpu.memory_space<vmem>>, %arg9: memref<2x17x33xf32, #tpu.memory_space<vmem>>, %arg10: memref<2x11x33xf32, #tpu.memory_space<vmem>>, %arg11: memref<2x1x33xf32, #tpu.memory_space<vmem>>, %arg12: memref<2x11x204xf32, #tpu.memory_space<vmem>>, %arg13: memref<2x68x204xf32, #tpu.memory_space<vmem>>, %arg14: memref<2x1x204xf32, #tpu.memory_space<vmem>>, %arg15: memref<68x76xf32, #tpu.memory_space<vmem>>, %arg16: memref<1x76xf32, #tpu.memory_space<vmem>>, %arg17: memref<76x517xf32, #tpu.memory_space<vmem>>, %arg18: memref<1x517xf32, #tpu.memory_space<vmem>>, %arg19: memref<8x68xf32, #tpu.memory_space<vmem>>, %arg20: memref<8x512xf32, #tpu.memory_space<vmem>>, %arg21: memref<8x3xf32, #tpu.memory_space<vmem>>, %arg22: memref<8x2xf32, #tpu.memory_space<vmem>>, %arg23: memref<2x2x96xf32, #tpu.memory_space<vmem>>) attributes {dimension_semantics = [], scalar_prefetch = 0 : i64, scratch_operands = 0 : i64, tpu.core_type = #tpu.core_type<tc>} {
    %c0 = arith.constant 0 : index
    %c0_0 = arith.constant 0 : index
    %0 = vector.load %arg0[%c0, %c0_0] : memref<8x17xi32, #tpu.memory_space<vmem>>, vector<8x17xi32>
    %1 = vector.extract_strided_slice %0 {offsets = [0, 0], sizes = [8, 16], strides = [1, 1]} : vector<8x17xi32> to vector<8x16xi32>
    %2 = arith.sitofp %1 : vector<8x16xi32> to vector<8x16xf32>
    %c0_1 = arith.constant 0 : index
    %c0_2 = arith.constant 0 : index
    %3 = vector.load %arg1[%c0_1, %c0_2] : memref<16x512xf32, #tpu.memory_space<vmem>>, vector<16x512xf32>
    %cst = arith.constant dense<0.000000e+00> : vector<8x512xf32>
    %4 = tpu.matmul %2, %3, %cst {dimension_numbers = #tpu.dot_dimension_numbers<[1], [0], [0], [1], [0, 0, 1, 1], [], []>} : vector<8x16xf32>, vector<16x512xf32>, vector<8x512xf32> -> vector<8x512xf32>
    %5 = tpu.iota {dimensions = array<i32: 1>} : vector<8x512xi32>
    %c31_i32 = arith.constant 31 : i32
    %6 = vector.broadcast %c31_i32 : i32 to vector<8x512xi32>
    %7 = arith.andi %5, %6 : vector<8x512xi32>
    %8 = arith.sitofp %7 : vector<8x512xi32> to vector<8x512xf32>
    %9 = arith.subf %4, %8 : vector<8x512xf32>
    %10 = math.absf %9 : vector<8x512xf32>
    %cst_3 = arith.constant 5.000000e-01 : f32
    %11 = vector.broadcast %cst_3 : f32 to vector<8x512xf32>
    %12 = arith.cmpf olt, %10, %11 : vector<8x512xf32>
    %13 = arith.extui %12 : vector<8x512xi1> to vector<8x512xi32>
    %14 = arith.sitofp %13 : vector<8x512xi32> to vector<8x512xf32>
    %15 = vector.extract_strided_slice %0 {offsets = [0, 16], sizes = [8, 1], strides = [1, 1]} : vector<8x17xi32> to vector<8x1xi32>
    %16 = tpu.iota {dimensions = array<i32: 1>} : vector<8x4xi32>
    %17 = vector.broadcast %15 : vector<8x1xi32> to vector<8x4xi32>
    %18 = arith.cmpi eq, %17, %16 : vector<8x4xi32>
    %19 = arith.extui %18 : vector<8x4xi1> to vector<8x4xi32>
    %20 = arith.sitofp %19 : vector<8x4xi32> to vector<8x4xf32>
    %c0_4 = arith.constant 0 : index
    %c0_5 = arith.constant 0 : index
    %21 = vector.load %arg2[%c0_4, %c0_5] : memref<512x68xf32, #tpu.memory_space<vmem>>, vector<512x68xf32>
    %cst_6 = arith.constant dense<0.000000e+00> : vector<8x68xf32>
    %22 = tpu.matmul %14, %21, %cst_6 {dimension_numbers = #tpu.dot_dimension_numbers<[1], [0], [0], [1], [0, 0, 1, 1], [], []>} : vector<8x512xf32>, vector<512x68xf32>, vector<8x68xf32> -> vector<8x68xf32>
    %c0_7 = arith.constant 0 : index
    %c0_8 = arith.constant 0 : index
    %23 = vector.load %arg3[%c0_7, %c0_8] : memref<4x68xf32, #tpu.memory_space<vmem>>, vector<4x68xf32>
    %cst_9 = arith.constant dense<0.000000e+00> : vector<8x68xf32>
    %24 = tpu.matmul %20, %23, %cst_9 {dimension_numbers = #tpu.dot_dimension_numbers<[1], [0], [0], [1], [0, 0, 1, 1], [], []>} : vector<8x4xf32>, vector<4x68xf32>, vector<8x68xf32> -> vector<8x68xf32>
    %25 = arith.addf %22, %24 : vector<8x68xf32>
    %26 = tpu.iota {dimensions = array<i32: 0>} : vector<8x68xi32>
    %27 = tpu.iota {dimensions = array<i32: 0>} : vector<2x51xi32>
    %28 = arith.mulf %25, %25 : vector<8x68xf32>
    %29 = tpu.concatenate %25, %28 in 0 : vector<8x68xf32>, vector<8x68xf32> -> vector<16x68xf32>
    %cst_10 = arith.constant dense<0.000000e+00> : vector<16xf32>
    %30 = vector.multi_reduction <add>, %29, %cst_10 [1] : vector<16x68xf32> to vector<16xf32>
    %31 = vector.shape_cast %30 : vector<16xf32> to vector<16x1xf32>
    %cst_11 = arith.constant 0.0147058824 : f32
    %32 = vector.broadcast %cst_11 : f32 to vector<16x1xf32>
    %33 = arith.mulf %31, %32 : vector<16x1xf32>
    %34 = vector.extract_strided_slice %33 {offsets = [0, 0], sizes = [8, 1], strides = [1, 1]} : vector<16x1xf32> to vector<8x1xf32>
    %35 = vector.extract_strided_slice %33 {offsets = [8, 0], sizes = [8, 1], strides = [1, 1]} : vector<16x1xf32> to vector<8x1xf32>
    %36 = vector.broadcast %34 : vector<8x1xf32> to vector<8x68xf32>
    %37 = arith.subf %25, %36 : vector<8x68xf32>
    %38 = arith.mulf %34, %34 : vector<8x1xf32>
    %39 = arith.subf %35, %38 : vector<8x1xf32>
    %cst_12 = arith.constant 9.99999974E-6 : f32
    %40 = vector.broadcast %cst_12 : f32 to vector<8x1xf32>
    %41 = arith.addf %39, %40 : vector<8x1xf32>
    %42 = math.rsqrt %41 : vector<8x1xf32>
    %43 = vector.broadcast %42 : vector<8x1xf32> to vector<8x68xf32>
    %44 = arith.mulf %37, %43 : vector<8x68xf32>
    %c0_13 = arith.constant 0 : index
    %c0_14 = arith.constant 0 : index
    %c0_15 = arith.constant 0 : index
    %45 = vector.load %arg4[%c0_13, %c0_14, %c0_15] : memref<2x1x68xf32, #tpu.memory_space<vmem>>, vector<1x1x68xf32>
    %46 = vector.shape_cast %45 : vector<1x1x68xf32> to vector<1x68xf32>
    %47 = vector.broadcast %46 : vector<1x68xf32> to vector<8x68xf32>
    %48 = arith.mulf %44, %47 : vector<8x68xf32>
    %c0_16 = arith.constant 0 : index
    %c0_17 = arith.constant 0 : index
    %c0_18 = arith.constant 0 : index
    %49 = vector.load %arg5[%c0_16, %c0_17, %c0_18] : memref<2x1x68xf32, #tpu.memory_space<vmem>>, vector<1x1x68xf32>
    %50 = vector.shape_cast %49 : vector<1x1x68xf32> to vector<1x68xf32>
    %51 = vector.broadcast %50 : vector<1x68xf32> to vector<8x68xf32>
    %52 = arith.addf %48, %51 : vector<8x68xf32>
    %c0_19 = arith.constant 0 : index
    %c0_20 = arith.constant 0 : index
    %c0_21 = arith.constant 0 : index
    %53 = vector.load %arg6[%c0_19, %c0_20, %c0_21] : memref<2x68x51xf32, #tpu.memory_space<vmem>>, vector<1x68x51xf32>
    %54 = vector.shape_cast %53 : vector<1x68x51xf32> to vector<68x51xf32>
    %cst_22 = arith.constant dense<0.000000e+00> : vector<8x51xf32>
    %55 = tpu.matmul %52, %54, %cst_22 {dimension_numbers = #tpu.dot_dimension_numbers<[1], [0], [0], [1], [0, 0, 1, 1], [], []>} : vector<8x68xf32>, vector<68x51xf32>, vector<8x51xf32> -> vector<8x51xf32>
    %c0_23 = arith.constant 0 : index
    %c0_24 = arith.constant 0 : index
    %c0_25 = arith.constant 0 : index
    %56 = vector.load %arg8[%c0_23, %c0_24, %c0_25] : memref<2x1x51xf32, #tpu.memory_space<vmem>>, vector<1x1x51xf32>
    %57 = vector.shape_cast %56 : vector<1x1x51xf32> to vector<1x51xf32>
    %58 = vector.broadcast %57 : vector<1x51xf32> to vector<8x51xf32>
    %59 = arith.addf %55, %58 : vector<8x51xf32>
    %cst_26 = arith.constant 0.000000e+00 : f32
    %60 = vector.broadcast %cst_26 : f32 to vector<2x17xf32>
    %cst_27 = arith.constant 0.000000e+00 : f32
    %61 = vector.broadcast %cst_27 : f32 to vector<2x11xf32>
    %cst_28 = arith.constant 0.000000e+00 : f32
    %62 = vector.broadcast %cst_28 : f32 to vector<2x68xf32>
    %cst_29 = arith.constant 0.000000e+00 : f32
    %63 = vector.broadcast %cst_29 : f32 to vector<8x68xf32>
    %64 = vector.extract_strided_slice %59 {offsets = [0, 0], sizes = [1, 51], strides = [1, 1]} : vector<8x51xf32> to vector<1x51xf32>
    %65 = vector.shape_cast %64 : vector<1x51xf32> to vector<1x51xf32>
    %66 = vector.broadcast %65 : vector<1x51xf32> to vector<2x51xf32>
    %c1_i32 = arith.constant 1 : i32
    %67 = vector.broadcast %c1_i32 : i32 to vector<2x51xi32>
    %68 = arith.cmpi eq, %27, %67 : vector<2x51xi32>
    %69 = vector.extract_strided_slice %59 {offsets = [4, 0], sizes = [1, 51], strides = [1, 1]} : vector<8x51xf32> to vector<1x51xf32>
    %70 = vector.shape_cast %69 : vector<1x51xf32> to vector<1x51xf32>
    %71 = vector.broadcast %70 : vector<1x51xf32> to vector<2x51xf32>
    %72 = arith.select %68, %71, %66 : vector<2x51xi1>, vector<2x51xf32>
    %c0_30 = arith.constant 0 : index
    %c0_31 = arith.constant 0 : index
    %c0_32 = arith.constant 0 : index
    %73 = vector.load %arg7[%c0_30, %c0_31, %c0_32] : memref<2x17x51xf32, #tpu.memory_space<vmem>>, vector<1x17x51xf32>
    %74 = vector.shape_cast %73 : vector<1x17x51xf32> to vector<17x51xf32>
    %cst_33 = arith.constant dense<0.000000e+00> : vector<2x51xf32>
    %75 = tpu.matmul %60, %74, %cst_33 {dimension_numbers = #tpu.dot_dimension_numbers<[1], [0], [0], [1], [0, 0, 1, 1], [], []>} : vector<2x17xf32>, vector<17x51xf32>, vector<2x51xf32> -> vector<2x51xf32>
    %76 = arith.addf %72, %75 : vector<2x51xf32>
    %77 = vector.extract_strided_slice %76 {offsets = [0, 0], sizes = [2, 17], strides = [1, 1]} : vector<2x51xf32> to vector<2x17xf32>
    %78 = math.tanh %77 : vector<2x17xf32>
    %79 = vector.extract_strided_slice %76 {offsets = [0, 17], sizes = [2, 17], strides = [1, 1]} : vector<2x51xf32> to vector<2x17xf32>
    %80 = math.tanh %79 : vector<2x17xf32>
    %81 = vector.extract_strided_slice %76 {offsets = [0, 34], sizes = [2, 17], strides = [1, 1]} : vector<2x51xf32> to vector<2x17xf32>
    %82 = arith.negf %81 : vector<2x17xf32>
    %83 = math.exp %82 : vector<2x17xf32>
    %cst_34 = arith.constant 1.000000e+00 : f32
    %84 = vector.broadcast %cst_34 : f32 to vector<2x17xf32>
    %85 = arith.addf %84, %83 : vector<2x17xf32>
    %86 = arith.divf %84, %85 : vector<2x17xf32>
    %cst_35 = arith.constant 1.000000e+00 : f32
    %87 = vector.broadcast %cst_35 : f32 to vector<2x17xf32>
    %88 = arith.subf %87, %86 : vector<2x17xf32>
    %89 = arith.mulf %78, %88 : vector<2x17xf32>
    %90 = arith.mulf %86, %80 : vector<2x17xf32>
    %91 = arith.addf %89, %90 : vector<2x17xf32>
    %c0_36 = arith.constant 0 : index
    %c0_37 = arith.constant 0 : index
    %c0_38 = arith.constant 0 : index
    %92 = vector.load %arg9[%c0_36, %c0_37, %c0_38] : memref<2x17x33xf32, #tpu.memory_space<vmem>>, vector<1x17x33xf32>
    %93 = vector.shape_cast %92 : vector<1x17x33xf32> to vector<17x33xf32>
    %cst_39 = arith.constant dense<0.000000e+00> : vector<2x33xf32>
    %94 = tpu.matmul %91, %93, %cst_39 {dimension_numbers = #tpu.dot_dimension_numbers<[1], [0], [0], [1], [0, 0, 1, 1], [], []>} : vector<2x17xf32>, vector<17x33xf32>, vector<2x33xf32> -> vector<2x33xf32>
    %c0_40 = arith.constant 0 : index
    %c0_41 = arith.constant 0 : index
    %c0_42 = arith.constant 0 : index
    %95 = vector.load %arg10[%c0_40, %c0_41, %c0_42] : memref<2x11x33xf32, #tpu.memory_space<vmem>>, vector<1x11x33xf32>
    %96 = vector.shape_cast %95 : vector<1x11x33xf32> to vector<11x33xf32>
    %cst_43 = arith.constant dense<0.000000e+00> : vector<2x33xf32>
    %97 = tpu.matmul %61, %96, %cst_43 {dimension_numbers = #tpu.dot_dimension_numbers<[1], [0], [0], [1], [0, 0, 1, 1], [], []>} : vector<2x11xf32>, vector<11x33xf32>, vector<2x33xf32> -> vector<2x33xf32>
    %98 = arith.addf %94, %97 : vector<2x33xf32>
    %c0_44 = arith.constant 0 : index
    %c0_45 = arith.constant 0 : index
    %c0_46 = arith.constant 0 : index
    %99 = vector.load %arg11[%c0_44, %c0_45, %c0_46] : memref<2x1x33xf32, #tpu.memory_space<vmem>>, vector<1x1x33xf32>
    %100 = vector.shape_cast %99 : vector<1x1x33xf32> to vector<1x33xf32>
    %101 = vector.broadcast %100 : vector<1x33xf32> to vector<2x33xf32>
    %102 = arith.addf %98, %101 : vector<2x33xf32>
    %103 = vector.extract_strided_slice %102 {offsets = [0, 0], sizes = [2, 11], strides = [1, 1]} : vector<2x33xf32> to vector<2x11xf32>
    %104 = math.tanh %103 : vector<2x11xf32>
    %105 = vector.extract_strided_slice %102 {offsets = [0, 11], sizes = [2, 11], strides = [1, 1]} : vector<2x33xf32> to vector<2x11xf32>
    %106 = math.tanh %105 : vector<2x11xf32>
    %107 = vector.extract_strided_slice %102 {offsets = [0, 22], sizes = [2, 11], strides = [1, 1]} : vector<2x33xf32> to vector<2x11xf32>
    %108 = arith.negf %107 : vector<2x11xf32>
    %109 = math.exp %108 : vector<2x11xf32>
    %cst_47 = arith.constant 1.000000e+00 : f32
    %110 = vector.broadcast %cst_47 : f32 to vector<2x11xf32>
    %111 = arith.addf %110, %109 : vector<2x11xf32>
    %112 = arith.divf %110, %111 : vector<2x11xf32>
    %cst_48 = arith.constant 1.000000e+00 : f32
    %113 = vector.broadcast %cst_48 : f32 to vector<2x11xf32>
    %114 = arith.subf %113, %112 : vector<2x11xf32>
    %115 = arith.mulf %104, %114 : vector<2x11xf32>
    %116 = arith.mulf %112, %106 : vector<2x11xf32>
    %117 = arith.addf %115, %116 : vector<2x11xf32>
    %c0_49 = arith.constant 0 : index
    %c0_50 = arith.constant 0 : index
    %c0_51 = arith.constant 0 : index
    %118 = vector.load %arg12[%c0_49, %c0_50, %c0_51] : memref<2x11x204xf32, #tpu.memory_space<vmem>>, vector<1x11x204xf32>
    %119 = vector.shape_cast %118 : vector<1x11x204xf32> to vector<11x204xf32>
    %cst_52 = arith.constant dense<0.000000e+00> : vector<2x204xf32>
    %120 = tpu.matmul %117, %119, %cst_52 {dimension_numbers = #tpu.dot_dimension_numbers<[1], [0], [0], [1], [0, 0, 1, 1], [], []>} : vector<2x11xf32>, vector<11x204xf32>, vector<2x204xf32> -> vector<2x204xf32>
    %c0_53 = arith.constant 0 : index
    %c0_54 = arith.constant 0 : index
    %c0_55 = arith.constant 0 : index
    %121 = vector.load %arg13[%c0_53, %c0_54, %c0_55] : memref<2x68x204xf32, #tpu.memory_space<vmem>>, vector<1x68x204xf32>
    %122 = vector.shape_cast %121 : vector<1x68x204xf32> to vector<68x204xf32>
    %cst_56 = arith.constant dense<0.000000e+00> : vector<2x204xf32>
    %123 = tpu.matmul %62, %122, %cst_56 {dimension_numbers = #tpu.dot_dimension_numbers<[1], [0], [0], [1], [0, 0, 1, 1], [], []>} : vector<2x68xf32>, vector<68x204xf32>, vector<2x204xf32> -> vector<2x204xf32>
    %124 = arith.addf %120, %123 : vector<2x204xf32>
    %c0_57 = arith.constant 0 : index
    %c0_58 = arith.constant 0 : index
    %c0_59 = arith.constant 0 : index
    %125 = vector.load %arg14[%c0_57, %c0_58, %c0_59] : memref<2x1x204xf32, #tpu.memory_space<vmem>>, vector<1x1x204xf32>
    %126 = vector.shape_cast %125 : vector<1x1x204xf32> to vector<1x204xf32>
    %127 = vector.broadcast %126 : vector<1x204xf32> to vector<2x204xf32>
    %128 = arith.addf %124, %127 : vector<2x204xf32>
    %129 = vector.extract_strided_slice %128 {offsets = [0, 0], sizes = [2, 68], strides = [1, 1]} : vector<2x204xf32> to vector<2x68xf32>
    %130 = math.tanh %129 : vector<2x68xf32>
    %131 = vector.extract_strided_slice %128 {offsets = [0, 68], sizes = [2, 68], strides = [1, 1]} : vector<2x204xf32> to vector<2x68xf32>
    %132 = math.tanh %131 : vector<2x68xf32>
    %133 = vector.extract_strided_slice %128 {offsets = [0, 136], sizes = [2, 68], strides = [1, 1]} : vector<2x204xf32> to vector<2x68xf32>
    %134 = arith.negf %133 : vector<2x68xf32>
    %135 = math.exp %134 : vector<2x68xf32>
    %cst_60 = arith.constant 1.000000e+00 : f32
    %136 = vector.broadcast %cst_60 : f32 to vector<2x68xf32>
    %137 = arith.addf %136, %135 : vector<2x68xf32>
    %138 = arith.divf %136, %137 : vector<2x68xf32>
    %cst_61 = arith.constant 1.000000e+00 : f32
    %139 = vector.broadcast %cst_61 : f32 to vector<2x68xf32>
    %140 = arith.subf %139, %138 : vector<2x68xf32>
    %141 = arith.mulf %130, %140 : vector<2x68xf32>
    %142 = arith.mulf %138, %132 : vector<2x68xf32>
    %143 = arith.addf %141, %142 : vector<2x68xf32>
    %c0_i32 = arith.constant 0 : i32
    %144 = vector.broadcast %c0_i32 : i32 to vector<8x68xi32>
    %145 = arith.cmpi eq, %26, %144 : vector<8x68xi32>
    %146 = vector.extract_strided_slice %143 {offsets = [0, 0], sizes = [1, 68], strides = [1, 1]} : vector<2x68xf32> to vector<1x68xf32>
    %147 = vector.shape_cast %146 : vector<1x68xf32> to vector<1x68xf32>
    %148 = vector.broadcast %147 : vector<1x68xf32> to vector<8x68xf32>
    %149 = arith.select %145, %148, %63 : vector<8x68xi1>, vector<8x68xf32>
    %c4_i32 = arith.constant 4 : i32
    %150 = vector.broadcast %c4_i32 : i32 to vector<8x68xi32>
    %151 = arith.cmpi eq, %26, %150 : vector<8x68xi32>
    %152 = vector.extract_strided_slice %143 {offsets = [1, 0], sizes = [1, 68], strides = [1, 1]} : vector<2x68xf32> to vector<1x68xf32>
    %153 = vector.shape_cast %152 : vector<1x68xf32> to vector<1x68xf32>
    %154 = vector.broadcast %153 : vector<1x68xf32> to vector<8x68xf32>
    %155 = arith.select %151, %154, %149 : vector<8x68xi1>, vector<8x68xf32>
    %156 = vector.extract_strided_slice %59 {offsets = [1, 0], sizes = [1, 51], strides = [1, 1]} : vector<8x51xf32> to vector<1x51xf32>
    %157 = vector.shape_cast %156 : vector<1x51xf32> to vector<1x51xf32>
    %158 = vector.broadcast %157 : vector<1x51xf32> to vector<2x51xf32>
    %c1_i32_62 = arith.constant 1 : i32
    %159 = vector.broadcast %c1_i32_62 : i32 to vector<2x51xi32>
    %160 = arith.cmpi eq, %27, %159 : vector<2x51xi32>
    %161 = vector.extract_strided_slice %59 {offsets = [5, 0], sizes = [1, 51], strides = [1, 1]} : vector<8x51xf32> to vector<1x51xf32>
    %162 = vector.shape_cast %161 : vector<1x51xf32> to vector<1x51xf32>
    %163 = vector.broadcast %162 : vector<1x51xf32> to vector<2x51xf32>
    %164 = arith.select %160, %163, %158 : vector<2x51xi1>, vector<2x51xf32>
    %c0_63 = arith.constant 0 : index
    %c0_64 = arith.constant 0 : index
    %c0_65 = arith.constant 0 : index
    %165 = vector.load %arg7[%c0_63, %c0_64, %c0_65] : memref<2x17x51xf32, #tpu.memory_space<vmem>>, vector<1x17x51xf32>
    %166 = vector.shape_cast %165 : vector<1x17x51xf32> to vector<17x51xf32>
    %cst_66 = arith.constant dense<0.000000e+00> : vector<2x51xf32>
    %167 = tpu.matmul %91, %166, %cst_66 {dimension_numbers = #tpu.dot_dimension_numbers<[1], [0], [0], [1], [0, 0, 1, 1], [], []>} : vector<2x17xf32>, vector<17x51xf32>, vector<2x51xf32> -> vector<2x51xf32>
    %168 = arith.addf %164, %167 : vector<2x51xf32>
    %169 = vector.extract_strided_slice %168 {offsets = [0, 0], sizes = [2, 17], strides = [1, 1]} : vector<2x51xf32> to vector<2x17xf32>
    %170 = math.tanh %169 : vector<2x17xf32>
    %171 = vector.extract_strided_slice %168 {offsets = [0, 17], sizes = [2, 17], strides = [1, 1]} : vector<2x51xf32> to vector<2x17xf32>
    %172 = math.tanh %171 : vector<2x17xf32>
    %173 = vector.extract_strided_slice %168 {offsets = [0, 34], sizes = [2, 17], strides = [1, 1]} : vector<2x51xf32> to vector<2x17xf32>
    %174 = arith.negf %173 : vector<2x17xf32>
    %175 = math.exp %174 : vector<2x17xf32>
    %cst_67 = arith.constant 1.000000e+00 : f32
    %176 = vector.broadcast %cst_67 : f32 to vector<2x17xf32>
    %177 = arith.addf %176, %175 : vector<2x17xf32>
    %178 = arith.divf %176, %177 : vector<2x17xf32>
    %cst_68 = arith.constant 1.000000e+00 : f32
    %179 = vector.broadcast %cst_68 : f32 to vector<2x17xf32>
    %180 = arith.subf %179, %178 : vector<2x17xf32>
    %181 = arith.mulf %170, %180 : vector<2x17xf32>
    %182 = arith.mulf %178, %172 : vector<2x17xf32>
    %183 = arith.addf %181, %182 : vector<2x17xf32>
    %c0_69 = arith.constant 0 : index
    %c0_70 = arith.constant 0 : index
    %c0_71 = arith.constant 0 : index
    %184 = vector.load %arg9[%c0_69, %c0_70, %c0_71] : memref<2x17x33xf32, #tpu.memory_space<vmem>>, vector<1x17x33xf32>
    %185 = vector.shape_cast %184 : vector<1x17x33xf32> to vector<17x33xf32>
    %cst_72 = arith.constant dense<0.000000e+00> : vector<2x33xf32>
    %186 = tpu.matmul %183, %185, %cst_72 {dimension_numbers = #tpu.dot_dimension_numbers<[1], [0], [0], [1], [0, 0, 1, 1], [], []>} : vector<2x17xf32>, vector<17x33xf32>, vector<2x33xf32> -> vector<2x33xf32>
    %c0_73 = arith.constant 0 : index
    %c0_74 = arith.constant 0 : index
    %c0_75 = arith.constant 0 : index
    %187 = vector.load %arg10[%c0_73, %c0_74, %c0_75] : memref<2x11x33xf32, #tpu.memory_space<vmem>>, vector<1x11x33xf32>
    %188 = vector.shape_cast %187 : vector<1x11x33xf32> to vector<11x33xf32>
    %cst_76 = arith.constant dense<0.000000e+00> : vector<2x33xf32>
    %189 = tpu.matmul %117, %188, %cst_76 {dimension_numbers = #tpu.dot_dimension_numbers<[1], [0], [0], [1], [0, 0, 1, 1], [], []>} : vector<2x11xf32>, vector<11x33xf32>, vector<2x33xf32> -> vector<2x33xf32>
    %190 = arith.addf %186, %189 : vector<2x33xf32>
    %c0_77 = arith.constant 0 : index
    %c0_78 = arith.constant 0 : index
    %c0_79 = arith.constant 0 : index
    %191 = vector.load %arg11[%c0_77, %c0_78, %c0_79] : memref<2x1x33xf32, #tpu.memory_space<vmem>>, vector<1x1x33xf32>
    %192 = vector.shape_cast %191 : vector<1x1x33xf32> to vector<1x33xf32>
    %193 = vector.broadcast %192 : vector<1x33xf32> to vector<2x33xf32>
    %194 = arith.addf %190, %193 : vector<2x33xf32>
    %195 = vector.extract_strided_slice %194 {offsets = [0, 0], sizes = [2, 11], strides = [1, 1]} : vector<2x33xf32> to vector<2x11xf32>
    %196 = math.tanh %195 : vector<2x11xf32>
    %197 = vector.extract_strided_slice %194 {offsets = [0, 11], sizes = [2, 11], strides = [1, 1]} : vector<2x33xf32> to vector<2x11xf32>
    %198 = math.tanh %197 : vector<2x11xf32>
    %199 = vector.extract_strided_slice %194 {offsets = [0, 22], sizes = [2, 11], strides = [1, 1]} : vector<2x33xf32> to vector<2x11xf32>
    %200 = arith.negf %199 : vector<2x11xf32>
    %201 = math.exp %200 : vector<2x11xf32>
    %cst_80 = arith.constant 1.000000e+00 : f32
    %202 = vector.broadcast %cst_80 : f32 to vector<2x11xf32>
    %203 = arith.addf %202, %201 : vector<2x11xf32>
    %204 = arith.divf %202, %203 : vector<2x11xf32>
    %cst_81 = arith.constant 1.000000e+00 : f32
    %205 = vector.broadcast %cst_81 : f32 to vector<2x11xf32>
    %206 = arith.subf %205, %204 : vector<2x11xf32>
    %207 = arith.mulf %196, %206 : vector<2x11xf32>
    %208 = arith.mulf %204, %198 : vector<2x11xf32>
    %209 = arith.addf %207, %208 : vector<2x11xf32>
    %c0_82 = arith.constant 0 : index
    %c0_83 = arith.constant 0 : index
    %c0_84 = arith.constant 0 : index
    %210 = vector.load %arg12[%c0_82, %c0_83, %c0_84] : memref<2x11x204xf32, #tpu.memory_space<vmem>>, vector<1x11x204xf32>
    %211 = vector.shape_cast %210 : vector<1x11x204xf32> to vector<11x204xf32>
    %cst_85 = arith.constant dense<0.000000e+00> : vector<2x204xf32>
    %212 = tpu.matmul %209, %211, %cst_85 {dimension_numbers = #tpu.dot_dimension_numbers<[1], [0], [0], [1], [0, 0, 1, 1], [], []>} : vector<2x11xf32>, vector<11x204xf32>, vector<2x204xf32> -> vector<2x204xf32>
    %c0_86 = arith.constant 0 : index
    %c0_87 = arith.constant 0 : index
    %c0_88 = arith.constant 0 : index
    %213 = vector.load %arg13[%c0_86, %c0_87, %c0_88] : memref<2x68x204xf32, #tpu.memory_space<vmem>>, vector<1x68x204xf32>
    %214 = vector.shape_cast %213 : vector<1x68x204xf32> to vector<68x204xf32>
    %cst_89 = arith.constant dense<0.000000e+00> : vector<2x204xf32>
    %215 = tpu.matmul %143, %214, %cst_89 {dimension_numbers = #tpu.dot_dimension_numbers<[1], [0], [0], [1], [0, 0, 1, 1], [], []>} : vector<2x68xf32>, vector<68x204xf32>, vector<2x204xf32> -> vector<2x204xf32>
    %216 = arith.addf %212, %215 : vector<2x204xf32>
    %c0_90 = arith.constant 0 : index
    %c0_91 = arith.constant 0 : index
    %c0_92 = arith.constant 0 : index
    %217 = vector.load %arg14[%c0_90, %c0_91, %c0_92] : memref<2x1x204xf32, #tpu.memory_space<vmem>>, vector<1x1x204xf32>
    %218 = vector.shape_cast %217 : vector<1x1x204xf32> to vector<1x204xf32>
    %219 = vector.broadcast %218 : vector<1x204xf32> to vector<2x204xf32>
    %220 = arith.addf %216, %219 : vector<2x204xf32>
    %221 = vector.extract_strided_slice %220 {offsets = [0, 0], sizes = [2, 68], strides = [1, 1]} : vector<2x204xf32> to vector<2x68xf32>
    %222 = math.tanh %221 : vector<2x68xf32>
    %223 = vector.extract_strided_slice %220 {offsets = [0, 68], sizes = [2, 68], strides = [1, 1]} : vector<2x204xf32> to vector<2x68xf32>
    %224 = math.tanh %223 : vector<2x68xf32>
    %225 = vector.extract_strided_slice %220 {offsets = [0, 136], sizes = [2, 68], strides = [1, 1]} : vector<2x204xf32> to vector<2x68xf32>
    %226 = arith.negf %225 : vector<2x68xf32>
    %227 = math.exp %226 : vector<2x68xf32>
    %cst_93 = arith.constant 1.000000e+00 : f32
    %228 = vector.broadcast %cst_93 : f32 to vector<2x68xf32>
    %229 = arith.addf %228, %227 : vector<2x68xf32>
    %230 = arith.divf %228, %229 : vector<2x68xf32>
    %cst_94 = arith.constant 1.000000e+00 : f32
    %231 = vector.broadcast %cst_94 : f32 to vector<2x68xf32>
    %232 = arith.subf %231, %230 : vector<2x68xf32>
    %233 = arith.mulf %222, %232 : vector<2x68xf32>
    %234 = arith.mulf %230, %224 : vector<2x68xf32>
    %235 = arith.addf %233, %234 : vector<2x68xf32>
    %c1_i32_95 = arith.constant 1 : i32
    %236 = vector.broadcast %c1_i32_95 : i32 to vector<8x68xi32>
    %237 = arith.cmpi eq, %26, %236 : vector<8x68xi32>
    %238 = vector.extract_strided_slice %235 {offsets = [0, 0], sizes = [1, 68], strides = [1, 1]} : vector<2x68xf32> to vector<1x68xf32>
    %239 = vector.shape_cast %238 : vector<1x68xf32> to vector<1x68xf32>
    %240 = vector.broadcast %239 : vector<1x68xf32> to vector<8x68xf32>
    %241 = arith.select %237, %240, %155 : vector<8x68xi1>, vector<8x68xf32>
    %c5_i32 = arith.constant 5 : i32
    %242 = vector.broadcast %c5_i32 : i32 to vector<8x68xi32>
    %243 = arith.cmpi eq, %26, %242 : vector<8x68xi32>
    %244 = vector.extract_strided_slice %235 {offsets = [1, 0], sizes = [1, 68], strides = [1, 1]} : vector<2x68xf32> to vector<1x68xf32>
    %245 = vector.shape_cast %244 : vector<1x68xf32> to vector<1x68xf32>
    %246 = vector.broadcast %245 : vector<1x68xf32> to vector<8x68xf32>
    %247 = arith.select %243, %246, %241 : vector<8x68xi1>, vector<8x68xf32>
    %248 = vector.extract_strided_slice %59 {offsets = [2, 0], sizes = [1, 51], strides = [1, 1]} : vector<8x51xf32> to vector<1x51xf32>
    %249 = vector.shape_cast %248 : vector<1x51xf32> to vector<1x51xf32>
    %250 = vector.broadcast %249 : vector<1x51xf32> to vector<2x51xf32>
    %c1_i32_96 = arith.constant 1 : i32
    %251 = vector.broadcast %c1_i32_96 : i32 to vector<2x51xi32>
    %252 = arith.cmpi eq, %27, %251 : vector<2x51xi32>
    %253 = vector.extract_strided_slice %59 {offsets = [6, 0], sizes = [1, 51], strides = [1, 1]} : vector<8x51xf32> to vector<1x51xf32>
    %254 = vector.shape_cast %253 : vector<1x51xf32> to vector<1x51xf32>
    %255 = vector.broadcast %254 : vector<1x51xf32> to vector<2x51xf32>
    %256 = arith.select %252, %255, %250 : vector<2x51xi1>, vector<2x51xf32>
    %c0_97 = arith.constant 0 : index
    %c0_98 = arith.constant 0 : index
    %c0_99 = arith.constant 0 : index
    %257 = vector.load %arg7[%c0_97, %c0_98, %c0_99] : memref<2x17x51xf32, #tpu.memory_space<vmem>>, vector<1x17x51xf32>
    %258 = vector.shape_cast %257 : vector<1x17x51xf32> to vector<17x51xf32>
    %cst_100 = arith.constant dense<0.000000e+00> : vector<2x51xf32>
    %259 = tpu.matmul %183, %258, %cst_100 {dimension_numbers = #tpu.dot_dimension_numbers<[1], [0], [0], [1], [0, 0, 1, 1], [], []>} : vector<2x17xf32>, vector<17x51xf32>, vector<2x51xf32> -> vector<2x51xf32>
    %260 = arith.addf %256, %259 : vector<2x51xf32>
    %261 = vector.extract_strided_slice %260 {offsets = [0, 0], sizes = [2, 17], strides = [1, 1]} : vector<2x51xf32> to vector<2x17xf32>
    %262 = math.tanh %261 : vector<2x17xf32>
    %263 = vector.extract_strided_slice %260 {offsets = [0, 17], sizes = [2, 17], strides = [1, 1]} : vector<2x51xf32> to vector<2x17xf32>
    %264 = math.tanh %263 : vector<2x17xf32>
    %265 = vector.extract_strided_slice %260 {offsets = [0, 34], sizes = [2, 17], strides = [1, 1]} : vector<2x51xf32> to vector<2x17xf32>
    %266 = arith.negf %265 : vector<2x17xf32>
    %267 = math.exp %266 : vector<2x17xf32>
    %cst_101 = arith.constant 1.000000e+00 : f32
    %268 = vector.broadcast %cst_101 : f32 to vector<2x17xf32>
    %269 = arith.addf %268, %267 : vector<2x17xf32>
    %270 = arith.divf %268, %269 : vector<2x17xf32>
    %cst_102 = arith.constant 1.000000e+00 : f32
    %271 = vector.broadcast %cst_102 : f32 to vector<2x17xf32>
    %272 = arith.subf %271, %270 : vector<2x17xf32>
    %273 = arith.mulf %262, %272 : vector<2x17xf32>
    %274 = arith.mulf %270, %264 : vector<2x17xf32>
    %275 = arith.addf %273, %274 : vector<2x17xf32>
    %c0_103 = arith.constant 0 : index
    %c0_104 = arith.constant 0 : index
    %c0_105 = arith.constant 0 : index
    %276 = vector.load %arg9[%c0_103, %c0_104, %c0_105] : memref<2x17x33xf32, #tpu.memory_space<vmem>>, vector<1x17x33xf32>
    %277 = vector.shape_cast %276 : vector<1x17x33xf32> to vector<17x33xf32>
    %cst_106 = arith.constant dense<0.000000e+00> : vector<2x33xf32>
    %278 = tpu.matmul %275, %277, %cst_106 {dimension_numbers = #tpu.dot_dimension_numbers<[1], [0], [0], [1], [0, 0, 1, 1], [], []>} : vector<2x17xf32>, vector<17x33xf32>, vector<2x33xf32> -> vector<2x33xf32>
    %c0_107 = arith.constant 0 : index
    %c0_108 = arith.constant 0 : index
    %c0_109 = arith.constant 0 : index
    %279 = vector.load %arg10[%c0_107, %c0_108, %c0_109] : memref<2x11x33xf32, #tpu.memory_space<vmem>>, vector<1x11x33xf32>
    %280 = vector.shape_cast %279 : vector<1x11x33xf32> to vector<11x33xf32>
    %cst_110 = arith.constant dense<0.000000e+00> : vector<2x33xf32>
    %281 = tpu.matmul %209, %280, %cst_110 {dimension_numbers = #tpu.dot_dimension_numbers<[1], [0], [0], [1], [0, 0, 1, 1], [], []>} : vector<2x11xf32>, vector<11x33xf32>, vector<2x33xf32> -> vector<2x33xf32>
    %282 = arith.addf %278, %281 : vector<2x33xf32>
    %c0_111 = arith.constant 0 : index
    %c0_112 = arith.constant 0 : index
    %c0_113 = arith.constant 0 : index
    %283 = vector.load %arg11[%c0_111, %c0_112, %c0_113] : memref<2x1x33xf32, #tpu.memory_space<vmem>>, vector<1x1x33xf32>
    %284 = vector.shape_cast %283 : vector<1x1x33xf32> to vector<1x33xf32>
    %285 = vector.broadcast %284 : vector<1x33xf32> to vector<2x33xf32>
    %286 = arith.addf %282, %285 : vector<2x33xf32>
    %287 = vector.extract_strided_slice %286 {offsets = [0, 0], sizes = [2, 11], strides = [1, 1]} : vector<2x33xf32> to vector<2x11xf32>
    %288 = math.tanh %287 : vector<2x11xf32>
    %289 = vector.extract_strided_slice %286 {offsets = [0, 11], sizes = [2, 11], strides = [1, 1]} : vector<2x33xf32> to vector<2x11xf32>
    %290 = math.tanh %289 : vector<2x11xf32>
    %291 = vector.extract_strided_slice %286 {offsets = [0, 22], sizes = [2, 11], strides = [1, 1]} : vector<2x33xf32> to vector<2x11xf32>
    %292 = arith.negf %291 : vector<2x11xf32>
    %293 = math.exp %292 : vector<2x11xf32>
    %cst_114 = arith.constant 1.000000e+00 : f32
    %294 = vector.broadcast %cst_114 : f32 to vector<2x11xf32>
    %295 = arith.addf %294, %293 : vector<2x11xf32>
    %296 = arith.divf %294, %295 : vector<2x11xf32>
    %cst_115 = arith.constant 1.000000e+00 : f32
    %297 = vector.broadcast %cst_115 : f32 to vector<2x11xf32>
    %298 = arith.subf %297, %296 : vector<2x11xf32>
    %299 = arith.mulf %288, %298 : vector<2x11xf32>
    %300 = arith.mulf %296, %290 : vector<2x11xf32>
    %301 = arith.addf %299, %300 : vector<2x11xf32>
    %c0_116 = arith.constant 0 : index
    %c0_117 = arith.constant 0 : index
    %c0_118 = arith.constant 0 : index
    %302 = vector.load %arg12[%c0_116, %c0_117, %c0_118] : memref<2x11x204xf32, #tpu.memory_space<vmem>>, vector<1x11x204xf32>
    %303 = vector.shape_cast %302 : vector<1x11x204xf32> to vector<11x204xf32>
    %cst_119 = arith.constant dense<0.000000e+00> : vector<2x204xf32>
    %304 = tpu.matmul %301, %303, %cst_119 {dimension_numbers = #tpu.dot_dimension_numbers<[1], [0], [0], [1], [0, 0, 1, 1], [], []>} : vector<2x11xf32>, vector<11x204xf32>, vector<2x204xf32> -> vector<2x204xf32>
    %c0_120 = arith.constant 0 : index
    %c0_121 = arith.constant 0 : index
    %c0_122 = arith.constant 0 : index
    %305 = vector.load %arg13[%c0_120, %c0_121, %c0_122] : memref<2x68x204xf32, #tpu.memory_space<vmem>>, vector<1x68x204xf32>
    %306 = vector.shape_cast %305 : vector<1x68x204xf32> to vector<68x204xf32>
    %cst_123 = arith.constant dense<0.000000e+00> : vector<2x204xf32>
    %307 = tpu.matmul %235, %306, %cst_123 {dimension_numbers = #tpu.dot_dimension_numbers<[1], [0], [0], [1], [0, 0, 1, 1], [], []>} : vector<2x68xf32>, vector<68x204xf32>, vector<2x204xf32> -> vector<2x204xf32>
    %308 = arith.addf %304, %307 : vector<2x204xf32>
    %c0_124 = arith.constant 0 : index
    %c0_125 = arith.constant 0 : index
    %c0_126 = arith.constant 0 : index
    %309 = vector.load %arg14[%c0_124, %c0_125, %c0_126] : memref<2x1x204xf32, #tpu.memory_space<vmem>>, vector<1x1x204xf32>
    %310 = vector.shape_cast %309 : vector<1x1x204xf32> to vector<1x204xf32>
    %311 = vector.broadcast %310 : vector<1x204xf32> to vector<2x204xf32>
    %312 = arith.addf %308, %311 : vector<2x204xf32>
    %313 = vector.extract_strided_slice %312 {offsets = [0, 0], sizes = [2, 68], strides = [1, 1]} : vector<2x204xf32> to vector<2x68xf32>
    %314 = math.tanh %313 : vector<2x68xf32>
    %315 = vector.extract_strided_slice %312 {offsets = [0, 68], sizes = [2, 68], strides = [1, 1]} : vector<2x204xf32> to vector<2x68xf32>
    %316 = math.tanh %315 : vector<2x68xf32>
    %317 = vector.extract_strided_slice %312 {offsets = [0, 136], sizes = [2, 68], strides = [1, 1]} : vector<2x204xf32> to vector<2x68xf32>
    %318 = arith.negf %317 : vector<2x68xf32>
    %319 = math.exp %318 : vector<2x68xf32>
    %cst_127 = arith.constant 1.000000e+00 : f32
    %320 = vector.broadcast %cst_127 : f32 to vector<2x68xf32>
    %321 = arith.addf %320, %319 : vector<2x68xf32>
    %322 = arith.divf %320, %321 : vector<2x68xf32>
    %cst_128 = arith.constant 1.000000e+00 : f32
    %323 = vector.broadcast %cst_128 : f32 to vector<2x68xf32>
    %324 = arith.subf %323, %322 : vector<2x68xf32>
    %325 = arith.mulf %314, %324 : vector<2x68xf32>
    %326 = arith.mulf %322, %316 : vector<2x68xf32>
    %327 = arith.addf %325, %326 : vector<2x68xf32>
    %c2_i32 = arith.constant 2 : i32
    %328 = vector.broadcast %c2_i32 : i32 to vector<8x68xi32>
    %329 = arith.cmpi eq, %26, %328 : vector<8x68xi32>
    %330 = vector.extract_strided_slice %327 {offsets = [0, 0], sizes = [1, 68], strides = [1, 1]} : vector<2x68xf32> to vector<1x68xf32>
    %331 = vector.shape_cast %330 : vector<1x68xf32> to vector<1x68xf32>
    %332 = vector.broadcast %331 : vector<1x68xf32> to vector<8x68xf32>
    %333 = arith.select %329, %332, %247 : vector<8x68xi1>, vector<8x68xf32>
    %c6_i32 = arith.constant 6 : i32
    %334 = vector.broadcast %c6_i32 : i32 to vector<8x68xi32>
    %335 = arith.cmpi eq, %26, %334 : vector<8x68xi32>
    %336 = vector.extract_strided_slice %327 {offsets = [1, 0], sizes = [1, 68], strides = [1, 1]} : vector<2x68xf32> to vector<1x68xf32>
    %337 = vector.shape_cast %336 : vector<1x68xf32> to vector<1x68xf32>
    %338 = vector.broadcast %337 : vector<1x68xf32> to vector<8x68xf32>
    %339 = arith.select %335, %338, %333 : vector<8x68xi1>, vector<8x68xf32>
    %340 = vector.extract_strided_slice %59 {offsets = [3, 0], sizes = [1, 51], strides = [1, 1]} : vector<8x51xf32> to vector<1x51xf32>
    %341 = vector.shape_cast %340 : vector<1x51xf32> to vector<1x51xf32>
    %342 = vector.broadcast %341 : vector<1x51xf32> to vector<2x51xf32>
    %c1_i32_129 = arith.constant 1 : i32
    %343 = vector.broadcast %c1_i32_129 : i32 to vector<2x51xi32>
    %344 = arith.cmpi eq, %27, %343 : vector<2x51xi32>
    %345 = vector.extract_strided_slice %59 {offsets = [7, 0], sizes = [1, 51], strides = [1, 1]} : vector<8x51xf32> to vector<1x51xf32>
    %346 = vector.shape_cast %345 : vector<1x51xf32> to vector<1x51xf32>
    %347 = vector.broadcast %346 : vector<1x51xf32> to vector<2x51xf32>
    %348 = arith.select %344, %347, %342 : vector<2x51xi1>, vector<2x51xf32>
    %c0_130 = arith.constant 0 : index
    %c0_131 = arith.constant 0 : index
    %c0_132 = arith.constant 0 : index
    %349 = vector.load %arg7[%c0_130, %c0_131, %c0_132] : memref<2x17x51xf32, #tpu.memory_space<vmem>>, vector<1x17x51xf32>
    %350 = vector.shape_cast %349 : vector<1x17x51xf32> to vector<17x51xf32>
    %cst_133 = arith.constant dense<0.000000e+00> : vector<2x51xf32>
    %351 = tpu.matmul %275, %350, %cst_133 {dimension_numbers = #tpu.dot_dimension_numbers<[1], [0], [0], [1], [0, 0, 1, 1], [], []>} : vector<2x17xf32>, vector<17x51xf32>, vector<2x51xf32> -> vector<2x51xf32>
    %352 = arith.addf %348, %351 : vector<2x51xf32>
    %353 = vector.extract_strided_slice %352 {offsets = [0, 0], sizes = [2, 17], strides = [1, 1]} : vector<2x51xf32> to vector<2x17xf32>
    %354 = math.tanh %353 : vector<2x17xf32>
    %355 = vector.extract_strided_slice %352 {offsets = [0, 17], sizes = [2, 17], strides = [1, 1]} : vector<2x51xf32> to vector<2x17xf32>
    %356 = math.tanh %355 : vector<2x17xf32>
    %357 = vector.extract_strided_slice %352 {offsets = [0, 34], sizes = [2, 17], strides = [1, 1]} : vector<2x51xf32> to vector<2x17xf32>
    %358 = arith.negf %357 : vector<2x17xf32>
    %359 = math.exp %358 : vector<2x17xf32>
    %cst_134 = arith.constant 1.000000e+00 : f32
    %360 = vector.broadcast %cst_134 : f32 to vector<2x17xf32>
    %361 = arith.addf %360, %359 : vector<2x17xf32>
    %362 = arith.divf %360, %361 : vector<2x17xf32>
    %cst_135 = arith.constant 1.000000e+00 : f32
    %363 = vector.broadcast %cst_135 : f32 to vector<2x17xf32>
    %364 = arith.subf %363, %362 : vector<2x17xf32>
    %365 = arith.mulf %354, %364 : vector<2x17xf32>
    %366 = arith.mulf %362, %356 : vector<2x17xf32>
    %367 = arith.addf %365, %366 : vector<2x17xf32>
    %c0_136 = arith.constant 0 : index
    %c0_137 = arith.constant 0 : index
    %c0_138 = arith.constant 0 : index
    %368 = vector.load %arg9[%c0_136, %c0_137, %c0_138] : memref<2x17x33xf32, #tpu.memory_space<vmem>>, vector<1x17x33xf32>
    %369 = vector.shape_cast %368 : vector<1x17x33xf32> to vector<17x33xf32>
    %cst_139 = arith.constant dense<0.000000e+00> : vector<2x33xf32>
    %370 = tpu.matmul %367, %369, %cst_139 {dimension_numbers = #tpu.dot_dimension_numbers<[1], [0], [0], [1], [0, 0, 1, 1], [], []>} : vector<2x17xf32>, vector<17x33xf32>, vector<2x33xf32> -> vector<2x33xf32>
    %c0_140 = arith.constant 0 : index
    %c0_141 = arith.constant 0 : index
    %c0_142 = arith.constant 0 : index
    %371 = vector.load %arg10[%c0_140, %c0_141, %c0_142] : memref<2x11x33xf32, #tpu.memory_space<vmem>>, vector<1x11x33xf32>
    %372 = vector.shape_cast %371 : vector<1x11x33xf32> to vector<11x33xf32>
    %cst_143 = arith.constant dense<0.000000e+00> : vector<2x33xf32>
    %373 = tpu.matmul %301, %372, %cst_143 {dimension_numbers = #tpu.dot_dimension_numbers<[1], [0], [0], [1], [0, 0, 1, 1], [], []>} : vector<2x11xf32>, vector<11x33xf32>, vector<2x33xf32> -> vector<2x33xf32>
    %374 = arith.addf %370, %373 : vector<2x33xf32>
    %c0_144 = arith.constant 0 : index
    %c0_145 = arith.constant 0 : index
    %c0_146 = arith.constant 0 : index
    %375 = vector.load %arg11[%c0_144, %c0_145, %c0_146] : memref<2x1x33xf32, #tpu.memory_space<vmem>>, vector<1x1x33xf32>
    %376 = vector.shape_cast %375 : vector<1x1x33xf32> to vector<1x33xf32>
    %377 = vector.broadcast %376 : vector<1x33xf32> to vector<2x33xf32>
    %378 = arith.addf %374, %377 : vector<2x33xf32>
    %379 = vector.extract_strided_slice %378 {offsets = [0, 0], sizes = [2, 11], strides = [1, 1]} : vector<2x33xf32> to vector<2x11xf32>
    %380 = math.tanh %379 : vector<2x11xf32>
    %381 = vector.extract_strided_slice %378 {offsets = [0, 11], sizes = [2, 11], strides = [1, 1]} : vector<2x33xf32> to vector<2x11xf32>
    %382 = math.tanh %381 : vector<2x11xf32>
    %383 = vector.extract_strided_slice %378 {offsets = [0, 22], sizes = [2, 11], strides = [1, 1]} : vector<2x33xf32> to vector<2x11xf32>
    %384 = arith.negf %383 : vector<2x11xf32>
    %385 = math.exp %384 : vector<2x11xf32>
    %cst_147 = arith.constant 1.000000e+00 : f32
    %386 = vector.broadcast %cst_147 : f32 to vector<2x11xf32>
    %387 = arith.addf %386, %385 : vector<2x11xf32>
    %388 = arith.divf %386, %387 : vector<2x11xf32>
    %cst_148 = arith.constant 1.000000e+00 : f32
    %389 = vector.broadcast %cst_148 : f32 to vector<2x11xf32>
    %390 = arith.subf %389, %388 : vector<2x11xf32>
    %391 = arith.mulf %380, %390 : vector<2x11xf32>
    %392 = arith.mulf %388, %382 : vector<2x11xf32>
    %393 = arith.addf %391, %392 : vector<2x11xf32>
    %c0_149 = arith.constant 0 : index
    %c0_150 = arith.constant 0 : index
    %c0_151 = arith.constant 0 : index
    %394 = vector.load %arg12[%c0_149, %c0_150, %c0_151] : memref<2x11x204xf32, #tpu.memory_space<vmem>>, vector<1x11x204xf32>
    %395 = vector.shape_cast %394 : vector<1x11x204xf32> to vector<11x204xf32>
    %cst_152 = arith.constant dense<0.000000e+00> : vector<2x204xf32>
    %396 = tpu.matmul %393, %395, %cst_152 {dimension_numbers = #tpu.dot_dimension_numbers<[1], [0], [0], [1], [0, 0, 1, 1], [], []>} : vector<2x11xf32>, vector<11x204xf32>, vector<2x204xf32> -> vector<2x204xf32>
    %c0_153 = arith.constant 0 : index
    %c0_154 = arith.constant 0 : index
    %c0_155 = arith.constant 0 : index
    %397 = vector.load %arg13[%c0_153, %c0_154, %c0_155] : memref<2x68x204xf32, #tpu.memory_space<vmem>>, vector<1x68x204xf32>
    %398 = vector.shape_cast %397 : vector<1x68x204xf32> to vector<68x204xf32>
    %cst_156 = arith.constant dense<0.000000e+00> : vector<2x204xf32>
    %399 = tpu.matmul %327, %398, %cst_156 {dimension_numbers = #tpu.dot_dimension_numbers<[1], [0], [0], [1], [0, 0, 1, 1], [], []>} : vector<2x68xf32>, vector<68x204xf32>, vector<2x204xf32> -> vector<2x204xf32>
    %400 = arith.addf %396, %399 : vector<2x204xf32>
    %c0_157 = arith.constant 0 : index
    %c0_158 = arith.constant 0 : index
    %c0_159 = arith.constant 0 : index
    %401 = vector.load %arg14[%c0_157, %c0_158, %c0_159] : memref<2x1x204xf32, #tpu.memory_space<vmem>>, vector<1x1x204xf32>
    %402 = vector.shape_cast %401 : vector<1x1x204xf32> to vector<1x204xf32>
    %403 = vector.broadcast %402 : vector<1x204xf32> to vector<2x204xf32>
    %404 = arith.addf %400, %403 : vector<2x204xf32>
    %405 = vector.extract_strided_slice %404 {offsets = [0, 0], sizes = [2, 68], strides = [1, 1]} : vector<2x204xf32> to vector<2x68xf32>
    %406 = math.tanh %405 : vector<2x68xf32>
    %407 = vector.extract_strided_slice %404 {offsets = [0, 68], sizes = [2, 68], strides = [1, 1]} : vector<2x204xf32> to vector<2x68xf32>
    %408 = math.tanh %407 : vector<2x68xf32>
    %409 = vector.extract_strided_slice %404 {offsets = [0, 136], sizes = [2, 68], strides = [1, 1]} : vector<2x204xf32> to vector<2x68xf32>
    %410 = arith.negf %409 : vector<2x68xf32>
    %411 = math.exp %410 : vector<2x68xf32>
    %cst_160 = arith.constant 1.000000e+00 : f32
    %412 = vector.broadcast %cst_160 : f32 to vector<2x68xf32>
    %413 = arith.addf %412, %411 : vector<2x68xf32>
    %414 = arith.divf %412, %413 : vector<2x68xf32>
    %cst_161 = arith.constant 1.000000e+00 : f32
    %415 = vector.broadcast %cst_161 : f32 to vector<2x68xf32>
    %416 = arith.subf %415, %414 : vector<2x68xf32>
    %417 = arith.mulf %406, %416 : vector<2x68xf32>
    %418 = arith.mulf %414, %408 : vector<2x68xf32>
    %419 = arith.addf %417, %418 : vector<2x68xf32>
    %c3_i32 = arith.constant 3 : i32
    %420 = vector.broadcast %c3_i32 : i32 to vector<8x68xi32>
    %421 = arith.cmpi eq, %26, %420 : vector<8x68xi32>
    %422 = vector.extract_strided_slice %419 {offsets = [0, 0], sizes = [1, 68], strides = [1, 1]} : vector<2x68xf32> to vector<1x68xf32>
    %423 = vector.shape_cast %422 : vector<1x68xf32> to vector<1x68xf32>
    %424 = vector.broadcast %423 : vector<1x68xf32> to vector<8x68xf32>
    %425 = arith.select %421, %424, %339 : vector<8x68xi1>, vector<8x68xf32>
    %c7_i32 = arith.constant 7 : i32
    %426 = vector.broadcast %c7_i32 : i32 to vector<8x68xi32>
    %427 = arith.cmpi eq, %26, %426 : vector<8x68xi32>
    %428 = vector.extract_strided_slice %419 {offsets = [1, 0], sizes = [1, 68], strides = [1, 1]} : vector<2x68xf32> to vector<1x68xf32>
    %429 = vector.shape_cast %428 : vector<1x68xf32> to vector<1x68xf32>
    %430 = vector.broadcast %429 : vector<1x68xf32> to vector<8x68xf32>
    %431 = arith.select %427, %430, %425 : vector<8x68xi1>, vector<8x68xf32>
    %432 = tpu.concatenate %367, %393, %419 in 1 : vector<2x17xf32>, vector<2x11xf32>, vector<2x68xf32> -> vector<2x96xf32>
    %c0_162 = arith.constant 0 : index
    %c0_163 = arith.constant 0 : index
    %c0_164 = arith.constant 0 : index
    %433 = vector.load %arg23[%c0_162, %c0_163, %c0_164] : memref<2x2x96xf32, #tpu.memory_space<vmem>>, vector<1x2x96xf32>
    %434 = vector.shape_cast %433 : vector<1x2x96xf32> to vector<2x96xf32>
    %435 = vector.shape_cast %432 : vector<2x96xf32> to vector<1x2x96xf32>
    tpu.vector_store %arg23[%c0_162, %c0_163, %c0_164], %435 {strides = array<i32>} : memref<2x2x96xf32, #tpu.memory_space<vmem>>, vector<1x2x96xf32>,
    %436 = arith.mulf %431, %431 : vector<8x68xf32>
    %437 = tpu.concatenate %431, %436 in 0 : vector<8x68xf32>, vector<8x68xf32> -> vector<16x68xf32>
    %cst_165 = arith.constant dense<0.000000e+00> : vector<16xf32>
    %438 = vector.multi_reduction <add>, %437, %cst_165 [1] : vector<16x68xf32> to vector<16xf32>
    %439 = vector.shape_cast %438 : vector<16xf32> to vector<16x1xf32>
    %cst_166 = arith.constant 0.0147058824 : f32
    %440 = vector.broadcast %cst_166 : f32 to vector<16x1xf32>
    %441 = arith.mulf %439, %440 : vector<16x1xf32>
    %442 = vector.extract_strided_slice %441 {offsets = [0, 0], sizes = [8, 1], strides = [1, 1]} : vector<16x1xf32> to vector<8x1xf32>
    %443 = vector.extract_strided_slice %441 {offsets = [8, 0], sizes = [8, 1], strides = [1, 1]} : vector<16x1xf32> to vector<8x1xf32>
    %444 = vector.broadcast %442 : vector<8x1xf32> to vector<8x68xf32>
    %445 = arith.subf %431, %444 : vector<8x68xf32>
    %446 = arith.mulf %442, %442 : vector<8x1xf32>
    %447 = arith.subf %443, %446 : vector<8x1xf32>
    %cst_167 = arith.constant 9.99999974E-6 : f32
    %448 = vector.broadcast %cst_167 : f32 to vector<8x1xf32>
    %449 = arith.addf %447, %448 : vector<8x1xf32>
    %450 = math.rsqrt %449 : vector<8x1xf32>
    %451 = vector.broadcast %450 : vector<8x1xf32> to vector<8x68xf32>
    %452 = arith.mulf %445, %451 : vector<8x68xf32>
    %c1 = arith.constant 1 : index
    %c0_168 = arith.constant 0 : index
    %c0_169 = arith.constant 0 : index
    %453 = vector.load %arg4[%c1, %c0_168, %c0_169] : memref<2x1x68xf32, #tpu.memory_space<vmem>>, vector<1x1x68xf32>
    %454 = vector.shape_cast %453 : vector<1x1x68xf32> to vector<1x68xf32>
    %455 = vector.broadcast %454 : vector<1x68xf32> to vector<8x68xf32>
    %456 = arith.mulf %452, %455 : vector<8x68xf32>
    %c1_170 = arith.constant 1 : index
    %c0_171 = arith.constant 0 : index
    %c0_172 = arith.constant 0 : index
    %457 = vector.load %arg5[%c1_170, %c0_171, %c0_172] : memref<2x1x68xf32, #tpu.memory_space<vmem>>, vector<1x1x68xf32>
    %458 = vector.shape_cast %457 : vector<1x1x68xf32> to vector<1x68xf32>
    %459 = vector.broadcast %458 : vector<1x68xf32> to vector<8x68xf32>
    %460 = arith.addf %456, %459 : vector<8x68xf32>
    %c1_173 = arith.constant 1 : index
    %c0_174 = arith.constant 0 : index
    %c0_175 = arith.constant 0 : index
    %461 = vector.load %arg6[%c1_173, %c0_174, %c0_175] : memref<2x68x51xf32, #tpu.memory_space<vmem>>, vector<1x68x51xf32>
    %462 = vector.shape_cast %461 : vector<1x68x51xf32> to vector<68x51xf32>
    %cst_176 = arith.constant dense<0.000000e+00> : vector<8x51xf32>
    %463 = tpu.matmul %460, %462, %cst_176 {dimension_numbers = #tpu.dot_dimension_numbers<[1], [0], [0], [1], [0, 0, 1, 1], [], []>} : vector<8x68xf32>, vector<68x51xf32>, vector<8x51xf32> -> vector<8x51xf32>
    %c1_177 = arith.constant 1 : index
    %c0_178 = arith.constant 0 : index
    %c0_179 = arith.constant 0 : index
    %464 = vector.load %arg8[%c1_177, %c0_178, %c0_179] : memref<2x1x51xf32, #tpu.memory_space<vmem>>, vector<1x1x51xf32>
    %465 = vector.shape_cast %464 : vector<1x1x51xf32> to vector<1x51xf32>
    %466 = vector.broadcast %465 : vector<1x51xf32> to vector<8x51xf32>
    %467 = arith.addf %463, %466 : vector<8x51xf32>
    %cst_180 = arith.constant 0.000000e+00 : f32
    %468 = vector.broadcast %cst_180 : f32 to vector<2x17xf32>
    %cst_181 = arith.constant 0.000000e+00 : f32
    %469 = vector.broadcast %cst_181 : f32 to vector<2x11xf32>
    %cst_182 = arith.constant 0.000000e+00 : f32
    %470 = vector.broadcast %cst_182 : f32 to vector<2x68xf32>
    %cst_183 = arith.constant 0.000000e+00 : f32
    %471 = vector.broadcast %cst_183 : f32 to vector<8x68xf32>
    %472 = vector.extract_strided_slice %467 {offsets = [0, 0], sizes = [1, 51], strides = [1, 1]} : vector<8x51xf32> to vector<1x51xf32>
    %473 = vector.shape_cast %472 : vector<1x51xf32> to vector<1x51xf32>
    %474 = vector.broadcast %473 : vector<1x51xf32> to vector<2x51xf32>
    %c1_i32_184 = arith.constant 1 : i32
    %475 = vector.broadcast %c1_i32_184 : i32 to vector<2x51xi32>
    %476 = arith.cmpi eq, %27, %475 : vector<2x51xi32>
    %477 = vector.extract_strided_slice %467 {offsets = [4, 0], sizes = [1, 51], strides = [1, 1]} : vector<8x51xf32> to vector<1x51xf32>
    %478 = vector.shape_cast %477 : vector<1x51xf32> to vector<1x51xf32>
    %479 = vector.broadcast %478 : vector<1x51xf32> to vector<2x51xf32>
    %480 = arith.select %476, %479, %474 : vector<2x51xi1>, vector<2x51xf32>
    %c1_185 = arith.constant 1 : index
    %c0_186 = arith.constant 0 : index
    %c0_187 = arith.constant 0 : index
    %481 = vector.load %arg7[%c1_185, %c0_186, %c0_187] : memref<2x17x51xf32, #tpu.memory_space<vmem>>, vector<1x17x51xf32>
    %482 = vector.shape_cast %481 : vector<1x17x51xf32> to vector<17x51xf32>
    %cst_188 = arith.constant dense<0.000000e+00> : vector<2x51xf32>
    %483 = tpu.matmul %468, %482, %cst_188 {dimension_numbers = #tpu.dot_dimension_numbers<[1], [0], [0], [1], [0, 0, 1, 1], [], []>} : vector<2x17xf32>, vector<17x51xf32>, vector<2x51xf32> -> vector<2x51xf32>
    %484 = arith.addf %480, %483 : vector<2x51xf32>
    %485 = vector.extract_strided_slice %484 {offsets = [0, 0], sizes = [2, 17], strides = [1, 1]} : vector<2x51xf32> to vector<2x17xf32>
    %486 = math.tanh %485 : vector<2x17xf32>
    %487 = vector.extract_strided_slice %484 {offsets = [0, 17], sizes = [2, 17], strides = [1, 1]} : vector<2x51xf32> to vector<2x17xf32>
    %488 = math.tanh %487 : vector<2x17xf32>
    %489 = vector.extract_strided_slice %484 {offsets = [0, 34], sizes = [2, 17], strides = [1, 1]} : vector<2x51xf32> to vector<2x17xf32>
    %490 = arith.negf %489 : vector<2x17xf32>
    %491 = math.exp %490 : vector<2x17xf32>
    %cst_189 = arith.constant 1.000000e+00 : f32
    %492 = vector.broadcast %cst_189 : f32 to vector<2x17xf32>
    %493 = arith.addf %492, %491 : vector<2x17xf32>
    %494 = arith.divf %492, %493 : vector<2x17xf32>
    %cst_190 = arith.constant 1.000000e+00 : f32
    %495 = vector.broadcast %cst_190 : f32 to vector<2x17xf32>
    %496 = arith.subf %495, %494 : vector<2x17xf32>
    %497 = arith.mulf %486, %496 : vector<2x17xf32>
    %498 = arith.mulf %494, %488 : vector<2x17xf32>
    %499 = arith.addf %497, %498 : vector<2x17xf32>
    %c1_191 = arith.constant 1 : index
    %c0_192 = arith.constant 0 : index
    %c0_193 = arith.constant 0 : index
    %500 = vector.load %arg9[%c1_191, %c0_192, %c0_193] : memref<2x17x33xf32, #tpu.memory_space<vmem>>, vector<1x17x33xf32>
    %501 = vector.shape_cast %500 : vector<1x17x33xf32> to vector<17x33xf32>
    %cst_194 = arith.constant dense<0.000000e+00> : vector<2x33xf32>
    %502 = tpu.matmul %499, %501, %cst_194 {dimension_numbers = #tpu.dot_dimension_numbers<[1], [0], [0], [1], [0, 0, 1, 1], [], []>} : vector<2x17xf32>, vector<17x33xf32>, vector<2x33xf32> -> vector<2x33xf32>
    %c1_195 = arith.constant 1 : index
    %c0_196 = arith.constant 0 : index
    %c0_197 = arith.constant 0 : index
    %503 = vector.load %arg10[%c1_195, %c0_196, %c0_197] : memref<2x11x33xf32, #tpu.memory_space<vmem>>, vector<1x11x33xf32>
    %504 = vector.shape_cast %503 : vector<1x11x33xf32> to vector<11x33xf32>
    %cst_198 = arith.constant dense<0.000000e+00> : vector<2x33xf32>
    %505 = tpu.matmul %469, %504, %cst_198 {dimension_numbers = #tpu.dot_dimension_numbers<[1], [0], [0], [1], [0, 0, 1, 1], [], []>} : vector<2x11xf32>, vector<11x33xf32>, vector<2x33xf32> -> vector<2x33xf32>
    %506 = arith.addf %502, %505 : vector<2x33xf32>
    %c1_199 = arith.constant 1 : index
    %c0_200 = arith.constant 0 : index
    %c0_201 = arith.constant 0 : index
    %507 = vector.load %arg11[%c1_199, %c0_200, %c0_201] : memref<2x1x33xf32, #tpu.memory_space<vmem>>, vector<1x1x33xf32>
    %508 = vector.shape_cast %507 : vector<1x1x33xf32> to vector<1x33xf32>
    %509 = vector.broadcast %508 : vector<1x33xf32> to vector<2x33xf32>
    %510 = arith.addf %506, %509 : vector<2x33xf32>
    %511 = vector.extract_strided_slice %510 {offsets = [0, 0], sizes = [2, 11], strides = [1, 1]} : vector<2x33xf32> to vector<2x11xf32>
    %512 = math.tanh %511 : vector<2x11xf32>
    %513 = vector.extract_strided_slice %510 {offsets = [0, 11], sizes = [2, 11], strides = [1, 1]} : vector<2x33xf32> to vector<2x11xf32>
    %514 = math.tanh %513 : vector<2x11xf32>
    %515 = vector.extract_strided_slice %510 {offsets = [0, 22], sizes = [2, 11], strides = [1, 1]} : vector<2x33xf32> to vector<2x11xf32>
    %516 = arith.negf %515 : vector<2x11xf32>
    %517 = math.exp %516 : vector<2x11xf32>
    %cst_202 = arith.constant 1.000000e+00 : f32
    %518 = vector.broadcast %cst_202 : f32 to vector<2x11xf32>
    %519 = arith.addf %518, %517 : vector<2x11xf32>
    %520 = arith.divf %518, %519 : vector<2x11xf32>
    %cst_203 = arith.constant 1.000000e+00 : f32
    %521 = vector.broadcast %cst_203 : f32 to vector<2x11xf32>
    %522 = arith.subf %521, %520 : vector<2x11xf32>
    %523 = arith.mulf %512, %522 : vector<2x11xf32>
    %524 = arith.mulf %520, %514 : vector<2x11xf32>
    %525 = arith.addf %523, %524 : vector<2x11xf32>
    %c1_204 = arith.constant 1 : index
    %c0_205 = arith.constant 0 : index
    %c0_206 = arith.constant 0 : index
    %526 = vector.load %arg12[%c1_204, %c0_205, %c0_206] : memref<2x11x204xf32, #tpu.memory_space<vmem>>, vector<1x11x204xf32>
    %527 = vector.shape_cast %526 : vector<1x11x204xf32> to vector<11x204xf32>
    %cst_207 = arith.constant dense<0.000000e+00> : vector<2x204xf32>
    %528 = tpu.matmul %525, %527, %cst_207 {dimension_numbers = #tpu.dot_dimension_numbers<[1], [0], [0], [1], [0, 0, 1, 1], [], []>} : vector<2x11xf32>, vector<11x204xf32>, vector<2x204xf32> -> vector<2x204xf32>
    %c1_208 = arith.constant 1 : index
    %c0_209 = arith.constant 0 : index
    %c0_210 = arith.constant 0 : index
    %529 = vector.load %arg13[%c1_208, %c0_209, %c0_210] : memref<2x68x204xf32, #tpu.memory_space<vmem>>, vector<1x68x204xf32>
    %530 = vector.shape_cast %529 : vector<1x68x204xf32> to vector<68x204xf32>
    %cst_211 = arith.constant dense<0.000000e+00> : vector<2x204xf32>
    %531 = tpu.matmul %470, %530, %cst_211 {dimension_numbers = #tpu.dot_dimension_numbers<[1], [0], [0], [1], [0, 0, 1, 1], [], []>} : vector<2x68xf32>, vector<68x204xf32>, vector<2x204xf32> -> vector<2x204xf32>
    %532 = arith.addf %528, %531 : vector<2x204xf32>
    %c1_212 = arith.constant 1 : index
    %c0_213 = arith.constant 0 : index
    %c0_214 = arith.constant 0 : index
    %533 = vector.load %arg14[%c1_212, %c0_213, %c0_214] : memref<2x1x204xf32, #tpu.memory_space<vmem>>, vector<1x1x204xf32>
    %534 = vector.shape_cast %533 : vector<1x1x204xf32> to vector<1x204xf32>
    %535 = vector.broadcast %534 : vector<1x204xf32> to vector<2x204xf32>
    %536 = arith.addf %532, %535 : vector<2x204xf32>
    %537 = vector.extract_strided_slice %536 {offsets = [0, 0], sizes = [2, 68], strides = [1, 1]} : vector<2x204xf32> to vector<2x68xf32>
    %538 = math.tanh %537 : vector<2x68xf32>
    %539 = vector.extract_strided_slice %536 {offsets = [0, 68], sizes = [2, 68], strides = [1, 1]} : vector<2x204xf32> to vector<2x68xf32>
    %540 = math.tanh %539 : vector<2x68xf32>
    %541 = vector.extract_strided_slice %536 {offsets = [0, 136], sizes = [2, 68], strides = [1, 1]} : vector<2x204xf32> to vector<2x68xf32>
    %542 = arith.negf %541 : vector<2x68xf32>
    %543 = math.exp %542 : vector<2x68xf32>
    %cst_215 = arith.constant 1.000000e+00 : f32
    %544 = vector.broadcast %cst_215 : f32 to vector<2x68xf32>
    %545 = arith.addf %544, %543 : vector<2x68xf32>
    %546 = arith.divf %544, %545 : vector<2x68xf32>
    %cst_216 = arith.constant 1.000000e+00 : f32
    %547 = vector.broadcast %cst_216 : f32 to vector<2x68xf32>
    %548 = arith.subf %547, %546 : vector<2x68xf32>
    %549 = arith.mulf %538, %548 : vector<2x68xf32>
    %550 = arith.mulf %546, %540 : vector<2x68xf32>
    %551 = arith.addf %549, %550 : vector<2x68xf32>
    %c0_i32_217 = arith.constant 0 : i32
    %552 = vector.broadcast %c0_i32_217 : i32 to vector<8x68xi32>
    %553 = arith.cmpi eq, %26, %552 : vector<8x68xi32>
    %554 = vector.extract_strided_slice %551 {offsets = [0, 0], sizes = [1, 68], strides = [1, 1]} : vector<2x68xf32> to vector<1x68xf32>
    %555 = vector.shape_cast %554 : vector<1x68xf32> to vector<1x68xf32>
    %556 = vector.broadcast %555 : vector<1x68xf32> to vector<8x68xf32>
    %557 = arith.select %553, %556, %471 : vector<8x68xi1>, vector<8x68xf32>
    %c4_i32_218 = arith.constant 4 : i32
    %558 = vector.broadcast %c4_i32_218 : i32 to vector<8x68xi32>
    %559 = arith.cmpi eq, %26, %558 : vector<8x68xi32>
    %560 = vector.extract_strided_slice %551 {offsets = [1, 0], sizes = [1, 68], strides = [1, 1]} : vector<2x68xf32> to vector<1x68xf32>
    %561 = vector.shape_cast %560 : vector<1x68xf32> to vector<1x68xf32>
    %562 = vector.broadcast %561 : vector<1x68xf32> to vector<8x68xf32>
    %563 = arith.select %559, %562, %557 : vector<8x68xi1>, vector<8x68xf32>
    %564 = vector.extract_strided_slice %467 {offsets = [1, 0], sizes = [1, 51], strides = [1, 1]} : vector<8x51xf32> to vector<1x51xf32>
    %565 = vector.shape_cast %564 : vector<1x51xf32> to vector<1x51xf32>
    %566 = vector.broadcast %565 : vector<1x51xf32> to vector<2x51xf32>
    %c1_i32_219 = arith.constant 1 : i32
    %567 = vector.broadcast %c1_i32_219 : i32 to vector<2x51xi32>
    %568 = arith.cmpi eq, %27, %567 : vector<2x51xi32>
    %569 = vector.extract_strided_slice %467 {offsets = [5, 0], sizes = [1, 51], strides = [1, 1]} : vector<8x51xf32> to vector<1x51xf32>
    %570 = vector.shape_cast %569 : vector<1x51xf32> to vector<1x51xf32>
    %571 = vector.broadcast %570 : vector<1x51xf32> to vector<2x51xf32>
    %572 = arith.select %568, %571, %566 : vector<2x51xi1>, vector<2x51xf32>
    %c1_220 = arith.constant 1 : index
    %c0_221 = arith.constant 0 : index
    %c0_222 = arith.constant 0 : index
    %573 = vector.load %arg7[%c1_220, %c0_221, %c0_222] : memref<2x17x51xf32, #tpu.memory_space<vmem>>, vector<1x17x51xf32>
    %574 = vector.shape_cast %573 : vector<1x17x51xf32> to vector<17x51xf32>
    %cst_223 = arith.constant dense<0.000000e+00> : vector<2x51xf32>
    %575 = tpu.matmul %499, %574, %cst_223 {dimension_numbers = #tpu.dot_dimension_numbers<[1], [0], [0], [1], [0, 0, 1, 1], [], []>} : vector<2x17xf32>, vector<17x51xf32>, vector<2x51xf32> -> vector<2x51xf32>
    %576 = arith.addf %572, %575 : vector<2x51xf32>
    %577 = vector.extract_strided_slice %576 {offsets = [0, 0], sizes = [2, 17], strides = [1, 1]} : vector<2x51xf32> to vector<2x17xf32>
    %578 = math.tanh %577 : vector<2x17xf32>
    %579 = vector.extract_strided_slice %576 {offsets = [0, 17], sizes = [2, 17], strides = [1, 1]} : vector<2x51xf32> to vector<2x17xf32>
    %580 = math.tanh %579 : vector<2x17xf32>
    %581 = vector.extract_strided_slice %576 {offsets = [0, 34], sizes = [2, 17], strides = [1, 1]} : vector<2x51xf32> to vector<2x17xf32>
    %582 = arith.negf %581 : vector<2x17xf32>
    %583 = math.exp %582 : vector<2x17xf32>
    %cst_224 = arith.constant 1.000000e+00 : f32
    %584 = vector.broadcast %cst_224 : f32 to vector<2x17xf32>
    %585 = arith.addf %584, %583 : vector<2x17xf32>
    %586 = arith.divf %584, %585 : vector<2x17xf32>
    %cst_225 = arith.constant 1.000000e+00 : f32
    %587 = vector.broadcast %cst_225 : f32 to vector<2x17xf32>
    %588 = arith.subf %587, %586 : vector<2x17xf32>
    %589 = arith.mulf %578, %588 : vector<2x17xf32>
    %590 = arith.mulf %586, %580 : vector<2x17xf32>
    %591 = arith.addf %589, %590 : vector<2x17xf32>
    %c1_226 = arith.constant 1 : index
    %c0_227 = arith.constant 0 : index
    %c0_228 = arith.constant 0 : index
    %592 = vector.load %arg9[%c1_226, %c0_227, %c0_228] : memref<2x17x33xf32, #tpu.memory_space<vmem>>, vector<1x17x33xf32>
    %593 = vector.shape_cast %592 : vector<1x17x33xf32> to vector<17x33xf32>
    %cst_229 = arith.constant dense<0.000000e+00> : vector<2x33xf32>
    %594 = tpu.matmul %591, %593, %cst_229 {dimension_numbers = #tpu.dot_dimension_numbers<[1], [0], [0], [1], [0, 0, 1, 1], [], []>} : vector<2x17xf32>, vector<17x33xf32>, vector<2x33xf32> -> vector<2x33xf32>
    %c1_230 = arith.constant 1 : index
    %c0_231 = arith.constant 0 : index
    %c0_232 = arith.constant 0 : index
    %595 = vector.load %arg10[%c1_230, %c0_231, %c0_232] : memref<2x11x33xf32, #tpu.memory_space<vmem>>, vector<1x11x33xf32>
    %596 = vector.shape_cast %595 : vector<1x11x33xf32> to vector<11x33xf32>
    %cst_233 = arith.constant dense<0.000000e+00> : vector<2x33xf32>
    %597 = tpu.matmul %525, %596, %cst_233 {dimension_numbers = #tpu.dot_dimension_numbers<[1], [0], [0], [1], [0, 0, 1, 1], [], []>} : vector<2x11xf32>, vector<11x33xf32>, vector<2x33xf32> -> vector<2x33xf32>
    %598 = arith.addf %594, %597 : vector<2x33xf32>
    %c1_234 = arith.constant 1 : index
    %c0_235 = arith.constant 0 : index
    %c0_236 = arith.constant 0 : index
    %599 = vector.load %arg11[%c1_234, %c0_235, %c0_236] : memref<2x1x33xf32, #tpu.memory_space<vmem>>, vector<1x1x33xf32>
    %600 = vector.shape_cast %599 : vector<1x1x33xf32> to vector<1x33xf32>
    %601 = vector.broadcast %600 : vector<1x33xf32> to vector<2x33xf32>
    %602 = arith.addf %598, %601 : vector<2x33xf32>
    %603 = vector.extract_strided_slice %602 {offsets = [0, 0], sizes = [2, 11], strides = [1, 1]} : vector<2x33xf32> to vector<2x11xf32>
    %604 = math.tanh %603 : vector<2x11xf32>
    %605 = vector.extract_strided_slice %602 {offsets = [0, 11], sizes = [2, 11], strides = [1, 1]} : vector<2x33xf32> to vector<2x11xf32>
    %606 = math.tanh %605 : vector<2x11xf32>
    %607 = vector.extract_strided_slice %602 {offsets = [0, 22], sizes = [2, 11], strides = [1, 1]} : vector<2x33xf32> to vector<2x11xf32>
    %608 = arith.negf %607 : vector<2x11xf32>
    %609 = math.exp %608 : vector<2x11xf32>
    %cst_237 = arith.constant 1.000000e+00 : f32
    %610 = vector.broadcast %cst_237 : f32 to vector<2x11xf32>
    %611 = arith.addf %610, %609 : vector<2x11xf32>
    %612 = arith.divf %610, %611 : vector<2x11xf32>
    %cst_238 = arith.constant 1.000000e+00 : f32
    %613 = vector.broadcast %cst_238 : f32 to vector<2x11xf32>
    %614 = arith.subf %613, %612 : vector<2x11xf32>
    %615 = arith.mulf %604, %614 : vector<2x11xf32>
    %616 = arith.mulf %612, %606 : vector<2x11xf32>
    %617 = arith.addf %615, %616 : vector<2x11xf32>
    %c1_239 = arith.constant 1 : index
    %c0_240 = arith.constant 0 : index
    %c0_241 = arith.constant 0 : index
    %618 = vector.load %arg12[%c1_239, %c0_240, %c0_241] : memref<2x11x204xf32, #tpu.memory_space<vmem>>, vector<1x11x204xf32>
    %619 = vector.shape_cast %618 : vector<1x11x204xf32> to vector<11x204xf32>
    %cst_242 = arith.constant dense<0.000000e+00> : vector<2x204xf32>
    %620 = tpu.matmul %617, %619, %cst_242 {dimension_numbers = #tpu.dot_dimension_numbers<[1], [0], [0], [1], [0, 0, 1, 1], [], []>} : vector<2x11xf32>, vector<11x204xf32>, vector<2x204xf32> -> vector<2x204xf32>
    %c1_243 = arith.constant 1 : index
    %c0_244 = arith.constant 0 : index
    %c0_245 = arith.constant 0 : index
    %621 = vector.load %arg13[%c1_243, %c0_244, %c0_245] : memref<2x68x204xf32, #tpu.memory_space<vmem>>, vector<1x68x204xf32>
    %622 = vector.shape_cast %621 : vector<1x68x204xf32> to vector<68x204xf32>
    %cst_246 = arith.constant dense<0.000000e+00> : vector<2x204xf32>
    %623 = tpu.matmul %551, %622, %cst_246 {dimension_numbers = #tpu.dot_dimension_numbers<[1], [0], [0], [1], [0, 0, 1, 1], [], []>} : vector<2x68xf32>, vector<68x204xf32>, vector<2x204xf32> -> vector<2x204xf32>
    %624 = arith.addf %620, %623 : vector<2x204xf32>
    %c1_247 = arith.constant 1 : index
    %c0_248 = arith.constant 0 : index
    %c0_249 = arith.constant 0 : index
    %625 = vector.load %arg14[%c1_247, %c0_248, %c0_249] : memref<2x1x204xf32, #tpu.memory_space<vmem>>, vector<1x1x204xf32>
    %626 = vector.shape_cast %625 : vector<1x1x204xf32> to vector<1x204xf32>
    %627 = vector.broadcast %626 : vector<1x204xf32> to vector<2x204xf32>
    %628 = arith.addf %624, %627 : vector<2x204xf32>
    %629 = vector.extract_strided_slice %628 {offsets = [0, 0], sizes = [2, 68], strides = [1, 1]} : vector<2x204xf32> to vector<2x68xf32>
    %630 = math.tanh %629 : vector<2x68xf32>
    %631 = vector.extract_strided_slice %628 {offsets = [0, 68], sizes = [2, 68], strides = [1, 1]} : vector<2x204xf32> to vector<2x68xf32>
    %632 = math.tanh %631 : vector<2x68xf32>
    %633 = vector.extract_strided_slice %628 {offsets = [0, 136], sizes = [2, 68], strides = [1, 1]} : vector<2x204xf32> to vector<2x68xf32>
    %634 = arith.negf %633 : vector<2x68xf32>
    %635 = math.exp %634 : vector<2x68xf32>
    %cst_250 = arith.constant 1.000000e+00 : f32
    %636 = vector.broadcast %cst_250 : f32 to vector<2x68xf32>
    %637 = arith.addf %636, %635 : vector<2x68xf32>
    %638 = arith.divf %636, %637 : vector<2x68xf32>
    %cst_251 = arith.constant 1.000000e+00 : f32
    %639 = vector.broadcast %cst_251 : f32 to vector<2x68xf32>
    %640 = arith.subf %639, %638 : vector<2x68xf32>
    %641 = arith.mulf %630, %640 : vector<2x68xf32>
    %642 = arith.mulf %638, %632 : vector<2x68xf32>
    %643 = arith.addf %641, %642 : vector<2x68xf32>
    %c1_i32_252 = arith.constant 1 : i32
    %644 = vector.broadcast %c1_i32_252 : i32 to vector<8x68xi32>
    %645 = arith.cmpi eq, %26, %644 : vector<8x68xi32>
    %646 = vector.extract_strided_slice %643 {offsets = [0, 0], sizes = [1, 68], strides = [1, 1]} : vector<2x68xf32> to vector<1x68xf32>
    %647 = vector.shape_cast %646 : vector<1x68xf32> to vector<1x68xf32>
    %648 = vector.broadcast %647 : vector<1x68xf32> to vector<8x68xf32>
    %649 = arith.select %645, %648, %563 : vector<8x68xi1>, vector<8x68xf32>
    %c5_i32_253 = arith.constant 5 : i32
    %650 = vector.broadcast %c5_i32_253 : i32 to vector<8x68xi32>
    %651 = arith.cmpi eq, %26, %650 : vector<8x68xi32>
    %652 = vector.extract_strided_slice %643 {offsets = [1, 0], sizes = [1, 68], strides = [1, 1]} : vector<2x68xf32> to vector<1x68xf32>
    %653 = vector.shape_cast %652 : vector<1x68xf32> to vector<1x68xf32>
    %654 = vector.broadcast %653 : vector<1x68xf32> to vector<8x68xf32>
    %655 = arith.select %651, %654, %649 : vector<8x68xi1>, vector<8x68xf32>
    %656 = vector.extract_strided_slice %467 {offsets = [2, 0], sizes = [1, 51], strides = [1, 1]} : vector<8x51xf32> to vector<1x51xf32>
    %657 = vector.shape_cast %656 : vector<1x51xf32> to vector<1x51xf32>
    %658 = vector.broadcast %657 : vector<1x51xf32> to vector<2x51xf32>
    %c1_i32_254 = arith.constant 1 : i32
    %659 = vector.broadcast %c1_i32_254 : i32 to vector<2x51xi32>
    %660 = arith.cmpi eq, %27, %659 : vector<2x51xi32>
    %661 = vector.extract_strided_slice %467 {offsets = [6, 0], sizes = [1, 51], strides = [1, 1]} : vector<8x51xf32> to vector<1x51xf32>
    %662 = vector.shape_cast %661 : vector<1x51xf32> to vector<1x51xf32>
    %663 = vector.broadcast %662 : vector<1x51xf32> to vector<2x51xf32>
    %664 = arith.select %660, %663, %658 : vector<2x51xi1>, vector<2x51xf32>
    %c1_255 = arith.constant 1 : index
    %c0_256 = arith.constant 0 : index
    %c0_257 = arith.constant 0 : index
    %665 = vector.load %arg7[%c1_255, %c0_256, %c0_257] : memref<2x17x51xf32, #tpu.memory_space<vmem>>, vector<1x17x51xf32>
    %666 = vector.shape_cast %665 : vector<1x17x51xf32> to vector<17x51xf32>
    %cst_258 = arith.constant dense<0.000000e+00> : vector<2x51xf32>
    %667 = tpu.matmul %591, %666, %cst_258 {dimension_numbers = #tpu.dot_dimension_numbers<[1], [0], [0], [1], [0, 0, 1, 1], [], []>} : vector<2x17xf32>, vector<17x51xf32>, vector<2x51xf32> -> vector<2x51xf32>
    %668 = arith.addf %664, %667 : vector<2x51xf32>
    %669 = vector.extract_strided_slice %668 {offsets = [0, 0], sizes = [2, 17], strides = [1, 1]} : vector<2x51xf32> to vector<2x17xf32>
    %670 = math.tanh %669 : vector<2x17xf32>
    %671 = vector.extract_strided_slice %668 {offsets = [0, 17], sizes = [2, 17], strides = [1, 1]} : vector<2x51xf32> to vector<2x17xf32>
    %672 = math.tanh %671 : vector<2x17xf32>
    %673 = vector.extract_strided_slice %668 {offsets = [0, 34], sizes = [2, 17], strides = [1, 1]} : vector<2x51xf32> to vector<2x17xf32>
    %674 = arith.negf %673 : vector<2x17xf32>
    %675 = math.exp %674 : vector<2x17xf32>
    %cst_259 = arith.constant 1.000000e+00 : f32
    %676 = vector.broadcast %cst_259 : f32 to vector<2x17xf32>
    %677 = arith.addf %676, %675 : vector<2x17xf32>
    %678 = arith.divf %676, %677 : vector<2x17xf32>
    %cst_260 = arith.constant 1.000000e+00 : f32
    %679 = vector.broadcast %cst_260 : f32 to vector<2x17xf32>
    %680 = arith.subf %679, %678 : vector<2x17xf32>
    %681 = arith.mulf %670, %680 : vector<2x17xf32>
    %682 = arith.mulf %678, %672 : vector<2x17xf32>
    %683 = arith.addf %681, %682 : vector<2x17xf32>
    %c1_261 = arith.constant 1 : index
    %c0_262 = arith.constant 0 : index
    %c0_263 = arith.constant 0 : index
    %684 = vector.load %arg9[%c1_261, %c0_262, %c0_263] : memref<2x17x33xf32, #tpu.memory_space<vmem>>, vector<1x17x33xf32>
    %685 = vector.shape_cast %684 : vector<1x17x33xf32> to vector<17x33xf32>
    %cst_264 = arith.constant dense<0.000000e+00> : vector<2x33xf32>
    %686 = tpu.matmul %683, %685, %cst_264 {dimension_numbers = #tpu.dot_dimension_numbers<[1], [0], [0], [1], [0, 0, 1, 1], [], []>} : vector<2x17xf32>, vector<17x33xf32>, vector<2x33xf32> -> vector<2x33xf32>
    %c1_265 = arith.constant 1 : index
    %c0_266 = arith.constant 0 : index
    %c0_267 = arith.constant 0 : index
    %687 = vector.load %arg10[%c1_265, %c0_266, %c0_267] : memref<2x11x33xf32, #tpu.memory_space<vmem>>, vector<1x11x33xf32>
    %688 = vector.shape_cast %687 : vector<1x11x33xf32> to vector<11x33xf32>
    %cst_268 = arith.constant dense<0.000000e+00> : vector<2x33xf32>
    %689 = tpu.matmul %617, %688, %cst_268 {dimension_numbers = #tpu.dot_dimension_numbers<[1], [0], [0], [1], [0, 0, 1, 1], [], []>} : vector<2x11xf32>, vector<11x33xf32>, vector<2x33xf32> -> vector<2x33xf32>
    %690 = arith.addf %686, %689 : vector<2x33xf32>
    %c1_269 = arith.constant 1 : index
    %c0_270 = arith.constant 0 : index
    %c0_271 = arith.constant 0 : index
    %691 = vector.load %arg11[%c1_269, %c0_270, %c0_271] : memref<2x1x33xf32, #tpu.memory_space<vmem>>, vector<1x1x33xf32>
    %692 = vector.shape_cast %691 : vector<1x1x33xf32> to vector<1x33xf32>
    %693 = vector.broadcast %692 : vector<1x33xf32> to vector<2x33xf32>
    %694 = arith.addf %690, %693 : vector<2x33xf32>
    %695 = vector.extract_strided_slice %694 {offsets = [0, 0], sizes = [2, 11], strides = [1, 1]} : vector<2x33xf32> to vector<2x11xf32>
    %696 = math.tanh %695 : vector<2x11xf32>
    %697 = vector.extract_strided_slice %694 {offsets = [0, 11], sizes = [2, 11], strides = [1, 1]} : vector<2x33xf32> to vector<2x11xf32>
    %698 = math.tanh %697 : vector<2x11xf32>
    %699 = vector.extract_strided_slice %694 {offsets = [0, 22], sizes = [2, 11], strides = [1, 1]} : vector<2x33xf32> to vector<2x11xf32>
    %700 = arith.negf %699 : vector<2x11xf32>
    %701 = math.exp %700 : vector<2x11xf32>
    %cst_272 = arith.constant 1.000000e+00 : f32
    %702 = vector.broadcast %cst_272 : f32 to vector<2x11xf32>
    %703 = arith.addf %702, %701 : vector<2x11xf32>
    %704 = arith.divf %702, %703 : vector<2x11xf32>
    %cst_273 = arith.constant 1.000000e+00 : f32
    %705 = vector.broadcast %cst_273 : f32 to vector<2x11xf32>
    %706 = arith.subf %705, %704 : vector<2x11xf32>
    %707 = arith.mulf %696, %706 : vector<2x11xf32>
    %708 = arith.mulf %704, %698 : vector<2x11xf32>
    %709 = arith.addf %707, %708 : vector<2x11xf32>
    %c1_274 = arith.constant 1 : index
    %c0_275 = arith.constant 0 : index
    %c0_276 = arith.constant 0 : index
    %710 = vector.load %arg12[%c1_274, %c0_275, %c0_276] : memref<2x11x204xf32, #tpu.memory_space<vmem>>, vector<1x11x204xf32>
    %711 = vector.shape_cast %710 : vector<1x11x204xf32> to vector<11x204xf32>
    %cst_277 = arith.constant dense<0.000000e+00> : vector<2x204xf32>
    %712 = tpu.matmul %709, %711, %cst_277 {dimension_numbers = #tpu.dot_dimension_numbers<[1], [0], [0], [1], [0, 0, 1, 1], [], []>} : vector<2x11xf32>, vector<11x204xf32>, vector<2x204xf32> -> vector<2x204xf32>
    %c1_278 = arith.constant 1 : index
    %c0_279 = arith.constant 0 : index
    %c0_280 = arith.constant 0 : index
    %713 = vector.load %arg13[%c1_278, %c0_279, %c0_280] : memref<2x68x204xf32, #tpu.memory_space<vmem>>, vector<1x68x204xf32>
    %714 = vector.shape_cast %713 : vector<1x68x204xf32> to vector<68x204xf32>
    %cst_281 = arith.constant dense<0.000000e+00> : vector<2x204xf32>
    %715 = tpu.matmul %643, %714, %cst_281 {dimension_numbers = #tpu.dot_dimension_numbers<[1], [0], [0], [1], [0, 0, 1, 1], [], []>} : vector<2x68xf32>, vector<68x204xf32>, vector<2x204xf32> -> vector<2x204xf32>
    %716 = arith.addf %712, %715 : vector<2x204xf32>
    %c1_282 = arith.constant 1 : index
    %c0_283 = arith.constant 0 : index
    %c0_284 = arith.constant 0 : index
    %717 = vector.load %arg14[%c1_282, %c0_283, %c0_284] : memref<2x1x204xf32, #tpu.memory_space<vmem>>, vector<1x1x204xf32>
    %718 = vector.shape_cast %717 : vector<1x1x204xf32> to vector<1x204xf32>
    %719 = vector.broadcast %718 : vector<1x204xf32> to vector<2x204xf32>
    %720 = arith.addf %716, %719 : vector<2x204xf32>
    %721 = vector.extract_strided_slice %720 {offsets = [0, 0], sizes = [2, 68], strides = [1, 1]} : vector<2x204xf32> to vector<2x68xf32>
    %722 = math.tanh %721 : vector<2x68xf32>
    %723 = vector.extract_strided_slice %720 {offsets = [0, 68], sizes = [2, 68], strides = [1, 1]} : vector<2x204xf32> to vector<2x68xf32>
    %724 = math.tanh %723 : vector<2x68xf32>
    %725 = vector.extract_strided_slice %720 {offsets = [0, 136], sizes = [2, 68], strides = [1, 1]} : vector<2x204xf32> to vector<2x68xf32>
    %726 = arith.negf %725 : vector<2x68xf32>
    %727 = math.exp %726 : vector<2x68xf32>
    %cst_285 = arith.constant 1.000000e+00 : f32
    %728 = vector.broadcast %cst_285 : f32 to vector<2x68xf32>
    %729 = arith.addf %728, %727 : vector<2x68xf32>
    %730 = arith.divf %728, %729 : vector<2x68xf32>
    %cst_286 = arith.constant 1.000000e+00 : f32
    %731 = vector.broadcast %cst_286 : f32 to vector<2x68xf32>
    %732 = arith.subf %731, %730 : vector<2x68xf32>
    %733 = arith.mulf %722, %732 : vector<2x68xf32>
    %734 = arith.mulf %730, %724 : vector<2x68xf32>
    %735 = arith.addf %733, %734 : vector<2x68xf32>
    %c2_i32_287 = arith.constant 2 : i32
    %736 = vector.broadcast %c2_i32_287 : i32 to vector<8x68xi32>
    %737 = arith.cmpi eq, %26, %736 : vector<8x68xi32>
    %738 = vector.extract_strided_slice %735 {offsets = [0, 0], sizes = [1, 68], strides = [1, 1]} : vector<2x68xf32> to vector<1x68xf32>
    %739 = vector.shape_cast %738 : vector<1x68xf32> to vector<1x68xf32>
    %740 = vector.broadcast %739 : vector<1x68xf32> to vector<8x68xf32>
    %741 = arith.select %737, %740, %655 : vector<8x68xi1>, vector<8x68xf32>
    %c6_i32_288 = arith.constant 6 : i32
    %742 = vector.broadcast %c6_i32_288 : i32 to vector<8x68xi32>
    %743 = arith.cmpi eq, %26, %742 : vector<8x68xi32>
    %744 = vector.extract_strided_slice %735 {offsets = [1, 0], sizes = [1, 68], strides = [1, 1]} : vector<2x68xf32> to vector<1x68xf32>
    %745 = vector.shape_cast %744 : vector<1x68xf32> to vector<1x68xf32>
    %746 = vector.broadcast %745 : vector<1x68xf32> to vector<8x68xf32>
    %747 = arith.select %743, %746, %741 : vector<8x68xi1>, vector<8x68xf32>
    %748 = vector.extract_strided_slice %467 {offsets = [3, 0], sizes = [1, 51], strides = [1, 1]} : vector<8x51xf32> to vector<1x51xf32>
    %749 = vector.shape_cast %748 : vector<1x51xf32> to vector<1x51xf32>
    %750 = vector.broadcast %749 : vector<1x51xf32> to vector<2x51xf32>
    %c1_i32_289 = arith.constant 1 : i32
    %751 = vector.broadcast %c1_i32_289 : i32 to vector<2x51xi32>
    %752 = arith.cmpi eq, %27, %751 : vector<2x51xi32>
    %753 = vector.extract_strided_slice %467 {offsets = [7, 0], sizes = [1, 51], strides = [1, 1]} : vector<8x51xf32> to vector<1x51xf32>
    %754 = vector.shape_cast %753 : vector<1x51xf32> to vector<1x51xf32>
    %755 = vector.broadcast %754 : vector<1x51xf32> to vector<2x51xf32>
    %756 = arith.select %752, %755, %750 : vector<2x51xi1>, vector<2x51xf32>
    %c1_290 = arith.constant 1 : index
    %c0_291 = arith.constant 0 : index
    %c0_292 = arith.constant 0 : index
    %757 = vector.load %arg7[%c1_290, %c0_291, %c0_292] : memref<2x17x51xf32, #tpu.memory_space<vmem>>, vector<1x17x51xf32>
    %758 = vector.shape_cast %757 : vector<1x17x51xf32> to vector<17x51xf32>
    %cst_293 = arith.constant dense<0.000000e+00> : vector<2x51xf32>
    %759 = tpu.matmul %683, %758, %cst_293 {dimension_numbers = #tpu.dot_dimension_numbers<[1], [0], [0], [1], [0, 0, 1, 1], [], []>} : vector<2x17xf32>, vector<17x51xf32>, vector<2x51xf32> -> vector<2x51xf32>
    %760 = arith.addf %756, %759 : vector<2x51xf32>
    %761 = vector.extract_strided_slice %760 {offsets = [0, 0], sizes = [2, 17], strides = [1, 1]} : vector<2x51xf32> to vector<2x17xf32>
    %762 = math.tanh %761 : vector<2x17xf32>
    %763 = vector.extract_strided_slice %760 {offsets = [0, 17], sizes = [2, 17], strides = [1, 1]} : vector<2x51xf32> to vector<2x17xf32>
    %764 = math.tanh %763 : vector<2x17xf32>
    %765 = vector.extract_strided_slice %760 {offsets = [0, 34], sizes = [2, 17], strides = [1, 1]} : vector<2x51xf32> to vector<2x17xf32>
    %766 = arith.negf %765 : vector<2x17xf32>
    %767 = math.exp %766 : vector<2x17xf32>
    %cst_294 = arith.constant 1.000000e+00 : f32
    %768 = vector.broadcast %cst_294 : f32 to vector<2x17xf32>
    %769 = arith.addf %768, %767 : vector<2x17xf32>
    %770 = arith.divf %768, %769 : vector<2x17xf32>
    %cst_295 = arith.constant 1.000000e+00 : f32
    %771 = vector.broadcast %cst_295 : f32 to vector<2x17xf32>
    %772 = arith.subf %771, %770 : vector<2x17xf32>
    %773 = arith.mulf %762, %772 : vector<2x17xf32>
    %774 = arith.mulf %770, %764 : vector<2x17xf32>
    %775 = arith.addf %773, %774 : vector<2x17xf32>
    %c1_296 = arith.constant 1 : index
    %c0_297 = arith.constant 0 : index
    %c0_298 = arith.constant 0 : index
    %776 = vector.load %arg9[%c1_296, %c0_297, %c0_298] : memref<2x17x33xf32, #tpu.memory_space<vmem>>, vector<1x17x33xf32>
    %777 = vector.shape_cast %776 : vector<1x17x33xf32> to vector<17x33xf32>
    %cst_299 = arith.constant dense<0.000000e+00> : vector<2x33xf32>
    %778 = tpu.matmul %775, %777, %cst_299 {dimension_numbers = #tpu.dot_dimension_numbers<[1], [0], [0], [1], [0, 0, 1, 1], [], []>} : vector<2x17xf32>, vector<17x33xf32>, vector<2x33xf32> -> vector<2x33xf32>
    %c1_300 = arith.constant 1 : index
    %c0_301 = arith.constant 0 : index
    %c0_302 = arith.constant 0 : index
    %779 = vector.load %arg10[%c1_300, %c0_301, %c0_302] : memref<2x11x33xf32, #tpu.memory_space<vmem>>, vector<1x11x33xf32>
    %780 = vector.shape_cast %779 : vector<1x11x33xf32> to vector<11x33xf32>
    %cst_303 = arith.constant dense<0.000000e+00> : vector<2x33xf32>
    %781 = tpu.matmul %709, %780, %cst_303 {dimension_numbers = #tpu.dot_dimension_numbers<[1], [0], [0], [1], [0, 0, 1, 1], [], []>} : vector<2x11xf32>, vector<11x33xf32>, vector<2x33xf32> -> vector<2x33xf32>
    %782 = arith.addf %778, %781 : vector<2x33xf32>
    %c1_304 = arith.constant 1 : index
    %c0_305 = arith.constant 0 : index
    %c0_306 = arith.constant 0 : index
    %783 = vector.load %arg11[%c1_304, %c0_305, %c0_306] : memref<2x1x33xf32, #tpu.memory_space<vmem>>, vector<1x1x33xf32>
    %784 = vector.shape_cast %783 : vector<1x1x33xf32> to vector<1x33xf32>
    %785 = vector.broadcast %784 : vector<1x33xf32> to vector<2x33xf32>
    %786 = arith.addf %782, %785 : vector<2x33xf32>
    %787 = vector.extract_strided_slice %786 {offsets = [0, 0], sizes = [2, 11], strides = [1, 1]} : vector<2x33xf32> to vector<2x11xf32>
    %788 = math.tanh %787 : vector<2x11xf32>
    %789 = vector.extract_strided_slice %786 {offsets = [0, 11], sizes = [2, 11], strides = [1, 1]} : vector<2x33xf32> to vector<2x11xf32>
    %790 = math.tanh %789 : vector<2x11xf32>
    %791 = vector.extract_strided_slice %786 {offsets = [0, 22], sizes = [2, 11], strides = [1, 1]} : vector<2x33xf32> to vector<2x11xf32>
    %792 = arith.negf %791 : vector<2x11xf32>
    %793 = math.exp %792 : vector<2x11xf32>
    %cst_307 = arith.constant 1.000000e+00 : f32
    %794 = vector.broadcast %cst_307 : f32 to vector<2x11xf32>
    %795 = arith.addf %794, %793 : vector<2x11xf32>
    %796 = arith.divf %794, %795 : vector<2x11xf32>
    %cst_308 = arith.constant 1.000000e+00 : f32
    %797 = vector.broadcast %cst_308 : f32 to vector<2x11xf32>
    %798 = arith.subf %797, %796 : vector<2x11xf32>
    %799 = arith.mulf %788, %798 : vector<2x11xf32>
    %800 = arith.mulf %796, %790 : vector<2x11xf32>
    %801 = arith.addf %799, %800 : vector<2x11xf32>
    %c1_309 = arith.constant 1 : index
    %c0_310 = arith.constant 0 : index
    %c0_311 = arith.constant 0 : index
    %802 = vector.load %arg12[%c1_309, %c0_310, %c0_311] : memref<2x11x204xf32, #tpu.memory_space<vmem>>, vector<1x11x204xf32>
    %803 = vector.shape_cast %802 : vector<1x11x204xf32> to vector<11x204xf32>
    %cst_312 = arith.constant dense<0.000000e+00> : vector<2x204xf32>
    %804 = tpu.matmul %801, %803, %cst_312 {dimension_numbers = #tpu.dot_dimension_numbers<[1], [0], [0], [1], [0, 0, 1, 1], [], []>} : vector<2x11xf32>, vector<11x204xf32>, vector<2x204xf32> -> vector<2x204xf32>
    %c1_313 = arith.constant 1 : index
    %c0_314 = arith.constant 0 : index
    %c0_315 = arith.constant 0 : index
    %805 = vector.load %arg13[%c1_313, %c0_314, %c0_315] : memref<2x68x204xf32, #tpu.memory_space<vmem>>, vector<1x68x204xf32>
    %806 = vector.shape_cast %805 : vector<1x68x204xf32> to vector<68x204xf32>
    %cst_316 = arith.constant dense<0.000000e+00> : vector<2x204xf32>
    %807 = tpu.matmul %735, %806, %cst_316 {dimension_numbers = #tpu.dot_dimension_numbers<[1], [0], [0], [1], [0, 0, 1, 1], [], []>} : vector<2x68xf32>, vector<68x204xf32>, vector<2x204xf32> -> vector<2x204xf32>
    %808 = arith.addf %804, %807 : vector<2x204xf32>
    %c1_317 = arith.constant 1 : index
    %c0_318 = arith.constant 0 : index
    %c0_319 = arith.constant 0 : index
    %809 = vector.load %arg14[%c1_317, %c0_318, %c0_319] : memref<2x1x204xf32, #tpu.memory_space<vmem>>, vector<1x1x204xf32>
    %810 = vector.shape_cast %809 : vector<1x1x204xf32> to vector<1x204xf32>
    %811 = vector.broadcast %810 : vector<1x204xf32> to vector<2x204xf32>
    %812 = arith.addf %808, %811 : vector<2x204xf32>
    %813 = vector.extract_strided_slice %812 {offsets = [0, 0], sizes = [2, 68], strides = [1, 1]} : vector<2x204xf32> to vector<2x68xf32>
    %814 = math.tanh %813 : vector<2x68xf32>
    %815 = vector.extract_strided_slice %812 {offsets = [0, 68], sizes = [2, 68], strides = [1, 1]} : vector<2x204xf32> to vector<2x68xf32>
    %816 = math.tanh %815 : vector<2x68xf32>
    %817 = vector.extract_strided_slice %812 {offsets = [0, 136], sizes = [2, 68], strides = [1, 1]} : vector<2x204xf32> to vector<2x68xf32>
    %818 = arith.negf %817 : vector<2x68xf32>
    %819 = math.exp %818 : vector<2x68xf32>
    %cst_320 = arith.constant 1.000000e+00 : f32
    %820 = vector.broadcast %cst_320 : f32 to vector<2x68xf32>
    %821 = arith.addf %820, %819 : vector<2x68xf32>
    %822 = arith.divf %820, %821 : vector<2x68xf32>
    %cst_321 = arith.constant 1.000000e+00 : f32
    %823 = vector.broadcast %cst_321 : f32 to vector<2x68xf32>
    %824 = arith.subf %823, %822 : vector<2x68xf32>
    %825 = arith.mulf %814, %824 : vector<2x68xf32>
    %826 = arith.mulf %822, %816 : vector<2x68xf32>
    %827 = arith.addf %825, %826 : vector<2x68xf32>
    %c3_i32_322 = arith.constant 3 : i32
    %828 = vector.broadcast %c3_i32_322 : i32 to vector<8x68xi32>
    %829 = arith.cmpi eq, %26, %828 : vector<8x68xi32>
    %830 = vector.extract_strided_slice %827 {offsets = [0, 0], sizes = [1, 68], strides = [1, 1]} : vector<2x68xf32> to vector<1x68xf32>
    %831 = vector.shape_cast %830 : vector<1x68xf32> to vector<1x68xf32>
    %832 = vector.broadcast %831 : vector<1x68xf32> to vector<8x68xf32>
    %833 = arith.select %829, %832, %747 : vector<8x68xi1>, vector<8x68xf32>
    %c7_i32_323 = arith.constant 7 : i32
    %834 = vector.broadcast %c7_i32_323 : i32 to vector<8x68xi32>
    %835 = arith.cmpi eq, %26, %834 : vector<8x68xi32>
    %836 = vector.extract_strided_slice %827 {offsets = [1, 0], sizes = [1, 68], strides = [1, 1]} : vector<2x68xf32> to vector<1x68xf32>
    %837 = vector.shape_cast %836 : vector<1x68xf32> to vector<1x68xf32>
    %838 = vector.broadcast %837 : vector<1x68xf32> to vector<8x68xf32>
    %839 = arith.select %835, %838, %833 : vector<8x68xi1>, vector<8x68xf32>
    %840 = tpu.concatenate %775, %801, %827 in 1 : vector<2x17xf32>, vector<2x11xf32>, vector<2x68xf32> -> vector<2x96xf32>
    %c1_324 = arith.constant 1 : index
    %c0_325 = arith.constant 0 : index
    %c0_326 = arith.constant 0 : index
    %841 = vector.load %arg23[%c1_324, %c0_325, %c0_326] : memref<2x2x96xf32, #tpu.memory_space<vmem>>, vector<1x2x96xf32>
    %842 = vector.shape_cast %841 : vector<1x2x96xf32> to vector<2x96xf32>
    %843 = vector.shape_cast %840 : vector<2x96xf32> to vector<1x2x96xf32>
    tpu.vector_store %arg23[%c1_324, %c0_325, %c0_326], %843 {strides = array<i32>} : memref<2x2x96xf32, #tpu.memory_space<vmem>>, vector<1x2x96xf32>,
    %c0_327 = arith.constant 0 : index
    %c0_328 = arith.constant 0 : index
    %844 = vector.load %arg19[%c0_327, %c0_328] : memref<8x68xf32, #tpu.memory_space<vmem>>, vector<8x68xf32>
    tpu.vector_store %arg19[%c0_327, %c0_328], %839 {strides = array<i32>} : memref<8x68xf32, #tpu.memory_space<vmem>>, vector<8x68xf32>,
    %c0_329 = arith.constant 0 : index
    %c0_330 = arith.constant 0 : index
    %845 = vector.load %arg15[%c0_329, %c0_330] : memref<68x76xf32, #tpu.memory_space<vmem>>, vector<68x76xf32>
    %cst_331 = arith.constant dense<0.000000e+00> : vector<8x76xf32>
    %846 = tpu.matmul %839, %845, %cst_331 {dimension_numbers = #tpu.dot_dimension_numbers<[1], [0], [0], [1], [0, 0, 1, 1], [], []>} : vector<8x68xf32>, vector<68x76xf32>, vector<8x76xf32> -> vector<8x76xf32>
    %c0_332 = arith.constant 0 : index
    %c0_333 = arith.constant 0 : index
    %847 = vector.load %arg16[%c0_332, %c0_333] : memref<1x76xf32, #tpu.memory_space<vmem>>, vector<1x76xf32>
    %848 = vector.broadcast %847 : vector<1x76xf32> to vector<8x76xf32>
    %849 = arith.addf %846, %848 : vector<8x76xf32>
    %cst_334 = arith.constant 0.000000e+00 : f32
    %850 = vector.broadcast %cst_334 : f32 to vector<8x76xf32>
    %851 = arith.maximumf %849, %850 : vector<8x76xf32>
    %c0_335 = arith.constant 0 : index
    %c0_336 = arith.constant 0 : index
    %852 = vector.load %arg17[%c0_335, %c0_336] : memref<76x517xf32, #tpu.memory_space<vmem>>, vector<76x517xf32>
    %cst_337 = arith.constant dense<0.000000e+00> : vector<8x517xf32>
    %853 = tpu.matmul %851, %852, %cst_337 {dimension_numbers = #tpu.dot_dimension_numbers<[1], [0], [0], [1], [0, 0, 1, 1], [], []>} : vector<8x76xf32>, vector<76x517xf32>, vector<8x517xf32> -> vector<8x517xf32>
    %c0_338 = arith.constant 0 : index
    %c0_339 = arith.constant 0 : index
    %854 = vector.load %arg18[%c0_338, %c0_339] : memref<1x517xf32, #tpu.memory_space<vmem>>, vector<1x517xf32>
    %855 = vector.broadcast %854 : vector<1x517xf32> to vector<8x517xf32>
    %856 = arith.addf %853, %855 : vector<8x517xf32>
    %857 = vector.extract_strided_slice %856 {offsets = [0, 0], sizes = [8, 512], strides = [1, 1]} : vector<8x517xf32> to vector<8x512xf32>
    %c0_340 = arith.constant 0 : index
    %c0_341 = arith.constant 0 : index
    %858 = vector.load %arg20[%c0_340, %c0_341] : memref<8x512xf32, #tpu.memory_space<vmem>>, vector<8x512xf32>
    tpu.vector_store %arg20[%c0_340, %c0_341], %857 {strides = array<i32>} : memref<8x512xf32, #tpu.memory_space<vmem>>, vector<8x512xf32>,
    %859 = vector.extract_strided_slice %856 {offsets = [0, 512], sizes = [8, 3], strides = [1, 1]} : vector<8x517xf32> to vector<8x3xf32>
    %c0_342 = arith.constant 0 : index
    %c0_343 = arith.constant 0 : index
    %860 = vector.load %arg21[%c0_342, %c0_343] : memref<8x3xf32, #tpu.memory_space<vmem>>, vector<8x3xf32>
    tpu.vector_store %arg21[%c0_342, %c0_343], %859 {strides = array<i32>} : memref<8x3xf32, #tpu.memory_space<vmem>>, vector<8x3xf32>,
    %861 = vector.extract_strided_slice %856 {offsets = [0, 515], sizes = [8, 2], strides = [1, 1]} : vector<8x517xf32> to vector<8x2xf32>
    %c0_344 = arith.constant 0 : index
    %c0_345 = arith.constant 0 : index
    %862 = vector.load %arg22[%c0_344, %c0_345] : memref<8x2xf32, #tpu.memory_space<vmem>>, vector<8x2xf32>
    tpu.vector_store %arg22[%c0_344, %c0_345], %861 {strides = array<i32>} : memref<8x2xf32, #tpu.memory_space<vmem>>, vector<8x2xf32>,
    return
  }
}

</mosaic_0001>

<bundles_post_ra>
// kernel: world_model_forward.1
= control target key start
LH: loop header
LB: loop body
LE: loop exit
PB: predicated region body
PF: predicated region fallthrough
CT: control target
= control target key end

     0   :  { %s8105_s0 = inlined_call_operand.vmem [shape: s32[8,17], index: 0, kind: input, shape index: {}]   ;;  %s8106_s1 = inlined_call_operand.vmem [shape: f32[16,512], index: 1, kind: input, shape index: {}]   ;;  %s8107_s2 = inlined_call_operand.vmem [shape: f32[512,68], index: 2, kind: input, shape index: {}]   ;;  %s8108_s3 = inlined_call_operand.vmem [shape: f32[4,68], index: 3, kind: input, shape index: {}]   ;;  %s8109_s4 = inlined_call_operand.vmem [shape: f32[2,1,68], index: 4, kind: input, shape index: {}]   ;;  %s8110_s5 = inlined_call_operand.vmem [shape: f32[2,1,68], index: 5, kind: input, shape index: {}]   ;;  %s8111_s6 = inlined_call_operand.vmem [shape: f32[2,68,51], index: 6, kind: input, shape index: {}]   ;;  %s8112_s7 = inlined_call_operand.vmem [shape: f32[2,17,51], index: 7, kind: input, shape index: {}]   ;;  %s8113_s8 = inlined_call_operand.vmem [shape: f32[2,1,51], index: 8, kind: input, shape index: {}]   ;;  %s8114_s9 = inlined_call_operand.vmem [shape: f32[2,17,33], index: 9, kind: input, shape index: {}]   ;;  %s8115_s10 = inlined_call_operand.vmem [shape: f32[2,11,33], index: 10, kind: input, shape index: {}]   ;;  %s8116_s11 = inlined_call_operand.vmem [shape: f32[2,1,33], index: 11, kind: input, shape index: {}]   ;;  %s8117_s12 = inlined_call_operand.vmem [shape: f32[2,11,204], index: 12, kind: input, shape index: {}]   ;;  %s8118_s13 = inlined_call_operand.vmem [shape: f32[2,68,204], index: 13, kind: input, shape index: {}]   ;;  %s8119_s14 = inlined_call_operand.vmem [shape: f32[2,1,204], index: 14, kind: input, shape index: {}]   ;;  %s8120_s15 = inlined_call_operand.vmem [shape: f32[68,76], index: 15, kind: input, shape index: {}]   ;;  %s8121_s16 = inlined_call_operand.vmem [shape: f32[1,76], index: 16, kind: input, shape index: {}]   ;;  %s8122_s17 = inlined_call_operand.vmem [shape: f32[76,517], index: 17, kind: input, shape index: {}]   ;;  %s8123_s18 = inlined_call_operand.vmem [shape: f32[1,517], index: 18, kind: input, shape index: {}]   ;;  %s8124_s19 = inlined_call_operand.hbm [shape: f32[8,68], index: 19, kind: output, shape index: {0}]   ;;  %s8125_s20 = inlined_call_operand.vmem [shape: f32[8,512], index: 20, kind: output, shape index: {1}]   ;;  %s8126_s21 = inlined_call_operand.vmem [shape: f32[8,3], index: 21, kind: output, shape index: {2}]   ;;  %s8127_s22 = inlined_call_operand.vmem [shape: f32[8,2], index: 22, kind: output, shape index: {3}]   ;;  %s8128_s23 = inlined_call_operand.vmem [shape: f32[2,2,96], index: 23, kind: output, shape index: {4}]  }
   0x1   :  { %8147 = sst [smem:[#allocation5_spill]] %s8105_s0 }
   0x2   :  { %8148 = sst [smem:[#allocation6_spill]] %s8106_s1 }
   0x3   :  { %8149 = sst [smem:[#allocation7_spill]] %s8107_s2 }
   0x4   :  { %8150 = sst [smem:[#allocation8_spill]] %s8108_s3 }
   0x5   :  { %8151 = sst [smem:[#allocation9_spill]] %s8109_s4 }
   0x6   :  { %8152 = sst [smem:[#allocation10_spill]] %s8110_s5 }
   0x7   :  { %8153 = sst [smem:[#allocation11_spill]] %s8111_s6 }
   0x8   :  { %8154 = sst [smem:[#allocation12_spill]] %s8112_s7 }
   0x9   :  { %8155 = sst [smem:[#allocation13_spill]] %s8126_s21 }
   0xa   :  { %8156 = sst [smem:[#allocation14_spill]] %s8127_s22 }
   0xb   :  { %s8157_s24 = sld [smem:[#allocation6_spill]]  ;;  %v6421_v5 = vmov 0.0   ;;  %s8158_s28 = sld [smem:[#allocation5_spill]]  ;;  %v6422_v8 = vmov 16   ;;  %vm332_vm0 = vcmask 1043456   ;;  %vm78_vm1 = vcmask 130048  }
   0xc   :  { %146 = vmatprep.mubr.f32.mxu1 %v6421_v5  ;;  %6232 = vset.pattern.permute.xlu0 %v6422_v8  ;;  %s8159_s6 = sld [smem:[#allocation7_spill]]  ;;  %s8160_s0 = sld [smem:[#allocation8_spill]]  ;;  %vm6423_vm2 = vmmov 0  }
   0xd   :  { %5486 = vmatprep.subr.mxu0 %v6421_v5  ;;  %5488 = vmatprep.mubr.msk.f32.mxu0 %vm6423_vm2, %v6421_v5 }
  0x11   :  { %v71_v0 = vld [vmem:[%s8157_s24 + $0x8] sm:$0xff]  ;;  %v70_v2 = vld [vmem:[%s8157_s24] sm:$0xff]  ;;  %v73_v7 = vld [vmem:[%s8157_s24 + $0x18] sm:$0xff] }
  0x12   :  { %v75_v1 = vld [vmem:[%s8157_s24 + $0x28] sm:$0xff]  ;;  %v74_v4 = vld [vmem:[%s8157_s24 + $0x20] sm:$0xff]  ;;  %v77_v10 = vld [vmem:[%s8157_s24 + $0x38] sm:$0xff] }
  0x13   :  { %v5777_v3 = vpack.c.bf16 %v75_v1, %v71_v0  ;;  %v68_v6 = vld [vmem:[%s8158_s28] sm:$0xff]  ;;  %v5779_v9 = vpack.c.bf16 %v74_v4, %v70_v2  ;;  %v72_v11 = vld [vmem:[%s8157_s24 + $0x10] sm:$0xff]  ;;  %v5781_v14 = vpack.c.bf16 %v77_v10, %v73_v7  ;;  %v280_v16 = vld [vmem:[%s8159_s6 + $0x88] sm:$0xff] }
  0x14   :  { %v76_v12 = vld [vmem:[%s8157_s24 + $0x30] sm:$0xff]  ;;  %258 = vperm.xlu0 %6232, %v68_v6   ;;  %v69_v13 = vcvt.s32.f32 %v68_v6  ;;  %v279_v15 = vld [vmem:[%s8159_s6 + $0x80] sm:$0xff]  ;;  %v264_v21 = vld [vmem:[%s8159_s6 + $0x8] sm:$0xff] }
  0x15   :  { %5778 = vmatprep.subr.bf16.mxu1 %v5777_v3  ;;  %v5783_v17 = vpack.c.bf16 %v76_v12, %v72_v11  ;;  %v263_v18 = vld [vmem:[%s8159_s6] sm:$0xff]  ;;  %v5785_v20 = vpack.c.bf16 %v280_v16, %v279_v15  ;;  %v312_v23 = vld [vmem:[%s8159_s6 + $0x188] sm:$0xff]  ;;  %v281_v24 = vld [vmem:[%s8159_s6 + $0x90] sm:$0xff] }
  0x16   :  { %5780 = vmatpush1.bf16.msra.mxu1 %v5779_v9  ;;  %v327_v19 = vld [vmem:[%s8160_s0] sm:$0xf]  ;;  %v282_v25 = vld [vmem:[%s8159_s6 + $0x98] sm:$0xff]  ;;  %v5787_v27 = vpack.c.bf16 %v264_v21, %v263_v18  ;;  %v265_v29 = vld [vmem:[%s8159_s6 + $0x10] sm:$0xff] }
  0x17   :  { %5782 = vmatprep.subr.bf16.mxu1 %v5781_v14  ;;  %5487 = vmatpush3.msk.msra.mxu0 %vm332_vm0, %v327_v19  ;;  %v311_v22 = vld [vmem:[%s8159_s6 + $0x180] sm:$0xff]  ;;  %v5789_v28 = vpack.c.bf16 %v282_v25, %v281_v24  ;;  %v266_v30 = vld [vmem:[%s8159_s6 + $0x18] sm:$0xff]  ;;  %v284_v32 = vld [vmem:[%s8159_s6 + $0xa8] sm:$0xff] }
  0x18   :  { %v5817_v26 = vpack.c.bf16 %v312_v23, %v311_v22  ;;  %v283_v31 = vld [vmem:[%s8159_s6 + $0xa0] sm:$0xff]  ;;  %v5791_v33 = vpack.c.bf16 %v266_v30, %v265_v29 }
  0x19   :  { %5090 = vmatmul.mubr.msk.f32.vlgmr.msra.gmra.mrb[0].mxu1 %vm78_vm1, %v69_v13 }
  0x1a   :  { %5784 = vmatpush1.bf16.msra.mxu1 %v5783_v17  ;;  %217 = vmatprep.mubr.f32.mxu1 %v6421_v5 }
  0x1b   :  { %5786 = vmatprep.subr.bf16.mxu1 %v5785_v20  ;;  %5818 = vmatprep.subr.bf16.mxu0 %v5817_v26 }
  0x1d   :  { %5091 = vmatmul.mubr.msk.f32.vlgmr.msra.gmra.mrb[2].mxu1 %vm78_vm1, %v69_v13 }
  0x1e   :  { %5788 = vmatpush3.bf16.msra.mxu1 %v5787_v27 }
  0x1f   :  { %29 = vsyncpa [#allocation3], 0  ;;  %5790 = vmatprep.subr.bf16.mxu1 %v5789_v28  ;;  %v5793_v34 = vpack.c.bf16 %v284_v32, %v283_v31  ;;  %v267_v35 = vld [vmem:[%s8159_s6 + $0x20] sm:$0xff]  ;;  %v268_v36 = vld [vmem:[%s8159_s6 + $0x28] sm:$0xff]  ;;  %v224_v4 = vlaneseq  ;;  %vm328_vm3 = vcmask 31744   ;;  %vm549_vm9 = vcmask 556032  }
  0x20   :  { %v285_v37 = vld [vmem:[%s8159_s6 + $0xb0] sm:$0xff]  ;;  %v286_v38 = vld [vmem:[%s8159_s6 + $0xb8] sm:$0xff]  ;;  %v5795_v39 = vpack.c.bf16 %v268_v36, %v267_v35  ;;  %v287_v43 = vld [vmem:[%s8159_s6 + $0xc0] sm:$0xff]  ;;  %s8161_s29 = sld [smem:[#allocation11_spill]]  ;;  %s8162_s25 = sld [smem:[#allocation12_spill]]  ;;  %vm689_vm10 = vcmask 1040384  }
  0x21   :  { %v5797_v40 = vpack.c.bf16 %v286_v38, %v285_v37  ;;  %v269_v41 = vld [vmem:[%s8159_s6 + $0x30] sm:$0xff]  ;;  %v270_v42 = vld [vmem:[%s8159_s6 + $0x38] sm:$0xff]  ;;  %v288_v44 = vld [vmem:[%s8159_s6 + $0xc8] sm:$0xff]  ;;  %v6697_v6 = vand.u32 127, %v224_v4  ;;  %s8163_s28 = sld [smem:[#allocation9_spill]]  ;;  %s8164_s3 = sld [smem:[#allocation10_spill]] }
  0x22   :  { %5792 = vmatpush3.bf16.msra.mxu1 %v5791_v33  ;;  %v5799_v45 = vpack.c.bf16 %v270_v42, %v269_v41  ;;  %v5801_v46 = vpack.c.bf16 %v288_v44, %v287_v43  ;;  %v271_v47 = vld [vmem:[%s8159_s6 + $0x40] sm:$0xff]  ;;  %v272_v48 = vld [vmem:[%s8159_s6 + $0x48] sm:$0xff]  ;;  %v289_v49 = vld [vmem:[%s8159_s6 + $0xd0] sm:$0xff]  ;;  %s8137_s30 = smov 17   ;;  %vm795_vm12 = vcmask 1042432   ;;  %vm6427_vm13 = vmmov 1  }
  0x23   :  { %5794 = vmatprep.subr.bf16.mxu1 %v5793_v34  ;;  %v290_v50 = vld [vmem:[%s8159_s6 + $0xd8] sm:$0xff]  ;;  %v5803_v51 = vpack.c.bf16 %v272_v48, %v271_v47  ;;  %v273_v53 = vld [vmem:[%s8159_s6 + $0x50] sm:$0xff]  ;;  %v291_v56 = vld [vmem:[%s8159_s6 + $0xe0] sm:$0xff]  ;;  %s8139_s0 = smov 94   ;;  %vm685_vm15 = vcmask 138240   ;;  %s8135_s2 = smov 11  }
  0x24   :  { %v5805_v52 = vpack.c.bf16 %v290_v50, %v289_v49  ;;  %v274_v54 = vld [vmem:[%s8159_s6 + $0x58] sm:$0xff]  ;;  %v292_v57 = vld [vmem:[%s8159_s6 + $0xe8] sm:$0xff]  ;;  %v275_v59 = vld [vmem:[%s8159_s6 + $0x60] sm:$0xff]  ;;  %vm792_vm1 = vcmask 89088   ;;  %s8143_s26 = smov 68   ;;  %s8141_s27 = smov 120  }
  0x25   :  { %v5807_v55 = vpack.c.bf16 %v274_v54, %v273_v53  ;;  %v5809_v58 = vpack.c.bf16 %v292_v57, %v291_v56  ;;  %v276_v60 = vld [vmem:[%s8159_s6 + $0x68] sm:$0xff]  ;;  %v293_v62 = vld [vmem:[%s8159_s6 + $0xf0] sm:$0xff]  ;;  %v294_v63 = vld [vmem:[%s8159_s6 + $0xf8] sm:$0xff]  ;;  %v226_v54 = vadd.s32 128, %v6697_v6  ;;  %v227_v56 = vadd.s32 256, %v6697_v6  ;;  %s8170_s24 = smov 106  }
  0x26   :  { %5796 = vmatpush3.bf16.msra.mxu1 %v5795_v39  ;;  %v5811_v61 = vpack.c.bf16 %v276_v60, %v275_v59  ;;  %v5813_v0 = vpack.c.bf16 %v294_v63, %v293_v62  ;;  %v277_v1 = vld [vmem:[%s8159_s6 + $0x70] sm:$0xff]  ;;  %v278_v2 = vld [vmem:[%s8159_s6 + $0x78] sm:$0xff]  ;;  %v295_v7 = vld [vmem:[%s8159_s6 + $0x100] sm:$0xff]  ;;  %s8172_s7 = smov 120   ;;  %s6434_s1 = smov [#allocation2]  }
  0x27   :  { %5798 = vmatprep.subr.bf16.mxu1 %v5797_v40  ;;  %v5815_v3 = vpack.c.bf16 %v278_v2, %v277_v1  ;;  %v296_v8 = vld [vmem:[%s8159_s6 + $0x108] sm:$0xff]  ;;  %v313_v9 = vld [vmem:[%s8159_s6 + $0x190] sm:$0xff]  ;;  %v314_v10 = vld [vmem:[%s8159_s6 + $0x198] sm:$0xff]  ;;  %v230_v57 = vand.u32 31, %v226_v54  ;;  %v231_v60 = vand.u32 31, %v227_v56 }
  0x28   :  { %v5819_v12 = vpack.c.bf16 %v296_v8, %v295_v7  ;;  %v5821_v13 = vpack.c.bf16 %v314_v10, %v313_v9  ;;  %v297_v14 = vld [vmem:[%s8159_s6 + $0x110] sm:$0xff]  ;;  %v298_v15 = vld [vmem:[%s8159_s6 + $0x118] sm:$0xff]  ;;  %v315_v17 = vld [vmem:[%s8159_s6 + $0x1a0] sm:$0xff] }
  0x29   :  { %v316_v18 = vld [vmem:[%s8159_s6 + $0x1a8] sm:$0xff]  ;;  %v5823_v19 = vpack.c.bf16 %v298_v15, %v297_v14  ;;  %v299_v21 = vld [vmem:[%s8159_s6 + $0x120] sm:$0xff]  ;;  %v317_v23 = vld [vmem:[%s8159_s6 + $0x1b0] sm:$0xff]  ;;  %v235_v2 = vcvt.s32.f32 %v231_v60 }
  0x2a   :  { %5800 = vmatpush3.bf16.msra.mxu1 %v5799_v45  ;;  %v5825_v20 = vpack.c.bf16 %v316_v18, %v315_v17  ;;  %v300_v22 = vld [vmem:[%s8159_s6 + $0x128] sm:$0xff]  ;;  %v318_v24 = vld [vmem:[%s8159_s6 + $0x1b8] sm:$0xff]  ;;  %v301_v27 = vld [vmem:[%s8159_s6 + $0x130] sm:$0xff] }
  0x2b   :  { %5802 = vmatprep.subr.bf16.mxu1 %v5801_v46  ;;  %v5827_v25 = vpack.c.bf16 %v300_v22, %v299_v21  ;;  %v5829_v26 = vpack.c.bf16 %v318_v24, %v317_v23  ;;  %v302_v28 = vld [vmem:[%s8159_s6 + $0x138] sm:$0xff]  ;;  %v319_v29 = vld [vmem:[%s8159_s6 + $0x1c0] sm:$0xff]  ;;  %v320_v30 = vld [vmem:[%s8159_s6 + $0x1c8] sm:$0xff] }
  0x2c   :  { %v5831_v31 = vpack.c.bf16 %v302_v28, %v301_v27  ;;  %v5833_v32 = vpack.c.bf16 %v320_v30, %v319_v29  ;;  %v303_v33 = vld [vmem:[%s8159_s6 + $0x140] sm:$0xff]  ;;  %v304_v34 = vld [vmem:[%s8159_s6 + $0x148] sm:$0xff]  ;;  %v321_v35 = vld [vmem:[%s8159_s6 + $0x1d0] sm:$0xff] }
  0x2d   :  { %v322_v36 = vld [vmem:[%s8159_s6 + $0x1d8] sm:$0xff]  ;;  %v5835_v37 = vpack.c.bf16 %v304_v34, %v303_v33  ;;  %v305_v39 = vld [vmem:[%s8159_s6 + $0x150] sm:$0xff]  ;;  %v323_v41 = vld [vmem:[%s8159_s6 + $0x1e0] sm:$0xff] }
  0x2e   :  { %5804 = vmatpush3.bf16.msra.mxu1 %v5803_v51  ;;  %v5837_v38 = vpack.c.bf16 %v322_v36, %v321_v35  ;;  %v306_v40 = vld [vmem:[%s8159_s6 + $0x158] sm:$0xff]  ;;  %v324_v42 = vld [vmem:[%s8159_s6 + $0x1e8] sm:$0xff]  ;;  %v307_v45 = vld [vmem:[%s8159_s6 + $0x160] sm:$0xff] }
  0x2f   :  { %5806 = vmatprep.subr.bf16.mxu1 %v5805_v52  ;;  %v5839_v43 = vpack.c.bf16 %v306_v40, %v305_v39  ;;  %v5841_v44 = vpack.c.bf16 %v324_v42, %v323_v41  ;;  %v308_v46 = vld [vmem:[%s8159_s6 + $0x168] sm:$0xff]  ;;  %v325_v47 = vld [vmem:[%s8159_s6 + $0x1f0] sm:$0xff]  ;;  %v326_v48 = vld [vmem:[%s8159_s6 + $0x1f8] sm:$0xff] }
  0x30   :  { %v5843_v49 = vpack.c.bf16 %v308_v46, %v307_v45  ;;  %v5845_v50 = vpack.c.bf16 %v326_v48, %v325_v47  ;;  %v309_v51 = vld [vmem:[%s8159_s6 + $0x170] sm:$0xff]  ;;  %v310_v52 = vld [vmem:[%s8159_s6 + $0x178] sm:$0xff]  ;;  %v580_v29 = vld [vmem:[%s8161_s29] sm:$0xff]  ;;  %s8145_s6 = smov 106  }
  0x31   :  { %v5847_v53 = vpack.c.bf16 %v310_v52, %v309_v51  ;;  %v581_v30 = vld [vmem:[%s8161_s29 + $0x8] sm:$0xff]  ;;  %v582_v33 = vld [vmem:[%s8161_s29 + $0x10] sm:$0xff]  ;;  %v583_v34 = vld [vmem:[%s8161_s29 + $0x18] sm:$0xff] }
  0x32   :  { %5808 = vmatpush3.bf16.msra.mxu1 %v5807_v55  ;;  %v229_v55 = vand.u32 31, %v6697_v6  ;;  %v5853_v35 = vpack.c.bf16 %v583_v34, %v582_v33  ;;  %v584_v36 = vld [vmem:[%s8161_s29 + $0x20] sm:$0xff]  ;;  %v586_v39 = vld [vmem:[%s8161_s29 + $0x30] sm:$0xff]  ;;  %v587_v40 = vld [vmem:[%s8161_s29 + $0x38] sm:$0xff] }
  0x33   :  { %5810 = vmatprep.subr.bf16.mxu1 %v5809_v58  ;;  %v228_v58 = vadd.s32 384, %v6697_v6  ;;  %v5859_v41 = vpack.c.bf16 %v587_v40, %v586_v39  ;;  %v588_v42 = vld [vmem:[%s8161_s29 + $0x40] sm:$0xf]  ;;  %v6848_v46 = vld [vmem:[%s8162_s25 + $0x10] sm:$0x1]  ;;  %vm6903_vm14 = vmpackc.low %vm795_vm12, %vm6427_vm13 }
  0x34   :  { %v233_v59 = vcvt.s32.f32 %v229_v55  ;;  %v5103_v56 = vld [vmem:[%s8163_s28] ss:$0 sm:$0xff] }
  0x35   :  { %v232_v62 = vand.u32 31, %v228_v58  ;;  %v5104_v58 = vld [vmem:[%s8164_s3] ss:$0 sm:$0xff] }
  0x36   :  { %5812 = vmatpush3.bf16.msra.mxu1 %v5811_v61  ;;  %v234_v61 = vcvt.s32.f32 %v230_v57 }
  0x37   :  { %5814 = vmatprep.subr.bf16.mxu1 %v5813_v0  ;;  %v236_v7 = vcvt.s32.f32 %v232_v62 }
  0x3a   :  { %5816 = vmatpush3.bf16.msra.mxu1 %v5815_v3 }
  0x93   :  { %v259_v11 = vpop.permute.xlu0 %258 }
  0x94   :  { %vm260_vm4 = vcmp.eq.s32.totalorder %v259_v11, %v6697_v6  ;;  %v6424_v6 = vmov 1.0  }
  0x95   :  { %v5096_v16 = vsel %vm260_vm4, 1.0, %v6421_v5 }
  0x96   :  { %5489 = vmatmul.mubr.msk.f32.vlgmr.msra.gmra.mrb[0].mxu0 %vm328_vm3, %v5096_v16 }
  0x97   :  { %5820 = vmatpush3.bf16.msra.mxu0 %v5819_v12 }
  0x98   :  { %5822 = vmatprep.subr.bf16.mxu0 %v5821_v13 }
  0x9b   :  { %5824 = vmatpush3.bf16.msra.mxu0 %v5823_v19 }
  0x9c   :  { %5826 = vmatprep.subr.bf16.mxu0 %v5825_v20 }
  0x9f   :  { %5828 = vmatpush3.bf16.msra.mxu0 %v5827_v25 }
  0xa0   :  { %5830 = vmatprep.subr.bf16.mxu0 %v5829_v26 }
  0xa3   :  { %5832 = vmatpush3.bf16.msra.mxu0 %v5831_v31  ;;  %v5850_v31 = vpack.c.bf16 %v581_v30, %v580_v29 }
  0xa4   :  { %5834 = vmatprep.subr.bf16.mxu0 %v5833_v32  ;;  %v6425_v32 = vmov 0.0|0.0  }
  0xa5   :  { %5849 = vmatprep.subr.bf16.mxu1 %v6425_v32 }
  0xa7   :  { %5836 = vmatpush3.bf16.msra.mxu0 %v5835_v37  ;;  %v585_v37 = vld [vmem:[%s8161_s29 + $0x28] sm:$0xff] }
  0xa8   :  { %5838 = vmatprep.subr.bf16.mxu0 %v5837_v38  ;;  %v5856_v38 = vpack.c.bf16 %v585_v37, %v584_v36  ;;  %v6948_v37 = vld [vmem:[%s8116_s11] ss:$0 sm:$0xff] }
  0xab   :  { %5840 = vmatpush3.bf16.msra.mxu0 %v5839_v43  ;;  %v682_v43 = vld [vmem:[%s8162_s25] sm:$0xff] }
  0xac   :  { %5842 = vmatprep.subr.bf16.mxu0 %v5841_v44  ;;  %v683_v44 = vld [vmem:[%s8162_s25 + $0x8] sm:$0xff] }
  0xad   :  { %v6840_v45 = vpack.c.bf16 %v683_v44, %v682_v43 }
  0xaf   :  { %5844 = vmatpush3.bf16.msra.mxu0 %v5843_v49 }
  0xb0   :  { %5846 = vmatprep.subr.bf16.mxu0 %v5845_v50 }
  0xb3   :  { %5848 = vmatpush3.bf16.msra.mxu0 %v5847_v53 }
  0xb4   :  { %5861 = vmatprep.subr.bf16.mxu0 %v6425_v32 }
  0xec   :  { %v148_v63 = vpop.f32.mrb[0].mxu1 }
  0xed   :  { %v237_v0 = vsub.f32 %v148_v63, %v233_v59  ;;  %v150_v1 = vpop.f32.mrb[1].mxu1  ;;  %v6867_v63 = vshrl.u32 %v224_v4, 7 }
  0xee   :  { %v238_v3 = vsub.f32 %v150_v1, %v234_v61 }
  0xef   :  { %v241_v8 = vand.u32 2147483647, %v237_v0  ;;  %v5105_v0 = vld [vmem:[%s8113_s8] ss:$0 sm:$0xff]  ;;  %v6873_v1 = vsub.s32 0, %v6867_v63  ;;  %vm676_vm11 = vcmp.eq.s32.totalorder %v6867_v63, 1 }
  0xf0   :  { %v242_v9 = vand.u32 2147483647, %v238_v3  ;;  %v219_v10 = vpop.f32.mrb[2].mxu1  ;;  %v6942_v34 = vsub.s32 1, %v6867_v63  ;;  %vm1199_vm3 = vcmp.eq.s32.totalorder %v6867_v63, 0  ;;  %vm1205_vm4 = vcmp.eq.s32.totalorder %v6867_v63, 4 }
  0xf1   :  { %v239_v11 = vsub.f32 %v219_v10, %v235_v2  ;;  %v221_v12 = vpop.f32.mrb[3].mxu1  ;;  %vm245_vm6 = vcmp.lt.f32.partialorder %v241_v8, 0.5  ;;  %v6876_v2 = vsub.s32 4, %v6867_v63  ;;  %vm2584_vm12 = vcmp.eq.s32.totalorder %v6867_v63, 7 }
  0xf2   :  { %vm246_vm5 = vcmp.lt.f32.partialorder %v242_v9, 0.5  ;;  %v240_v13 = vsub.f32 %v221_v12, %v236_v7 }
  0xf3   :  { %v243_v14 = vand.u32 2147483647, %v239_v11  ;;  %5099 = vmatprep.mubr.msk.f32.mxu1 %vm246_vm5, %v6424_v6  ;;  %vm1664_vm5 = vcmp.eq.s32.totalorder %v6867_v63, 5 }
  0xf4   :  { %v244_v15 = vand.u32 2147483647, %v240_v13  ;;  %5100 = vmatmul.mubr.msk.f32.vlgmr.msra.gmra.mrb[4].mxu1 %vm245_vm6, %v6424_v6  ;;  %vm2118_vm6 = vcmp.eq.s32.totalorder %v6867_v63, 2 }
  0xf5   :  { %5509 = vmatprep.mubr.msk.f32.mxu1 %vm6423_vm2, %v6421_v5  ;;  %vm247_vm8 = vcmp.lt.f32.partialorder %v243_v14, 0.5  ;;  %5851 = vmatpush3.bf16.msra.mxu1 %v5850_v31 }
  0xf6   :  { %vm248_vm7 = vcmp.lt.f32.partialorder %v244_v15, 0.5  ;;  %5852 = vmatprep.subr.bf16.mxu1 %v6425_v32  ;;  %v787_v15 = vld [vmem:[%s8114_s9] sm:$0xff] }
  0xf7   :  { %5101 = vmatprep.mubr.msk.f32.mxu0 %vm248_vm7, %v6424_v6  ;;  %vm2124_vm7 = vcmp.eq.s32.totalorder %v6867_v63, 6 }
  0xf8   :  { %5102 = vmatmul.mubr.msk.f32.vlgmr.msra.gmra.mrb[2].mxu0 %vm247_vm8, %v6424_v6  ;;  %vm2578_vm8 = vcmp.eq.s32.totalorder %v6867_v63, 3 }
  0xf9   :  { %5518 = vmatprep.mubr.msk.f32.mxu0 %vm6423_vm2, %v6421_v5  ;;  %5854 = vmatpush3.bf16.msra.mxu1 %v5853_v35  ;;  %v1217_v35 = vsub.s32 5, %v6867_v63 }
  0xfa   :  { %5855 = vmatprep.subr.bf16.mxu1 %v6425_v32  ;;  %5863 = vmatpush3.bf16.msra.mxu0 %v6840_v45 }
  0xfb   :  { %5516 = vmatprep.subr.mxu0 %v6421_v5 }
  0xfd   :  { %5857 = vmatpush3.bf16.msra.mxu1 %v5856_v38 }
  0xfe   :  { %5858 = vmatprep.subr.bf16.mxu1 %v6425_v32  ;;  %5517 = vmatpush3.msk.msra.mxu0 %vm689_vm10, %v6848_v46 }
  0xff   :  { %5519 = vmatmul.mubr.f32.vlgmr.msra.gmra.mrb[4].mxu0 %v6421_v5  ;;  %5868 = vmatprep.subr.bf16.mxu0 %v6425_v32 }
 0x100   :  { %5534 = vmatprep.mubr.msk.f32.mxu0 %vm6423_vm2, %v6421_v5 }
 0x101   :  { %5860 = vmatpush3.bf16.msra.mxu1 %v5859_v41 }
 0x102   :  { %5507 = vmatprep.subr.mxu1 %v6421_v5 }
 0x105   :  { %5508 = vmatpush3.msk.msra.mxu1 %vm332_vm0, %v588_v42 }
 0x106   :  { %5864 = vmatprep.subr.bf16.mxu1 %v6425_v32 }
 0x169   :  { %v402_v16 = vpop.f32.mrb[0].mxu0 }
 0x16a   :  { %v5490_v17 = vpop.f32.mrb[1].mxu0 }
 0x16b   :  { %v790_v17 = vld [vmem:[%s8115_s10] sm:$0xff] }
 0x1c7   :  { %v5319_v18 = vpop.f32.mrb[4].mxu1 }
 0x1c8   :  { %v5320_v19 = vpop.f32.mrb[5].mxu1 }
 0x1c9   :  { %v5321_v20 = vadd.f32 %v5320_v19, %v5319_v18  ;;  %v791_v19 = vld [vmem:[%s8115_s10 + $0x8] sm:$0x7] }
 0x1cb   :  { %v473_v21 = vadd.f32 %v5321_v20, %v402_v16  ;;  %v5354_v22 = vpop.f32.mrb[2].mxu0  ;;  %v788_v16 = vld [vmem:[%s8114_s9 + $0x8] sm:$0xff] }
 0x1cc   :  { %v5355_v23 = vpop.f32.mrb[3].mxu0  ;;  %v6897_v18 = vpack.c.bf16 %v788_v16, %v787_v15  ;;  %v992_v16 = vld [vmem:[%s8118_s13 + $0x60] sm:$0xff] }
 0x1cd   :  { %v5356_v24 = vadd.f32 %v5355_v23, %v5354_v22 }
 0x1ce   :  { %5870 = vmatpush3.bf16.msra.mxu0 %v6897_v18 }
 0x1cf   :  { %v543_v25 = vadd.f32 %v5356_v24, %v473_v21  ;;  %v6907_v21 = vpack.c.bf16 %v791_v19, %v790_v17  ;;  %5532 = vmatprep.subr.mxu0 %v6421_v5  ;;  %v6920_v24 = vld [vmem:[%s8114_s9 + $0x10] sm:$0x1] }
 0x1d0   :  { %v994_v17 = vld [vmem:[%s8118_s13 + $0x70] sm:$0xff] }
 0x1d1   :  { %v550_v26 = vsel %vm549_vm9, %v543_v25, 0.0  ;;  %v548_v27 = vmul.f32 %v543_v25, %v543_v25 }
 0x1d2   :  { %551 = vadd.xlane.f32.xlu0 %v550_v26  ;;  %v759_v61 = vpop.f32.mrb[4].mxu0  ;;  %5533 = vmatpush3.msk.msra.mxu0 %vm689_vm10, %v6920_v24 }
 0x1d3   :  { %v553_v28 = vsel %vm549_vm9, %v548_v27, 0.0  ;;  %v5520_v62 = vpop.f32.mrb[5].mxu0  ;;  %5893 = vmatprep.subr.bf16.mxu0 %v6425_v32 }
 0x1d4   :  { %554 = vadd.xlane.f32.xlu1 %v553_v28 }
 0x25f   :  { %v552_v47 = vpop.xlane.xlu0 %551 }
 0x260   :  { %v556_v48 = vmul.f32 0.014705882, %v552_v47 }
 0x261   :  { %v555_v49 = vpop.xlane.xlu1 %554 }
 0x262   :  { %v559_v50 = vmul.f32 %v556_v48, %v556_v48  ;;  %v557_v51 = vmul.f32 0.014705882, %v555_v49  ;;  %v558_v54 = vsub.f32 %v543_v25, %v556_v48 }
 0x264   :  { %v560_v52 = vsub.f32 %v557_v51, %v559_v50 }
 0x266   :  { %v561_v53 = vadd.f32 1e-05, %v560_v52 }
 0x268   :  { %6233 = vrsqrt.f32 %v561_v53 }
 0x272   :  { %v6234_v55 = vpop.eup %6233 }
 0x273   :  { %v563_v57 = vmul.f32 %v6234_v55, %v558_v54  ;;  %v981_v54 = vld [vmem:[%s8118_s13 + $0x8] sm:$0xff]  ;;  %v983_v55 = vld [vmem:[%s8118_s13 + $0x18] sm:$0xff] }
 0x275   :  { %v571_v59 = vmul.f32 %v5103_v56, %v563_v57  ;;  %v980_v56 = vld [vmem:[%s8118_s13] sm:$0xff]  ;;  %v6975_v57 = vpack.c.bf16 %v983_v55, %v981_v54 }
 0x277   :  { %v579_v60 = vadd.f32 %v5104_v58, %v571_v59  ;;  %v982_v58 = vld [vmem:[%s8118_s13 + $0x10] sm:$0xff]  ;;  %v985_v59 = vld [vmem:[%s8118_s13 + $0x28] sm:$0xff] }
 0x279   :  { %5510 = vmatmul.mubr.msk.f32.vlgmr.msra.gmra.mrb[6].mxu1 %vm549_vm9, %v579_v60  ;;  %v987_v60 = vld [vmem:[%s8118_s13 + $0x38] sm:$0xff] }
 0x27a   :  { %5525 = vmatprep.mubr.msk.f32.mxu1 %vm6423_vm2, %v6421_v5  ;;  %5867 = vmatpush3.bf16.msk.msra.mxu1 %vm6903_vm14, %v6907_v21  ;;  %v6988_v62 = vpack.c.bf16 %v987_v60, %v985_v59 }
 0x27b   :  { %5872 = vmatprep.subr.bf16.mxu1 %v6975_v57 }
 0x27d   :  { %5526 = vmatmul.mubr.f32.vlgmr.msra.gmra.mrb[8].mxu1 %v6421_v5 }
 0x27e   :  { %1070 = vmatprep.mubr.f32.mxu1 %v6421_v5 }
 0x34c   :  { %v668_v3 = vpop.f32.mrb[6].mxu1 }
 0x34d   :  { %v6878_v7 = vadd.f32 %v5105_v0, %v668_v3  ;;  %v5511_v8 = vpop.f32.mrb[7].mxu1  ;;  %v984_v0 = vld [vmem:[%s8118_s13 + $0x20] sm:$0xff]  ;;  %v986_v3 = vld [vmem:[%s8118_s13 + $0x30] sm:$0xff] }
 0x34e   :  { %v989_v8 = vld [vmem:[%s8118_s13 + $0x48] sm:$0xff] }
 0x34f   :  { %v675_v4 = vrot.slane %v6878_v7, %v6873_v1  ;;  %v680_v9 = vrot.slane %v6878_v7, %v6876_v2  ;;  %v1214_v40 = vrot.slane %v6878_v7, %v6942_v34  ;;  %v1218_v41 = vrot.slane %v6878_v7, %v1217_v35 }
 0x350   :  { %v865_v27 = vpop.f32.mrb[8].mxu1 }
 0x351   :  { %v681_v10 = vsel %vm676_vm11, %v680_v9, %v675_v4  ;;  %v5527_v28 = vpop.f32.mrb[9].mxu1  ;;  %v1219_v44 = vsel %vm676_vm11, %v1218_v41, %v1214_v40  ;;  %v991_v4 = vld [vmem:[%s8118_s13 + $0x58] sm:$0xff]  ;;  %v7004_v9 = vpack.c.bf16 %v986_v3, %v984_v0  ;;  %v7132_v3 = vsub.s32 2, %v6867_v63 }
 0x352   :  { %v763_v11 = vadd.f32 %v759_v61, %v681_v10  ;;  %v6986_v61 = vpack.c.bf16 %v982_v58, %v980_v56  ;;  %v7007_v10 = vpack.c.bf16 %v991_v4, %v989_v8  ;;  %v976_v28 = vld [vmem:[%s8117_s12] sm:$0xff]  ;;  %v1676_v8 = vsub.s32 6, %v6867_v63 }
 0x354   :  { %6235 = vtanh.f32 %v763_v11  ;;  %v5109_v12 = vmul.f32 -1.442695, %v763_v11  ;;  %5874 = vmatpush1.bf16.msra.mxu1 %v6986_v61  ;;  %v988_v11 = vld [vmem:[%s8118_s13 + $0x40] sm:$0xff] }
 0x355   :  { %5876 = vmatprep.subr.bf16.mxu1 %v6988_v62 }
 0x356   :  { %6237 = vpow2.f32 %v5109_v12  ;;  %v990_v12 = vld [vmem:[%s8118_s13 + $0x50] sm:$0xff] }
 0x358   :  { %5878 = vmatpush1.bf16.msra.mxu1 %v7004_v9 }
 0x359   :  { %5880 = vmatprep.subr.bf16.mxu1 %v7007_v10 }
 0x35e   :  { %v6236_v13 = vpop.eup %6235 }
 0x35f   :  { %778 = vrot.lane.b32.xlu1 %v6236_v13, %s8137_s30 }
 0x360   :  { %v6238_v14 = vpop.eup %6237 }
 0x361   :  { %v768_v6 = vadd.f32 1.0, %v6238_v14  ;;  %v995_v14 = vld [vmem:[%s8118_s13 + $0x78] sm:$0xff] }
 0x363   :  { %6239 = vrcp.f32 %v768_v6  ;;  %v7022_v6 = vpack.c.bf16 %v990_v12, %v988_v11 }
 0x365   :  { %5882 = vmatpush1.bf16.msra.mxu1 %v7022_v6 }
 0x36d   :  { %v6240_v22 = vpop.eup %6239 }
 0x36e   :  { %v771_v23 = vsub.f32 1.0, %v6240_v22 }
 0x370   :  { %773 = vrot.lane.b32.xlu1 %v771_v23, %s8139_s0  ;;  %v7034_v23 = vpack.c.bf16 %v994_v17, %v992_v16  ;;  %v1673_v16 = vrot.slane %v6878_v7, %v7132_v3  ;;  %v1677_v17 = vrot.slane %v6878_v7, %v1676_v8 }
 0x3d1   :  { %v779_v25 = vpop.permute.xlu1 %778 }
 0x3d2   :  { %v781_v26 = vmul.f32 %v6240_v22, %v779_v25  ;;  %v7041_v25 = vld [vmem:[%s8118_s13 + $0x88] sm:$0xf] }
 0x3d4   :  { %783 = vrot.lane.b32.xlu1 %v781_v26, %s8139_s0  ;;  %v977_v26 = vld [vmem:[%s8117_s12 + $0x8] sm:$0xff]  ;;  %s8167_s0 = smov 94  }
 0x3e2   :  { %v774_v29 = vpop.permute.xlu1 %773 }
 0x3e3   :  { %v776_v30 = vmul.f32 %v6236_v13, %v774_v29  ;;  %v993_v13 = vld [vmem:[%s8118_s13 + $0x68] sm:$0xff]  ;;  %v978_v29 = vld [vmem:[%s8117_s12 + $0x10] sm:$0x7] }
 0x3e4   :  { %v7025_v15 = vpack.c.bf16 %v995_v14, %v993_v13 }
 0x3e6   :  { %5884 = vmatprep.subr.bf16.mxu1 %v7025_v15 }
 0x3e7   :  { %5886 = vmatpush1.bf16.msra.mxu1 %v7034_v23 }
 0x3e8   :  { %5115 = vmatprep.subr.msk.mxu1 %vm332_vm0, %v7041_v25 }
 0x446   :  { %v784_v31 = vpop.permute.xlu1 %783 }
 0x447   :  { %v786_v33 = vadd.f32 %v784_v31, %v776_v30  ;;  %v7061_v30 = vld [vmem:[%s8118_s13 + $0x80] sm:$0xf] }
 0x448   :  { %5116 = vmatpush1.msk.msra.mxu1 %vm332_vm0, %v7061_v30 }
 0x449   :  { %5535 = vmatmul.mubr.msk.f32.vlgmr.msra.gmra.mrb[6].mxu0 %vm685_vm15, %v786_v33  ;;  %1071 = vmatmul.mubr.f32.vlgmr.msra.gmra.mrb[10].mxu1 %v6421_v5 }
 0x44a   :  { %5895 = vmatpush3.bf16.msra.mxu0 %v6840_v45  ;;  %5543 = vmatprep.mubr.msk.f32.mxu0 %vm6423_vm2, %v6421_v5 }
 0x44b   :  { %5541 = vmatprep.subr.mxu0 %v6421_v5  ;;  %1150 = vmatprep.mubr.f32.mxu1 %v6421_v5 }
 0x44e   :  { %5542 = vmatpush3.msk.msra.mxu0 %vm689_vm10, %v6848_v46 }
 0x44f   :  { %5544 = vmatmul.mubr.msk.f32.vlgmr.msra.gmra.mrb[8].mxu0 %vm685_vm15, %v786_v33  ;;  %5896 = vmatprep.subr.bf16.mxu0 %v6425_v32  ;;  %v7065_v33 = vpack.c.bf16 %v978_v29, %v976_v28 }
 0x450   :  { %5899 = vmatpush3.bf16.msk.msra.mxu0 %vm6903_vm14, %v6907_v21  ;;  %5550 = vmatprep.mubr.msk.f32.mxu0 %vm6423_vm2, %v6421_v5 }
 0x451   :  { %5900 = vmatprep.subr.bf16.mxu0 %v6425_v32 }
 0x51c   :  { %v941_v36 = vpop.f32.mrb[6].mxu0 }
 0x51d   :  { %v942_v38 = vadd.f32 %v941_v36, %v865_v27  ;;  %v5536_v39 = vpop.f32.mrb[7].mxu0  ;;  %v979_v27 = vld [vmem:[%s8117_s12 + $0x18] sm:$0x7] }
 0x51e   :  { %v7063_v31 = vpack.c.bf16 %v979_v27, %v977_v26 }
 0x51f   :  { %v952_v42 = vadd.f32 %v6948_v37, %v942_v38 }
 0x520   :  { %5889 = vmatprep.subr.msk.bf16.mxu1 %vm6903_vm14, %v7063_v31 }
 0x521   :  { %6241 = vtanh.f32 %v952_v42  ;;  %v5114_v43 = vmul.f32 -1.442695, %v952_v42  ;;  %5892 = vmatpush1.bf16.msk.msra.mxu1 %vm6903_vm14, %v7065_v33 }
 0x522   :  { %v1286_v47 = vpop.f32.mrb[8].mxu0  ;;  %5925 = vmatprep.subr.bf16.mxu1 %v6425_v32 }
 0x523   :  { %6243 = vpow2.f32 %v5114_v43  ;;  %v1290_v48 = vadd.f32 %v1286_v47, %v1219_v44  ;;  %v5545_v49 = vpop.f32.mrb[9].mxu0 }
 0x525   :  { %6245 = vtanh.f32 %v1290_v48  ;;  %v5123_v36 = vmul.f32 -1.442695, %v1290_v48 }
 0x52b   :  { %v6958_v50 = vpop.eup %6241 }
 0x52c   :  { %967 = vrot.lane.b32.xlu1 %v6958_v50, %s8135_s2  ;;  %s8169_s2 = smov 11  }
 0x52d   :  { %v6244_v51 = vpop.eup %6243 }
 0x52e   :  { %v957_v52 = vadd.f32 1.0, %v6244_v51 }
 0x52f   :  { %v6962_v53 = vpop.eup %6245 }
 0x530   :  { %6247 = vrcp.f32 %v957_v52  ;;  %1305 = vrot.lane.b32.xlu1 %v6962_v53, %s8137_s30  ;;  %s8168_s30 = smov 17  }
 0x531   :  { %6249 = vpow2.f32 %v5123_v36 }
 0x53a   :  { %v6248_v19 = vpop.eup %6247 }
 0x53b   :  { %v960_v22 = vsub.f32 1.0, %v6248_v19  ;;  %v6250_v38 = vpop.eup %6249 }
 0x53c   :  { %v1295_v39 = vadd.f32 1.0, %v6250_v38 }
 0x53d   :  { %962 = vrot.lane.b32.xlu0 %v960_v22, %s8145_s6  ;;  %v1678_v22 = vsel %vm676_vm11, %v1677_v17, %v1673_v16 }
 0x53e   :  { %6251 = vrcp.f32 %v1295_v39 }
 0x548   :  { %v6252_v42 = vpop.eup %6251 }
 0x549   :  { %v1298_v43 = vsub.f32 1.0, %v6252_v42 }
 0x59e   :  { %v968_v40 = vpop.permute.xlu1 %967 }
 0x59f   :  { %v970_v41 = vmul.f32 %v6248_v19, %v968_v40 }
 0x5a1   :  { %972 = vrot.lane.b32.xlu1 %v970_v41, %s8145_s6 }
 0x5a2   :  { %v1306_v44 = vpop.permute.xlu1 %1305 }
 0x5a3   :  { %v1308_v47 = vmul.f32 %v6252_v42, %v1306_v44 }
 0x5a5   :  { %1300 = vrot.lane.b32.xlu1 %v1298_v43, %s8167_s0 }
 0x5a9   :  { %1310 = vrot.lane.b32.xlu1 %v1308_v47, %s8167_s0 }
 0x5af   :  { %v963_v49 = vpop.permute.xlu0 %962 }
 0x5b0   :  { %v965_v51 = vmul.f32 %v6958_v50, %v963_v49 }
 0x613   :  { %v973_v48 = vpop.permute.xlu1 %972 }
 0x614   :  { %v975_v52 = vadd.f32 %v973_v48, %v965_v51 }
 0x616   :  { %5119 = vmatmul.mubr.msk.f32.vlgmr.msra.gmra.mrb[10].mxu1 %vm792_vm1, %v975_v52  ;;  %5551 = vmatmul.mubr.msk.f32.vlgmr.msra.gmra.mrb[10].mxu0 %vm792_vm1, %v975_v52 }
 0x617   :  { %v1301_v54 = vpop.permute.xlu1 %1300  ;;  %5902 = vmatpush3.bf16.msra.mxu0 %v6897_v18  ;;  %5927 = vmatpush3.bf16.msra.mxu1 %v6840_v45 }
 0x618   :  { %5557 = vmatprep.subr.mxu0 %v6421_v5  ;;  %5566 = vmatprep.subr.mxu1 %v6421_v5  ;;  %v1303_v50 = vmul.f32 %v6962_v53, %v1301_v54  ;;  %v1157_v53 = vld [vmem:[%s8119_s14] sm:$0x3] }
 0x619   :  { %5559 = vmatprep.mubr.msk.f32.mxu0 %vm6423_vm2, %v6421_v5  ;;  %5568 = vmatprep.mubr.msk.f32.mxu1 %vm6423_vm2, %v6421_v5  ;;  %v7126_v58 = vrot.slane %v1157_v53, %v6873_v1  ;;  %v7129_v59 = vrot.slane %v1157_v53, %v6942_v34 }
 0x61b   :  { %v1311_v55 = vpop.permute.xlu1 %1310  ;;  %5558 = vmatpush3.msk.msra.mxu0 %vm689_vm10, %v6920_v24  ;;  %5567 = vmatpush3.msk.msra.mxu1 %vm689_vm10, %v6848_v46 }
 0x61c   :  { %v1313_v56 = vadd.f32 %v1311_v55, %v1303_v50  ;;  %5904 = vmatprep.subr.bf16.mxu0 %v6975_v57  ;;  %5928 = vmatprep.subr.bf16.mxu1 %v6425_v32 }
 0x61e   :  { %5560 = vmatmul.mubr.msk.f32.vlgmr.msra.gmra.mrb[12].mxu0 %vm685_vm15, %v1313_v56  ;;  %5569 = vmatmul.mubr.msk.f32.vlgmr.msra.gmra.mrb[12].mxu1 %vm685_vm15, %v1313_v56 }
 0x61f   :  { %5906 = vmatpush1.bf16.msra.mxu0 %v6986_v61  ;;  %1548 = vmatprep.mubr.f32.mxu0 %v6421_v5 }
 0x620   :  { %5908 = vmatprep.subr.bf16.mxu0 %v6988_v62  ;;  %5931 = vmatpush3.bf16.msk.msra.mxu1 %vm6903_vm14, %v6907_v21 }
 0x621   :  { %5575 = vmatprep.mubr.msk.f32.mxu1 %vm6423_vm2, %v6421_v5  ;;  %5932 = vmatprep.subr.bf16.mxu1 %v6425_v32 }
 0x623   :  { %5910 = vmatpush1.bf16.msra.mxu0 %v7004_v9 }
 0x624   :  { %5912 = vmatprep.subr.bf16.mxu0 %v7007_v10 }
 0x627   :  { %5914 = vmatpush1.bf16.msra.mxu0 %v7022_v6 }
 0x628   :  { %5916 = vmatprep.subr.bf16.mxu0 %v7025_v15 }
 0x62b   :  { %5918 = vmatpush1.bf16.msra.mxu0 %v7034_v23 }
 0x62c   :  { %5129 = vmatprep.subr.msk.mxu0 %vm332_vm0, %v7041_v25 }
 0x62f   :  { %5130 = vmatpush1.msk.msra.mxu0 %vm332_vm0, %v7061_v30 }
 0x630   :  { %5921 = vmatprep.subr.msk.bf16.mxu0 %vm6903_vm14, %v7063_v31 }
 0x6e9   :  { %v1152_v60 = vpop.f32.mrb[10].mxu1  ;;  %v1380_v0 = vpop.f32.mrb[10].mxu0 }
 0x6ea   :  { %v1169_v4 = vadd.f32 %v7126_v58, %v1152_v60  ;;  %v1154_v11 = vpop.f32.mrb[11].mxu1  ;;  %v5552_v12 = vpop.f32.mrb[11].mxu0 }
 0x6eb   :  { %v1170_v13 = vadd.f32 %v7129_v59, %v1154_v11 }
 0x6ec   :  { %6253 = vtanh.f32 %v1169_v4 }
 0x6ed   :  { %v5120_v14 = vmul.f32 -1.442695, %v1170_v13 }
 0x6ef   :  { %6255 = vpow2.f32 %v5120_v14 }
 0x6f0   :  { %6257 = vtanh.f32 %v1170_v13 }
 0x6f1   :  { %v1453_v19 = vpop.f32.mrb[12].mxu0  ;;  %v1745_v26 = vpop.f32.mrb[12].mxu1 }
 0x6f2   :  { %v1454_v27 = vadd.f32 %v1453_v19, %v1380_v0  ;;  %v1749_v28 = vadd.f32 %v1745_v26, %v1678_v22  ;;  %v5561_v29 = vpop.f32.mrb[13].mxu0  ;;  %v5570_v36 = vpop.f32.mrb[13].mxu1 }
 0x6f4   :  { %v1457_v38 = vadd.f32 %v6948_v37, %v1454_v27  ;;  %6259 = vtanh.f32 %v1749_v28  ;;  %v5138_v39 = vmul.f32 -1.442695, %v1749_v28 }
 0x6f6   :  { %v6254_v40 = vpop.eup %6253  ;;  %6261 = vtanh.f32 %v1457_v38  ;;  %v5128_v41 = vmul.f32 -1.442695, %v1457_v38 }
 0x6f7   :  { %6263 = vpow2.f32 %v5138_v39  ;;  %1187 = vrot.lane.b32.xlu1 %v6254_v40, %s8143_s26 }
 0x6f8   :  { %6265 = vpow2.f32 %v5128_v41 }
 0x6f9   :  { %v6256_v42 = vpop.eup %6255 }
 0x6fa   :  { %v6258_v43 = vpop.eup %6257  ;;  %v1176_v44 = vadd.f32 1.0, %v6256_v42 }
 0x6fb   :  { %1189 = vrot.lane.b32.xlu1 %v6258_v43, %s8143_s26 }
 0x6fc   :  { %6267 = vrcp.f32 %v1176_v44  ;;  %v2136_v44 = vsub.s32 7, %v6867_v63 }
 0x6fe   :  { %v6260_v47 = vpop.eup %6259 }
 0x6ff   :  { %1764 = vrot.lane.b32.xlu1 %v6260_v47, %s8168_s30 }
 0x700   :  { %v6262_v49 = vpop.eup %6261 }
 0x701   :  { %v6264_v51 = vpop.eup %6263  ;;  %1472 = vrot.lane.b32.xlu0 %v6262_v49, %s8169_s2 }
 0x702   :  { %v6266_v48 = vpop.eup %6265  ;;  %v1754_v54 = vadd.f32 1.0, %v6264_v51 }
 0x703   :  { %v1462_v52 = vadd.f32 1.0, %v6266_v48 }
 0x705   :  { %6269 = vrcp.f32 %v1462_v52 }
 0x706   :  { %v6268_v50 = vpop.eup %6267  ;;  %6271 = vrcp.f32 %v1754_v54  ;;  %v2137_v54 = vrot.slane %v6878_v7, %v2136_v44 }
 0x707   :  { %v1179_v55 = vsub.f32 1.0, %v6268_v50 }
 0x709   :  { %1181 = vrot.lane.b32.xlu0 %v1179_v55, %s8141_s27 }
 0x70f   :  { %v6270_v56 = vpop.eup %6269 }
 0x710   :  { %v1465_v53 = vsub.f32 1.0, %v6270_v56  ;;  %v6272_v60 = vpop.eup %6271 }
 0x711   :  { %v1757_v0 = vsub.f32 1.0, %v6272_v60 }
 0x712   :  { %1467 = vrot.lane.b32.xlu0 %v1465_v53, %s8145_s6 }
 0x716   :  { %1759 = vrot.lane.b32.xlu0 %v1757_v0, %s8167_s0 }
 0x769   :  { %v1188_v4 = vpop.permute.xlu1 %1187 }
 0x76d   :  { %v1190_v11 = vpop.permute.xlu1 %1189 }
 0x76e   :  { %v1191_v12 = vsel %vm549_vm9, %v1188_v4, %v1190_v11 }
 0x76f   :  { %v1193_v13 = vmul.f32 %v6268_v50, %v1191_v12 }
 0x771   :  { %1195 = vrot.lane.b32.xlu1 %v1193_v13, %s8141_s27  ;;  %v1765_v17 = vpop.permute.xlu1 %1764 }
 0x772   :  { %v1767_v19 = vmul.f32 %v6272_v60, %v1765_v17 }
 0x773   :  { %v1473_v14 = vpop.permute.xlu0 %1472 }
 0x774   :  { %v1475_v16 = vmul.f32 %v6270_v56, %v1473_v14 }
 0x776   :  { %1477 = vrot.lane.b32.xlu1 %v1475_v16, %s8145_s6 }
 0x77a   :  { %1769 = vrot.lane.b32.xlu1 %v1767_v19, %s8167_s0 }
 0x77b   :  { %v1182_v22 = vpop.permute.xlu0 %1181 }
 0x77c   :  { %v1184_v26 = vmul.f32 %v6254_v40, %v1182_v22 }
 0x784   :  { %v1468_v27 = vpop.permute.xlu0 %1467 }
 0x785   :  { %v1470_v36 = vmul.f32 %v6262_v49, %v1468_v27 }
 0x788   :  { %v1760_v38 = vpop.permute.xlu0 %1759 }
 0x789   :  { %v1762_v40 = vmul.f32 %v6260_v47, %v1760_v38 }
 0x7e3   :  { %v1196_v28 = vpop.permute.xlu1 %1195 }
 0x7e4   :  { %v7156_v29 = vadd.f32 %v1196_v28, %v1184_v26 }
 0x7e6   :  { %5131 = vmatmul.mubr.msk.f32.vlgmr.msra.gmra.mrb[14].mxu0 %vm549_vm9, %v7156_v29 }
 0x7e7   :  { %5924 = vmatpush1.bf16.msk.msra.mxu0 %vm6903_vm14, %v7065_v33  ;;  %1622 = vmatprep.mubr.f32.mxu0 %v6421_v5 }
 0x7e8   :  { %v1478_v39 = vpop.permute.xlu1 %1477  ;;  %5957 = vmatprep.subr.bf16.mxu0 %v6425_v32 }
 0x7e9   :  { %v1480_v41 = vadd.f32 %v1478_v39, %v1470_v36 }
 0x7eb   :  { %5576 = vmatmul.mubr.msk.f32.vlgmr.msra.gmra.mrb[14].mxu1 %vm792_vm1, %v1480_v41 }
 0x7ec   :  { %5934 = vmatpush3.bf16.msra.mxu1 %v6897_v18  ;;  %v1770_v42 = vpop.permute.xlu1 %1769  ;;  %5584 = vmatprep.mubr.msk.f32.mxu1 %vm6423_vm2, %v6421_v5 }
 0x7ed   :  { %v1772_v43 = vadd.f32 %v1770_v42, %v1762_v40  ;;  %5582 = vmatprep.subr.mxu1 %v6421_v5 }
 0x7ee   :  { %5134 = vmatmul.mubr.msk.f32.vlgmr.msra.gmra.mrb[14].mxu0 %vm792_vm1, %v1480_v41 }
 0x7ef   :  { %5959 = vmatpush3.bf16.msra.mxu0 %v6840_v45  ;;  %5593 = vmatprep.mubr.msk.f32.mxu0 %vm6423_vm2, %v6421_v5 }
 0x7f0   :  { %5583 = vmatpush3.msk.msra.mxu1 %vm689_vm10, %v6920_v24  ;;  %5591 = vmatprep.subr.mxu0 %v6421_v5 }
 0x7f1   :  { %5585 = vmatmul.mubr.msk.f32.vlgmr.msra.gmra.mrb[16].mxu1 %vm685_vm15, %v1772_v43  ;;  %5936 = vmatprep.subr.bf16.mxu1 %v6975_v57 }
 0x7f2   :  { %5938 = vmatpush1.bf16.msra.mxu1 %v6986_v61  ;;  %2007 = vmatprep.mubr.f32.mxu1 %v6421_v5 }
 0x7f3   :  { %5592 = vmatpush3.msk.msra.mxu0 %vm689_vm10, %v6848_v46  ;;  %5940 = vmatprep.subr.bf16.mxu1 %v6988_v62 }
 0x7f4   :  { %5594 = vmatmul.mubr.msk.f32.vlgmr.msra.gmra.mrb[16].mxu0 %vm685_vm15, %v1772_v43  ;;  %5960 = vmatprep.subr.bf16.mxu0 %v6425_v32 }
 0x7f5   :  { %5963 = vmatpush3.bf16.msk.msra.mxu0 %vm6903_vm14, %v6907_v21  ;;  %5600 = vmatprep.mubr.msk.f32.mxu0 %vm6423_vm2, %v6421_v5  ;;  %v7205_v21 = vsub.s32 3, %v6867_v63  ;;  %v4760_v63 = vld [vmem:[%s8122_s17 + $0xa0] sm:$0xff] }
 0x7f6   :  { %5942 = vmatpush1.bf16.msra.mxu1 %v7004_v9  ;;  %5964 = vmatprep.subr.bf16.mxu0 %v6425_v32 }
 0x7f7   :  { %5944 = vmatprep.subr.bf16.mxu1 %v7007_v10  ;;  %v2133_v52 = vrot.slane %v6878_v7, %v7205_v21 }
 0x7f9   :  { %v2138_v0 = vsel %vm676_vm11, %v2137_v54, %v2133_v52 }
 0x7fa   :  { %5946 = vmatpush1.bf16.msra.mxu1 %v7022_v6 }
 0x7fb   :  { %5948 = vmatprep.subr.bf16.mxu1 %v7025_v15 }
 0x7fe   :  { %5950 = vmatpush1.bf16.msra.mxu1 %v7034_v23 }
 0x7ff   :  { %5144 = vmatprep.subr.msk.mxu1 %vm332_vm0, %v7041_v25 }
 0x802   :  { %5145 = vmatpush1.msk.msra.mxu1 %vm332_vm0, %v7061_v30 }
 0x803   :  { %5953 = vmatprep.subr.msk.bf16.mxu1 %vm6903_vm14, %v7063_v31 }
 0x8be   :  { %v1839_v45 = vpop.f32.mrb[14].mxu1 }
 0x8bf   :  { %v5577_v46 = vpop.f32.mrb[15].mxu1 }
 0x8c1   :  { %v1624_v47 = vpop.f32.mrb[14].mxu0 }
 0x8c2   :  { %v1629_v49 = vadd.f32 %v1624_v47, %v7126_v58  ;;  %v1626_v51 = vpop.f32.mrb[15].mxu0 }
 0x8c3   :  { %v1630_v48 = vadd.f32 %v1626_v51, %v7129_v59 }
 0x8c4   :  { %6273 = vtanh.f32 %v1629_v49  ;;  %v1912_v50 = vpop.f32.mrb[16].mxu1 }
 0x8c5   :  { %6275 = vtanh.f32 %v1630_v48  ;;  %v5135_v55 = vmul.f32 -1.442695, %v1630_v48  ;;  %v1913_v56 = vadd.f32 %v1912_v50, %v1839_v45  ;;  %v5586_v53 = vpop.f32.mrb[17].mxu1 }
 0x8c7   :  { %6277 = vpow2.f32 %v5135_v55  ;;  %v1916_v60 = vadd.f32 %v6948_v37, %v1913_v56  ;;  %v2205_v4 = vpop.f32.mrb[16].mxu0  ;;  %v1203_v56 = vrot.slane %v7156_v29, %v6873_v1 }
 0x8c8   :  { %v2209_v11 = vadd.f32 %v2205_v4, %v2138_v0  ;;  %v5595_v12 = vpop.f32.mrb[17].mxu0  ;;  %v1209_v0 = vrot.slane %v7156_v29, %v6942_v34 }
 0x8c9   :  { %6279 = vtanh.f32 %v1916_v60  ;;  %v5143_v13 = vmul.f32 -1.442695, %v1916_v60 }
 0x8ca   :  { %6281 = vtanh.f32 %v2209_v11  ;;  %v5153_v14 = vmul.f32 -1.442695, %v2209_v11  ;;  %v1204_v11 = vsel %vm1199_vm3, %v1203_v56, 0.0 }
 0x8cb   :  { %6283 = vpow2.f32 %v5143_v13 }
 0x8cc   :  { %6285 = vpow2.f32 %v5153_v14 }
 0x8ce   :  { %v6274_v7 = vpop.eup %6273 }
 0x8cf   :  { %v6276_v16 = vpop.eup %6275  ;;  %1647 = vrot.lane.b32.xlu0 %v6274_v7, %s8143_s26 }
 0x8d0   :  { %1649 = vrot.lane.b32.xlu1 %v6276_v16, %s8143_s26 }
 0x8d1   :  { %v6278_v17 = vpop.eup %6277 }
 0x8d2   :  { %v1636_v19 = vadd.f32 1.0, %v6278_v17 }
 0x8d3   :  { %v6280_v22 = vpop.eup %6279 }
 0x8d4   :  { %v6282_v26 = vpop.eup %6281  ;;  %6287 = vrcp.f32 %v1636_v19  ;;  %1931 = vrot.lane.b32.xlu0 %v6280_v22, %s8169_s2 }
 0x8d5   :  { %v6284_v27 = vpop.eup %6283  ;;  %2224 = vrot.lane.b32.xlu1 %v6282_v26, %s8168_s30 }
 0x8d6   :  { %v6286_v28 = vpop.eup %6285  ;;  %v1921_v36 = vadd.f32 1.0, %v6284_v27 }
 0x8d7   :  { %v2214_v38 = vadd.f32 1.0, %v6286_v28 }
 0x8d8   :  { %6289 = vrcp.f32 %v1921_v36 }
 0x8d9   :  { %6291 = vrcp.f32 %v2214_v38 }
 0x8de   :  { %v6288_v39 = vpop.eup %6287 }
 0x8df   :  { %v1639_v41 = vsub.f32 1.0, %v6288_v39 }
 0x8e1   :  { %1641 = vrot.lane.b32.xlu0 %v1639_v41, %s8141_s27 }
 0x8e2   :  { %v6290_v40 = vpop.eup %6289 }
 0x8e3   :  { %v1924_v42 = vsub.f32 1.0, %v6290_v40  ;;  %v6292_v43 = vpop.eup %6291 }
 0x8e4   :  { %v2217_v45 = vsub.f32 1.0, %v6292_v43 }
 0x8e5   :  { %1926 = vrot.lane.b32.xlu0 %v1924_v42, %s8145_s6 }
 0x8e9   :  { %2219 = vrot.lane.b32.xlu0 %v2217_v45, %s8167_s0 }
 0x941   :  { %v1648_v46 = vpop.permute.xlu0 %1647 }
 0x942   :  { %v1650_v47 = vpop.permute.xlu1 %1649 }
 0x943   :  { %v1651_v49 = vsel %vm549_vm9, %v1648_v46, %v1650_v47 }
 0x944   :  { %v1653_v51 = vmul.f32 %v6288_v39, %v1651_v49 }
 0x946   :  { %v1932_v48 = vpop.permute.xlu0 %1931  ;;  %1655 = vrot.lane.b32.xlu1 %v1653_v51, %s8141_s27 }
 0x947   :  { %v1934_v52 = vmul.f32 %v6290_v40, %v1932_v48  ;;  %v2225_v54 = vpop.permute.xlu1 %2224 }
 0x948   :  { %v2227_v50 = vmul.f32 %v6292_v43, %v2225_v54 }
 0x94a   :  { %1936 = vrot.lane.b32.xlu1 %v1934_v52, %s8145_s6 }
 0x94e   :  { %2229 = vrot.lane.b32.xlu1 %v2227_v50, %s8167_s0 }
 0x953   :  { %v1642_v55 = vpop.permute.xlu0 %1641 }
 0x954   :  { %v1644_v60 = vmul.f32 %v6274_v7, %v1642_v55  ;;  %v1210_v7 = vsel %vm1205_vm4, %v1209_v0, %v1204_v11 }
 0x957   :  { %v1927_v53 = vpop.permute.xlu0 %1926 }
 0x958   :  { %v1929_v13 = vmul.f32 %v6280_v22, %v1927_v53 }
 0x95b   :  { %v2220_v29 = vpop.permute.xlu0 %2219 }
 0x95c   :  { %v2222_v28 = vmul.f32 %v6282_v26, %v2220_v29 }
 0x9b8   :  { %v1656_v4 = vpop.permute.xlu1 %1655 }
 0x9b9   :  { %v1658_v12 = vadd.f32 %v1656_v4, %v1644_v60 }
 0x9bb   :  { %v1662_v14 = vrot.slane %v1658_v12, %v6873_v1  ;;  %v1668_v16 = vrot.slane %v1658_v12, %v6942_v34  ;;  %5146 = vmatmul.mubr.msk.f32.vlgmr.msra.gmra.mrb[18].mxu1 %vm549_vm9, %v1658_v12 }
 0x9bc   :  { %5956 = vmatpush1.bf16.msk.msra.mxu1 %vm6903_vm14, %v7065_v33  ;;  %v1937_v17 = vpop.permute.xlu1 %1936  ;;  %2081 = vmatprep.mubr.f32.mxu1 %v6421_v5 }
 0x9bd   :  { %v1663_v19 = vsel %vm676_vm11, %v1662_v14, %v1210_v7  ;;  %v1939_v22 = vadd.f32 %v1937_v17, %v1929_v13  ;;  %5989 = vmatprep.subr.bf16.mxu1 %v6425_v32 }
 0x9be   :  { %v7252_v27 = vsel %vm1664_vm5, %v1668_v16, %v1663_v19 }
 0x9bf   :  { %5601 = vmatmul.mubr.msk.f32.vlgmr.msra.gmra.mrb[18].mxu0 %vm792_vm1, %v1939_v22 }
 0x9c0   :  { %5966 = vmatpush3.bf16.msra.mxu0 %v6897_v18  ;;  %v2230_v36 = vpop.permute.xlu1 %2229  ;;  %5609 = vmatprep.mubr.msk.f32.mxu0 %vm6423_vm2, %v6421_v5 }
 0x9c1   :  { %v7258_v38 = vadd.f32 %v2230_v36, %v2222_v28  ;;  %5607 = vmatprep.subr.mxu0 %v6421_v5 }
 0x9c3   :  { %5149 = vmatmul.mubr.msk.f32.vlgmr.msra.gmra.mrb[18].mxu1 %vm792_vm1, %v1939_v22 }
 0x9c4   :  { %5608 = vmatpush3.msk.msra.mxu0 %vm689_vm10, %v6920_v24  ;;  %5630 = vmatprep.mubr.msk.f32.mxu1 %vm6423_vm2, %v6421_v5 }
 0x9c5   :  { %5610 = vmatmul.mubr.msk.f32.vlgmr.msra.gmra.mrb[20].mxu0 %vm685_vm15, %v7258_v38  ;;  %5968 = vmatprep.subr.bf16.mxu0 %v6975_v57 }
 0x9c6   :  { %5970 = vmatpush1.bf16.msra.mxu0 %v6986_v61  ;;  %2467 = vmatprep.mubr.f32.mxu0 %v6421_v5 }
 0x9c7   :  { %5972 = vmatprep.subr.bf16.mxu0 %v6988_v62 }
 0x9ca   :  { %5974 = vmatpush1.bf16.msra.mxu0 %v7004_v9 }
 0x9cb   :  { %5976 = vmatprep.subr.bf16.mxu0 %v7007_v10 }
 0x9ce   :  { %5978 = vmatpush1.bf16.msra.mxu0 %v7022_v6 }
 0x9cf   :  { %5980 = vmatprep.subr.bf16.mxu0 %v7025_v15 }
 0x9d2   :  { %5982 = vmatpush1.bf16.msra.mxu0 %v7034_v23 }
 0x9d3   :  { %5159 = vmatprep.subr.msk.mxu0 %vm332_vm0, %v7041_v25 }
 0x9d6   :  { %5160 = vmatpush1.msk.msra.mxu0 %vm332_vm0, %v7061_v30 }
 0x9d7   :  { %5985 = vmatprep.subr.msk.bf16.mxu0 %vm6903_vm14, %v7063_v31 }
 0xa92   :  { %v2299_v18 = vpop.f32.mrb[18].mxu0 }
 0xa93   :  { %v5602_v24 = vpop.f32.mrb[19].mxu0 }
 0xa96   :  { %v2083_v57 = vpop.f32.mrb[18].mxu1 }
 0xa97   :  { %v2088_v61 = vadd.f32 %v2083_v57, %v7126_v58  ;;  %v2085_v62 = vpop.f32.mrb[19].mxu1 }
 0xa98   :  { %v2089_v9 = vadd.f32 %v2085_v62, %v7129_v59  ;;  %v2372_v10 = vpop.f32.mrb[20].mxu0 }
 0xa99   :  { %6293 = vtanh.f32 %v2088_v61  ;;  %v2373_v6 = vadd.f32 %v2372_v10, %v2299_v18  ;;  %v5611_v15 = vpop.f32.mrb[21].mxu0 }
 0xa9a   :  { %6295 = vtanh.f32 %v2089_v9  ;;  %v5150_v23 = vmul.f32 -1.442695, %v2089_v9 }
 0xa9b   :  { %v2376_v25 = vadd.f32 %v6948_v37, %v2373_v6 }
 0xa9c   :  { %6297 = vpow2.f32 %v5150_v23 }
 0xa9d   :  { %6299 = vtanh.f32 %v2376_v25  ;;  %v5158_v30 = vmul.f32 -1.442695, %v2376_v25 }
 0xa9f   :  { %6301 = vpow2.f32 %v5158_v30 }
 0xaa3   :  { %v6294_v31 = vpop.eup %6293 }
 0xaa4   :  { %v6296_v26 = vpop.eup %6295  ;;  %2106 = vrot.lane.b32.xlu0 %v6294_v31, %s8143_s26 }
 0xaa5   :  { %2108 = vrot.lane.b32.xlu1 %v6296_v26, %s8143_s26 }
 0xaa6   :  { %v6298_v39 = vpop.eup %6297 }
 0xaa7   :  { %v6300_v41 = vpop.eup %6299  ;;  %v2095_v40 = vadd.f32 1.0, %v6298_v39 }
 0xaa8   :  { %2391 = vrot.lane.b32.xlu0 %v6300_v41, %s8169_s2 }
 0xaa9   :  { %v6302_v42 = vpop.eup %6301  ;;  %6303 = vrcp.f32 %v2095_v40  ;;  %v5170_v40 = vld [vmem:[%s8161_s29 + $0x48] sm:$0xff] }
 0xaaa   :  { %v2381_v43 = vadd.f32 1.0, %v6302_v42  ;;  %v5171_v42 = vld [vmem:[%s8161_s29 + $0x50] sm:$0xff] }
 0xaac   :  { %6305 = vrcp.f32 %v2381_v43  ;;  %v5990_v43 = vpack.c.bf16 %v5171_v42, %v5170_v40  ;;  %v5189_v40 = vld [vmem:[%s8114_s9 + $0x20] sm:$0xff] }
 0xaae   :  { %5991 = vmatpush3.bf16.msra.mxu1 %v5990_v43 }
 0xaaf   :  { %5992 = vmatprep.subr.bf16.mxu1 %v6425_v32 }
 0xab3   :  { %v6304_v37 = vpop.eup %6303 }
 0xab4   :  { %v2098_v45 = vsub.f32 1.0, %v6304_v37 }
 0xab6   :  { %v6306_v46 = vpop.eup %6305  ;;  %2100 = vrot.lane.b32.xlu1 %v2098_v45, %s8141_s27  ;;  %v5173_v45 = vld [vmem:[%s8161_s29 + $0x60] sm:$0xff] }
 0xab7   :  { %v2384_v47 = vsub.f32 1.0, %v6306_v46 }
 0xaba   :  { %2386 = vrot.lane.b32.xlu1 %v2384_v47, %s8145_s6  ;;  %v5174_v47 = vld [vmem:[%s8161_s29 + $0x68] sm:$0xff] }
 0xb16   :  { %v2107_v49 = vpop.permute.xlu0 %2106 }
 0xb17   :  { %v2109_v51 = vpop.permute.xlu1 %2108 }
 0xb18   :  { %v2110_v48 = vsel %vm549_vm9, %v2107_v49, %v2109_v51  ;;  %v5175_v49 = vld [vmem:[%s8161_s29 + $0x70] sm:$0xff] }
 0xb19   :  { %v2112_v52 = vmul.f32 %v6304_v37, %v2110_v48  ;;  %v5172_v37 = vld [vmem:[%s8161_s29 + $0x58] sm:$0xff]  ;;  %v5996_v51 = vpack.c.bf16 %v5175_v49, %v5174_v47 }
 0xb1a   :  { %v2392_v54 = vpop.permute.xlu0 %2391  ;;  %v5176_v48 = vld [vmem:[%s8161_s29 + $0x78] sm:$0xff] }
 0xb1b   :  { %2114 = vrot.lane.b32.xlu0 %v2112_v52, %s8141_s27  ;;  %v2394_v50 = vmul.f32 %v6306_v46, %v2392_v54  ;;  %v5993_v46 = vpack.c.bf16 %v5173_v45, %v5172_v37  ;;  %v5177_v52 = vld [vmem:[%s8161_s29 + $0x80] sm:$0xff]  ;;  %v7439_v45 = vld [vmem:[%s8114_s9 + $0x28] sm:$0x1] }
 0xb1c   :  { %v5999_v54 = vpack.c.bf16 %v5177_v52, %v5176_v48 }
 0xb1d   :  { %5994 = vmatpush3.bf16.msra.mxu1 %v5993_v46 }
 0xb1e   :  { %5995 = vmatprep.subr.bf16.mxu1 %v6425_v32 }
 0xb1f   :  { %2396 = vrot.lane.b32.xlu0 %v2394_v50, %s8145_s6  ;;  %v5178_v50 = vld [vmem:[%s8161_s29 + $0x88] sm:$0xf]  ;;  %s6433_s29 = smov 28  }
 0xb21   :  { %5997 = vmatpush3.bf16.msra.mxu1 %v5996_v51 }
 0xb22   :  { %5998 = vmatprep.subr.bf16.mxu1 %v6425_v32 }
 0xb25   :  { %6000 = vmatpush3.bf16.msra.mxu1 %v5999_v54 }
 0xb26   :  { %5628 = vmatprep.subr.mxu1 %v6421_v5 }
 0xb28   :  { %v2101_v55 = vpop.permute.xlu1 %2100 }
 0xb29   :  { %v2103_v56 = vmul.f32 %v6294_v31, %v2101_v55  ;;  %v5183_v55 = vld [vmem:[%s8162_s25 + $0x18] sm:$0xff]  ;;  %5629 = vmatpush3.msk.msra.mxu1 %vm332_vm0, %v5178_v50 }
 0xb2a   :  { %6004 = vmatprep.subr.bf16.mxu1 %v6425_v32 }
 0xb2c   :  { %v2387_v11 = vpop.permute.xlu1 %2386 }
 0xb2d   :  { %v2389_v16 = vmul.f32 %v6300_v41, %v2387_v11 }
 0xb8d   :  { %v2115_v53 = vpop.permute.xlu0 %2114 }
 0xb8e   :  { %v2117_v60 = vadd.f32 %v2115_v53, %v2103_v56  ;;  %v5184_v56 = vld [vmem:[%s8162_s25 + $0x20] sm:$0xff] }
 0xb8f   :  { %v7374_v53 = vpack.c.bf16 %v5184_v56, %v5183_v55  ;;  %v7463_v56 = vld [vmem:[%s8116_s11 + $0x1] ss:$0 sm:$0xff] }
 0xb90   :  { %v2122_v0 = vrot.slane %v2117_v60, %v6873_v1  ;;  %v2128_v4 = vrot.slane %v2117_v60, %v6942_v34  ;;  %5161 = vmatmul.mubr.msk.f32.vlgmr.msra.gmra.mrb[22].mxu0 %vm549_vm9, %v2117_v60  ;;  %v7382_v60 = vld [vmem:[%s8162_s25 + $0x28] sm:$0x1] }
 0xb91   :  { %5988 = vmatpush1.bf16.msk.msra.mxu0 %vm6903_vm14, %v7065_v33  ;;  %2541 = vmatprep.mubr.f32.mxu0 %v6421_v5  ;;  %v2397_v13 = vpop.permute.xlu0 %2396 }
 0xb92   :  { %v2123_v12 = vsel %vm2118_vm6, %v2122_v0, %v7252_v27  ;;  %6001 = vmatprep.subr.bf16.mxu0 %v6425_v32  ;;  %v7310_v7 = vadd.f32 %v2397_v13, %v2389_v16 }
 0xb93   :  { %v2129_v14 = vsel %vm2124_vm7, %v2128_v4, %v2123_v12 }
 0xb98   :  { %5164 = vmatmul.mubr.msk.f32.vlgmr.msra.gmra.mrb[22].mxu0 %vm792_vm1, %v7310_v7 }
 0xb99   :  { %5639 = vmatprep.mubr.msk.f32.mxu0 %vm6423_vm2, %v6421_v5  ;;  %6003 = vmatpush3.bf16.msra.mxu0 %v7374_v53 }
 0xb9a   :  { %5637 = vmatprep.subr.mxu0 %v6421_v5 }
 0xb9d   :  { %5638 = vmatpush3.msk.msra.mxu0 %vm689_vm10, %v7382_v60 }
 0xb9e   :  { %5640 = vmatmul.mubr.f32.vlgmr.msra.gmra.mrb[24].mxu0 %v6421_v5 }
 0xb9f   :  { %3121 = vmatprep.mubr.f32.mxu0 %v6421_v5 }
 0xc6b   :  { %v2543_v33 = vpop.f32.mrb[22].mxu0 }
 0xc6c   :  { %v2548_v29 = vadd.f32 %v2543_v33, %v7126_v58  ;;  %v2545_v17 = vpop.f32.mrb[23].mxu0 }
 0xc6d   :  { %v2549_v19 = vadd.f32 %v2545_v17, %v7129_v59  ;;  %v5167_v17 = vld [vmem:[%s8163_s28 + $0x1] ss:$0 sm:$0xff] }
 0xc6e   :  { %6307 = vtanh.f32 %v2548_v29 }
 0xc6f   :  { %6309 = vtanh.f32 %v2549_v19  ;;  %v5165_v22 = vmul.f32 -1.442695, %v2549_v19 }
 0xc71   :  { %6311 = vpow2.f32 %v5165_v22  ;;  %v5169_v22 = vld [vmem:[%s8164_s3 + $0x1] ss:$0 sm:$0xff] }
 0xc78   :  { %v6308_v27 = vpop.eup %6307 }
 0xc79   :  { %v6310_v28 = vpop.eup %6309  ;;  %2566 = vrot.lane.b32.xlu1 %v6308_v27, %s8143_s26 }
 0xc7a   :  { %2568 = vrot.lane.b32.xlu0 %v6310_v28, %s8143_s26 }
 0xc7b   :  { %v6312_v36 = vpop.eup %6311 }
 0xc7c   :  { %v2555_v18 = vadd.f32 1.0, %v6312_v36  ;;  %v2811_v36 = vpop.f32.mrb[24].mxu0 }
 0xc7e   :  { %6313 = vrcp.f32 %v2555_v18  ;;  %v5641_v18 = vpop.f32.mrb[25].mxu0 }
 0xc88   :  { %v6314_v24 = vpop.eup %6313 }
 0xc89   :  { %v2558_v57 = vsub.f32 1.0, %v6314_v24 }
 0xc8b   :  { %2560 = vrot.lane.b32.xlu1 %v2558_v57, %s8141_s27 }
 0xceb   :  { %v2567_v58 = vpop.permute.xlu1 %2566 }
 0xcec   :  { %v2569_v61 = vpop.permute.xlu0 %2568 }
 0xced   :  { %v2570_v59 = vsel %vm549_vm9, %v2567_v58, %v2569_v61 }
 0xcee   :  { %v2572_v62 = vmul.f32 %v6314_v24, %v2570_v59  ;;  %v5180_v24 = vld [vmem:[%s8113_s8 + $0x1] ss:$0 sm:$0xff] }
 0xcf0   :  { %2574 = vrot.lane.b32.xlu0 %v2572_v62, %s8141_s27 }
 0xcfd   :  { %v2561_v9 = vpop.permute.xlu1 %2560 }
 0xcfe   :  { %v2563_v10 = vmul.f32 %v6308_v27, %v2561_v9 }
 0xd62   :  { %v2575_v6 = vpop.permute.xlu0 %2574 }
 0xd63   :  { %v7323_v15 = vadd.f32 %v2575_v6, %v2563_v10 }
 0xd65   :  { %v2582_v23 = vrot.slane %v7323_v15, %v6873_v1  ;;  %v2588_v25 = vrot.slane %v7323_v15, %v6942_v34 }
 0xd67   :  { %v2583_v30 = vsel %vm2578_vm8, %v2582_v23, %v2129_v14 }
 0xd68   :  { %v2589_v31 = vsel %vm2584_vm12, %v2588_v25, %v2583_v30 }
 0xd69   :  { %v2603_v26 = vsel %vm549_vm9, %v2589_v31, 0.0  ;;  %v2602_v39 = vmul.f32 %v2589_v31, %v2589_v31 }
 0xd6a   :  { %2604 = vadd.xlane.f32.xlu1 %v2603_v26  ;;  %v5192_v26 = vld [vmem:[%s8115_s10 + $0x18] sm:$0x7] }
 0xd6b   :  { %v2606_v41 = vsel %vm549_vm9, %v2602_v39, 0.0  ;;  %v5188_v39 = vld [vmem:[%s8114_s9 + $0x18] sm:$0xff]  ;;  %s5066_s9 = sshll.u32 %s6434_s1, 4  ;;  %s5067_s9 = int_to_ptr.vmem [resolvable:$true] %s5066_s9 }
 0xd6c   :  { %2607 = vadd.xlane.f32.xlu0 %v2606_v41  ;;  %v7427_v42 = vpack.c.bf16 %v5189_v40, %v5188_v39  ;;  %s6397_s21 = scalar_lea.vmem %s5067_s9, 128  ;;  %p6402_p1 = scmp.lt.s32.totalorder %s5067_s9, %s5067_s9 }
 0xd6d   :  { %p6398_p0 = scmp.ne.s32.totalorder %s5067_s9, %s6397_s21  ;;  %p6403_p2 = scmp.lt.s32.totalorder %s6397_s21, %s6397_s21 }
 0xd6f   :  { %p6404_p3 = por %p6403_p2, %p6402_p1 }
 0xd71   :  { %p6405_p4 = pnand %p6404_p3, %p6398_p0 }
 0xdf7   :  { %v2605_v0 = vpop.xlane.xlu1 %2604 }
 0xdf8   :  { %v2609_v4 = vmul.f32 0.014705882, %v2605_v0 }
 0xdf9   :  { %v2608_v11 = vpop.xlane.xlu0 %2607 }
 0xdfa   :  { %v2612_v12 = vmul.f32 %v2609_v4, %v2609_v4  ;;  %v2610_v13 = vmul.f32 0.014705882, %v2608_v11  ;;  %v2611_v33 = vsub.f32 %v2589_v31, %v2609_v4  ;;  %v5191_v31 = vld [vmem:[%s8115_s10 + $0x10] sm:$0xff] }
 0xdfb   :  { %v7419_v41 = vpack.c.bf16 %v5192_v26, %v5191_v31  ;;  %v5212_v31 = vld [vmem:[%s8118_s13 + $0xd8] sm:$0xff]  ;;  %v5214_v26 = vld [vmem:[%s8118_s13 + $0xe8] sm:$0xff] }
 0xdfc   :  { %v2613_v14 = vsub.f32 %v2610_v13, %v2612_v12  ;;  %v7522_v40 = vpack.c.bf16 %v5214_v26, %v5212_v31 }
 0xdfe   :  { %v2614_v16 = vadd.f32 1e-05, %v2613_v14 }
 0xe00   :  { %6315 = vrsqrt.f32 %v2614_v16 }
 0xe0a   :  { %v6316_v29 = vpop.eup %6315 }
 0xe0b   :  { %v2616_v19 = vmul.f32 %v6316_v29, %v2611_v33 }
 0xe0d   :  { %v2625_v27 = vmul.f32 %v5167_v17, %v2616_v19 }
 0xe0f   :  { %v2634_v28 = vadd.f32 %v5169_v22, %v2625_v27 }
 0xe11   :  { %5631 = vmatmul.mubr.msk.f32.vlgmr.msra.gmra.mrb[20].mxu1 %vm549_vm9, %v2634_v28 }
 0xe12   :  { %5646 = vmatprep.mubr.msk.f32.mxu1 %vm6423_vm2, %v6421_v5  ;;  %6007 = vmatpush3.bf16.msk.msra.mxu1 %vm6903_vm14, %v7419_v41 }
 0xe13   :  { %6008 = vmatprep.subr.bf16.mxu1 %v6425_v32 }
 0xe15   :  { %5647 = vmatmul.mubr.f32.vlgmr.msra.gmra.mrb[22].mxu1 %v6421_v5 }
 0xe16   :  { %6010 = vmatpush3.bf16.msra.mxu1 %v7427_v42  ;;  %5655 = vmatprep.mubr.msk.f32.mxu1 %vm6423_vm2, %v6421_v5 }
 0xe17   :  { %5653 = vmatprep.subr.mxu1 %v6421_v5 }
 0xe1a   :  { %5654 = vmatpush3.msk.msra.mxu1 %vm689_vm10, %v7439_v45 }
 0xe1b   :  { %6033 = vmatprep.subr.bf16.mxu1 %v6425_v32 }
 0xee4   :  { %v2725_v57 = vpop.f32.mrb[20].mxu1 }
 0xee5   :  { %v7401_v58 = vadd.f32 %v5180_v24, %v2725_v57  ;;  %v5632_v61 = vpop.f32.mrb[21].mxu1  ;;  %v5204_v24 = vld [vmem:[%s8118_s13 + $0x98] sm:$0xff]  ;;  %v5206_v57 = vld [vmem:[%s8118_s13 + $0xa8] sm:$0xff] }
 0xee6   :  { %v5203_v61 = vld [vmem:[%s8118_s13 + $0x90] sm:$0xff] }
 0xee7   :  { %v2732_v59 = vrot.slane %v7401_v58, %v6873_v1  ;;  %v2736_v62 = vrot.slane %v7401_v58, %v6876_v2  ;;  %v3264_v11 = vrot.slane %v7401_v58, %v6942_v34  ;;  %v3268_v12 = vrot.slane %v7401_v58, %v1217_v35 }
 0xee8   :  { %v2915_v49 = vpop.f32.mrb[22].mxu1 }
 0xee9   :  { %v2737_v9 = vsel %vm676_vm11, %v2736_v62, %v2732_v59  ;;  %v5648_v51 = vpop.f32.mrb[23].mxu1  ;;  %v3269_v16 = vsel %vm676_vm11, %v3268_v12, %v3264_v11  ;;  %v7490_v59 = vpack.c.bf16 %v5206_v57, %v5204_v24  ;;  %v5205_v62 = vld [vmem:[%s8118_s13 + $0xa0] sm:$0xff]  ;;  %v7557_v11 = vld [vmem:[%s8118_s13 + $0x118] sm:$0xf]  ;;  %v5200_v12 = vld [vmem:[%s8117_s12 + $0x28] sm:$0xff] }
 0xeea   :  { %v2815_v10 = vadd.f32 %v2811_v36, %v2737_v9  ;;  %v5208_v9 = vld [vmem:[%s8118_s13 + $0xb8] sm:$0xff] }
 0xeeb   :  { %6012 = vmatprep.subr.bf16.mxu0 %v7490_v59 }
 0xeec   :  { %6317 = vtanh.f32 %v2815_v10  ;;  %v5187_v6 = vmul.f32 -1.442695, %v2815_v10  ;;  %v5210_v10 = vld [vmem:[%s8118_s13 + $0xc8] sm:$0xff] }
 0xeee   :  { %6319 = vpow2.f32 %v5187_v6  ;;  %v7501_v6 = vpack.c.bf16 %v5205_v62, %v5203_v61 }
 0xef0   :  { %6014 = vmatpush1.bf16.msra.mxu0 %v7501_v6 }
 0xef6   :  { %v6318_v23 = vpop.eup %6317 }
 0xef7   :  { %2830 = vrot.lane.b32.xlu0 %v6318_v23, %s8168_s30 }
 0xef8   :  { %v6320_v25 = vpop.eup %6319 }
 0xef9   :  { %v2820_v30 = vadd.f32 1.0, %v6320_v25  ;;  %v5207_v25 = vld [vmem:[%s8118_s13 + $0xb0] sm:$0xff] }
 0xefb   :  { %6321 = vrcp.f32 %v2820_v30  ;;  %v5209_v30 = vld [vmem:[%s8118_s13 + $0xc0] sm:$0xff] }
 0xefc   :  { %v7519_v39 = vpack.c.bf16 %v5209_v30, %v5207_v25 }
 0xf05   :  { %v6322_v43 = vpop.eup %6321 }
 0xf06   :  { %v2823_v37 = vsub.f32 1.0, %v6322_v43 }
 0xf08   :  { %2825 = vrot.lane.b32.xlu1 %v2823_v37, %s8167_s0  ;;  %v5213_v37 = vld [vmem:[%s8118_s13 + $0xe0] sm:$0xff] }
 0xf69   :  { %v2831_v46 = vpop.permute.xlu0 %2830 }
 0xf6a   :  { %v2833_v47 = vmul.f32 %v6322_v43, %v2831_v46  ;;  %v5211_v43 = vld [vmem:[%s8118_s13 + $0xd0] sm:$0xff] }
 0xf6c   :  { %2835 = vrot.lane.b32.xlu1 %v2833_v47, %s8167_s0  ;;  %v5216_v47 = vld [vmem:[%s8118_s13 + $0xf8] sm:$0xff] }
 0xf7a   :  { %v2826_v48 = vpop.permute.xlu1 %2825 }
 0xf7b   :  { %v2828_v52 = vmul.f32 %v6318_v23, %v2826_v48  ;;  %v7503_v23 = vpack.c.bf16 %v5210_v10, %v5208_v9  ;;  %v7537_v48 = vpack.c.bf16 %v5213_v37, %v5211_v43 }
 0xf7d   :  { %6016 = vmatprep.subr.bf16.mxu0 %v7503_v23 }
 0xf7e   :  { %6018 = vmatpush1.bf16.msra.mxu0 %v7519_v39 }
 0xf7f   :  { %6020 = vmatprep.subr.bf16.mxu0 %v7522_v40 }
 0xf82   :  { %6022 = vmatpush1.bf16.msra.mxu0 %v7537_v48 }
 0xfde   :  { %v2836_v54 = vpop.permute.xlu1 %2835 }
 0xfdf   :  { %v2838_v50 = vadd.f32 %v2836_v54, %v2828_v52  ;;  %v5215_v54 = vld [vmem:[%s8118_s13 + $0xf0] sm:$0xff] }
 0xfe1   :  { %5656 = vmatmul.mubr.msk.f32.vlgmr.msra.gmra.mrb[24].mxu1 %vm685_vm15, %v2838_v50 }
 0xfe2   :  { %6035 = vmatpush3.bf16.msra.mxu1 %v7374_v53  ;;  %5664 = vmatprep.mubr.msk.f32.mxu1 %vm6423_vm2, %v6421_v5 }
 0xfe3   :  { %5662 = vmatprep.subr.mxu1 %v6421_v5 }
 0xfe6   :  { %5663 = vmatpush3.msk.msra.mxu1 %vm689_vm10, %v7382_v60 }
 0xfe7   :  { %5665 = vmatmul.mubr.msk.f32.vlgmr.msra.gmra.mrb[26].mxu1 %vm685_vm15, %v2838_v50  ;;  %6036 = vmatprep.subr.bf16.mxu1 %v6425_v32  ;;  %v5217_v50 = vld [vmem:[%s8118_s13 + $0x100] sm:$0xff] }
 0xfe8   :  { %6039 = vmatpush3.bf16.msk.msra.mxu1 %vm6903_vm14, %v7419_v41  ;;  %5671 = vmatprep.mubr.msk.f32.mxu1 %vm6423_vm2, %v6421_v5 }
 0xfe9   :  { %6040 = vmatprep.subr.bf16.mxu1 %v6425_v32 }
0x10b4   :  { %v2991_v55 = vpop.f32.mrb[24].mxu1 }
0x10b5   :  { %v2992_v0 = vadd.f32 %v2991_v55, %v2915_v49  ;;  %v5657_v4 = vpop.f32.mrb[25].mxu1  ;;  %v5218_v49 = vld [vmem:[%s8118_s13 + $0x108] sm:$0xff] }
0x10b6   :  { %v7541_v52 = vpack.c.bf16 %v5218_v49, %v5216_v47  ;;  %v7550_v4 = vpack.c.bf16 %v5217_v50, %v5215_v54  ;;  %v3722_v49 = vrot.slane %v7401_v58, %v7132_v3 }
0x10b7   :  { %v3003_v13 = vadd.f32 %v7463_v56, %v2992_v0 }
0x10b8   :  { %6024 = vmatprep.subr.bf16.mxu0 %v7541_v52 }
0x10b9   :  { %6323 = vtanh.f32 %v3003_v13  ;;  %v5198_v14 = vmul.f32 -1.442695, %v3003_v13  ;;  %v5202_v13 = vld [vmem:[%s8117_s12 + $0x38] sm:$0x7]  ;;  %6026 = vmatpush1.bf16.msra.mxu0 %v7550_v4 }
0x10ba   :  { %v3336_v33 = vpop.f32.mrb[26].mxu1  ;;  %5221 = vmatprep.subr.msk.mxu0 %vm332_vm0, %v7557_v11 }
0x10bb   :  { %6325 = vpow2.f32 %v5198_v14  ;;  %v3340_v29 = vadd.f32 %v3336_v33, %v3269_v16  ;;  %v5666_v17 = vpop.f32.mrb[27].mxu1  ;;  %v5199_v14 = vld [vmem:[%s8117_s12 + $0x20] sm:$0xff]  ;;  %v5201_v16 = vld [vmem:[%s8117_s12 + $0x30] sm:$0x7] }
0x10bc   :  { %v7577_v33 = vld [vmem:[%s8118_s13 + $0x110] sm:$0xf]  ;;  %v7581_v17 = vpack.c.bf16 %v5201_v16, %v5199_v14 }
0x10bd   :  { %6327 = vtanh.f32 %v3340_v29  ;;  %v5230_v19 = vmul.f32 -1.442695, %v3340_v29  ;;  %v7579_v29 = vpack.c.bf16 %v5202_v13, %v5200_v12  ;;  %5222 = vmatpush1.msk.msra.mxu0 %vm332_vm0, %v7577_v33 }
0x10be   :  { %3122 = vmatmul.mubr.f32.vlgmr.msra.gmra.mrb[26].mxu0 %v6421_v5 }
0x10bf   :  { %6329 = vpow2.f32 %v5230_v19  ;;  %6029 = vmatprep.subr.msk.bf16.mxu0 %vm6903_vm14, %v7579_v29  ;;  %3201 = vmatprep.mubr.f32.mxu0 %v6421_v5 }
0x10c0   :  { %6032 = vmatpush1.bf16.msk.msra.mxu0 %vm6903_vm14, %v7581_v17 }
0x10c1   :  { %6065 = vmatprep.subr.bf16.mxu0 %v6425_v32 }
0x10c3   :  { %v7473_v22 = vpop.eup %6323 }
0x10c4   :  { %3018 = vrot.lane.b32.xlu0 %v7473_v22, %s8169_s2 }
0x10c5   :  { %v6326_v35 = vpop.eup %6325 }
0x10c6   :  { %v3008_v27 = vadd.f32 1.0, %v6326_v35 }
0x10c7   :  { %v7477_v28 = vpop.eup %6327 }
0x10c8   :  { %6331 = vrcp.f32 %v3008_v27  ;;  %3355 = vrot.lane.b32.xlu1 %v7477_v28, %s8168_s30 }
0x10c9   :  { %v6330_v36 = vpop.eup %6329 }
0x10ca   :  { %v3345_v18 = vadd.f32 1.0, %v6330_v36 }
0x10cc   :  { %6333 = vrcp.f32 %v3345_v18 }
0x10d2   :  { %v6332_v46 = vpop.eup %6331 }
0x10d3   :  { %v3011_v51 = vsub.f32 1.0, %v6332_v46 }
0x10d5   :  { %3013 = vrot.lane.b32.xlu0 %v3011_v51, %s8170_s24  ;;  %v3726_v51 = vrot.slane %v7401_v58, %v1676_v8 }
0x10d6   :  { %v6334_v55 = vpop.eup %6333 }
0x10d7   :  { %v3348_v0 = vsub.f32 1.0, %v6334_v55 }
0x10d9   :  { %3350 = vrot.lane.b32.xlu0 %v3348_v0, %s8167_s0 }
0x1136   :  { %v3019_v19 = vpop.permute.xlu0 %3018 }
0x1137   :  { %v3021_v35 = vmul.f32 %v6332_v46, %v3019_v19 }
0x1139   :  { %3023 = vrot.lane.b32.xlu1 %v3021_v35, %s8170_s24 }
0x113a   :  { %v3356_v27 = vpop.permute.xlu1 %3355 }
0x113b   :  { %v3358_v36 = vmul.f32 %v6334_v55, %v3356_v27  ;;  %v3727_v55 = vsel %vm676_vm11, %v3726_v51, %v3722_v49 }
0x113d   :  { %3360 = vrot.lane.b32.xlu1 %v3358_v36, %s8167_s0 }
0x1147   :  { %v3014_v18 = vpop.permute.xlu0 %3013 }
0x1148   :  { %v3016_v24 = vmul.f32 %v7473_v22, %v3014_v18  ;;  %v5226_v22 = vld [vmem:[%s8119_s14 + $0x2] sm:$0x3]  ;;  %s8171_s14 = smov 68  }
0x1149   :  { %v7644_v30 = vrot.slane %v5226_v22, %v6942_v34 }
0x114b   :  { %v3351_v57 = vpop.permute.xlu0 %3350 }
0x114c   :  { %v3353_v9 = vmul.f32 %v7477_v28, %v3351_v57  ;;  %v7641_v28 = vrot.slane %v5226_v22, %v6873_v1 }
0x11ab   :  { %v3024_v61 = vpop.permute.xlu1 %3023 }
0x11ac   :  { %v3026_v62 = vadd.f32 %v3024_v61, %v3016_v24 }
0x11ae   :  { %5225 = vmatmul.mubr.msk.f32.vlgmr.msra.gmra.mrb[26].mxu0 %vm792_vm1, %v3026_v62  ;;  %5672 = vmatmul.mubr.msk.f32.vlgmr.msra.gmra.mrb[28].mxu1 %vm792_vm1, %v3026_v62 }
0x11af   :  { %6042 = vmatpush3.bf16.msra.mxu1 %v7427_v42  ;;  %6067 = vmatpush3.bf16.msra.mxu0 %v7374_v53  ;;  %v3361_v10 = vpop.permute.xlu1 %3360 }
0x11b0   :  { %v3363_v25 = vadd.f32 %v3361_v10, %v3353_v9  ;;  %5678 = vmatprep.subr.mxu1 %v6421_v5  ;;  %5687 = vmatprep.subr.mxu0 %v6421_v5 }
0x11b1   :  { %5680 = vmatprep.mubr.msk.f32.mxu1 %vm6423_vm2, %v6421_v5  ;;  %5689 = vmatprep.mubr.msk.f32.mxu0 %vm6423_vm2, %v6421_v5 }
0x11b3   :  { %5679 = vmatpush3.msk.msra.mxu1 %vm689_vm10, %v7439_v45  ;;  %5688 = vmatpush3.msk.msra.mxu0 %vm689_vm10, %v7382_v60 }
0x11b4   :  { %5681 = vmatmul.mubr.msk.f32.vlgmr.msra.gmra.mrb[30].mxu1 %vm685_vm15, %v3363_v25  ;;  %5690 = vmatmul.mubr.msk.f32.vlgmr.msra.gmra.mrb[28].mxu0 %vm685_vm15, %v3363_v25 }
0x11b5   :  { %6044 = vmatprep.subr.bf16.mxu1 %v7490_v59  ;;  %3598 = vmatprep.mubr.f32.mxu1 %v6421_v5 }
0x11b6   :  { %6046 = vmatpush1.bf16.msra.mxu1 %v7501_v6  ;;  %6068 = vmatprep.subr.bf16.mxu0 %v6425_v32 }
0x11b7   :  { %6048 = vmatprep.subr.bf16.mxu1 %v7503_v23  ;;  %6071 = vmatpush3.bf16.msk.msra.mxu0 %vm6903_vm14, %v7419_v41 }
0x11b8   :  { %5696 = vmatprep.mubr.msk.f32.mxu0 %vm6423_vm2, %v6421_v5  ;;  %6072 = vmatprep.subr.bf16.mxu0 %v6425_v32 }
0x11ba   :  { %6050 = vmatpush1.bf16.msra.mxu1 %v7519_v39 }
0x11bb   :  { %6052 = vmatprep.subr.bf16.mxu1 %v7522_v40 }
0x11be   :  { %6054 = vmatpush1.bf16.msra.mxu1 %v7537_v48 }
0x11bf   :  { %6056 = vmatprep.subr.bf16.mxu1 %v7541_v52 }
0x11c2   :  { %6058 = vmatpush1.bf16.msra.mxu1 %v7550_v4 }
0x11c3   :  { %5236 = vmatprep.subr.msk.mxu1 %vm332_vm0, %v7557_v11 }
0x11c6   :  { %5237 = vmatpush1.msk.msra.mxu1 %vm332_vm0, %v7577_v33 }
0x11c7   :  { %6061 = vmatprep.subr.msk.bf16.mxu1 %vm6903_vm14, %v7579_v29 }
0x1281   :  { %v3203_v31 = vpop.f32.mrb[26].mxu0  ;;  %v3430_v26 = vpop.f32.mrb[28].mxu1 }
0x1282   :  { %v3221_v43 = vadd.f32 %v7641_v28, %v3203_v31  ;;  %v3205_v37 = vpop.f32.mrb[27].mxu0  ;;  %v5673_v46 = vpop.f32.mrb[29].mxu1 }
0x1283   :  { %v3222_v47 = vadd.f32 %v7644_v30, %v3205_v37 }
0x1284   :  { %6335 = vtanh.f32 %v3221_v43 }
0x1285   :  { %6337 = vtanh.f32 %v3222_v47  ;;  %v5227_v54 = vmul.f32 -1.442695, %v3222_v47 }
0x1287   :  { %6339 = vpow2.f32 %v5227_v54  ;;  %v3503_v50 = vpop.f32.mrb[30].mxu1  ;;  %v3794_v0 = vpop.f32.mrb[28].mxu0 }
0x1288   :  { %v3504_v12 = vadd.f32 %v3503_v50, %v3430_v26  ;;  %v3798_v13 = vadd.f32 %v3794_v0, %v3727_v55  ;;  %v5682_v14 = vpop.f32.mrb[31].mxu1  ;;  %v5691_v16 = vpop.f32.mrb[29].mxu0 }
0x128a   :  { %v3507_v19 = vadd.f32 %v7463_v56, %v3504_v12  ;;  %6341 = vtanh.f32 %v3798_v13  ;;  %v5245_v35 = vmul.f32 -1.442695, %v3798_v13 }
0x128c   :  { %6343 = vtanh.f32 %v3507_v19  ;;  %v5235_v27 = vmul.f32 -1.442695, %v3507_v19 }
0x128d   :  { %6345 = vpow2.f32 %v5245_v35 }
0x128e   :  { %v6336_v8 = vpop.eup %6335  ;;  %6347 = vpow2.f32 %v5235_v27 }
0x128f   :  { %v6338_v36 = vpop.eup %6337  ;;  %3239 = vrot.lane.b32.xlu0 %v6336_v8, %s8171_s14 }
0x1290   :  { %3241 = vrot.lane.b32.xlu1 %v6338_v36, %s8171_s14 }
0x1291   :  { %v6340_v18 = vpop.eup %6339 }
0x1292   :  { %v3228_v24 = vadd.f32 1.0, %v6340_v18 }
0x1294   :  { %v6342_v57 = vpop.eup %6341  ;;  %6349 = vrcp.f32 %v3228_v24 }
0x1295   :  { %3813 = vrot.lane.b32.xlu1 %v6342_v57, %s8168_s30 }
0x1296   :  { %v6344_v61 = vpop.eup %6343 }
0x1297   :  { %v6346_v62 = vpop.eup %6345  ;;  %3522 = vrot.lane.b32.xlu0 %v6344_v61, %s8169_s2 }
0x1298   :  { %v6348_v9 = vpop.eup %6347  ;;  %v3803_v25 = vadd.f32 1.0, %v6346_v62 }
0x1299   :  { %v3512_v10 = vadd.f32 1.0, %v6348_v9 }
0x129b   :  { %6351 = vrcp.f32 %v3512_v10 }
0x129c   :  { %6353 = vrcp.f32 %v3803_v25  ;;  %v4180_v25 = vrot.slane %v7401_v58, %v7205_v21 }
0x129e   :  { %v6350_v22 = vpop.eup %6349 }
0x129f   :  { %v3231_v31 = vsub.f32 1.0, %v6350_v22 }
0x12a1   :  { %3233 = vrot.lane.b32.xlu0 %v3231_v31, %s8172_s7 }
0x12a5   :  { %v6352_v26 = vpop.eup %6351 }
0x12a6   :  { %v3515_v43 = vsub.f32 1.0, %v6352_v26  ;;  %v6354_v37 = vpop.eup %6353 }
0x12a7   :  { %v3806_v46 = vsub.f32 1.0, %v6354_v37 }
0x12a8   :  { %3517 = vrot.lane.b32.xlu0 %v3515_v43, %s8170_s24 }
0x12ac   :  { %3808 = vrot.lane.b32.xlu0 %v3806_v46, %s8167_s0 }
0x1301   :  { %v3240_v47 = vpop.permute.xlu0 %3239 }
0x1302   :  { %v3242_v49 = vpop.permute.xlu1 %3241 }
0x1303   :  { %v3243_v51 = vsel %vm549_vm9, %v3240_v47, %v3242_v49 }
0x1304   :  { %v3245_v54 = vmul.f32 %v6350_v22, %v3243_v51  ;;  %v4184_v22 = vrot.slane %v7401_v58, %v2136_v44 }
0x1306   :  { %3247 = vrot.lane.b32.xlu1 %v3245_v54, %s8172_s7  ;;  %v4185_v46 = vsel %vm676_vm11, %v4184_v22, %v4180_v25 }
0x1307   :  { %v3814_v0 = vpop.permute.xlu1 %3813 }
0x1308   :  { %v3816_v12 = vmul.f32 %v6354_v37, %v3814_v0 }
0x1309   :  { %v3523_v50 = vpop.permute.xlu0 %3522 }
0x130a   :  { %v3525_v55 = vmul.f32 %v6352_v26, %v3523_v50 }
0x130c   :  { %3527 = vrot.lane.b32.xlu1 %v3525_v55, %s8170_s24 }
0x1310   :  { %3818 = vrot.lane.b32.xlu1 %v3816_v12, %s8167_s0 }
0x1313   :  { %v3234_v13 = vpop.permute.xlu0 %3233 }
0x1314   :  { %v3236_v14 = vmul.f32 %v6336_v8, %v3234_v13 }
0x131a   :  { %v3518_v16 = vpop.permute.xlu0 %3517 }
0x131b   :  { %v3520_v27 = vmul.f32 %v6344_v61, %v3518_v16 }
0x131e   :  { %v3809_v36 = vpop.permute.xlu0 %3808 }
0x131f   :  { %v3811_v8 = vmul.f32 %v6342_v57, %v3809_v36 }
0x1378   :  { %v3248_v19 = vpop.permute.xlu1 %3247 }
0x1379   :  { %v7667_v35 = vadd.f32 %v3248_v19, %v3236_v14 }
0x137b   :  { %5238 = vmatmul.mubr.msk.f32.vlgmr.msra.gmra.mrb[32].mxu1 %vm549_vm9, %v7667_v35 }
0x137c   :  { %6064 = vmatpush1.bf16.msk.msra.mxu1 %vm6903_vm14, %v7581_v17  ;;  %3672 = vmatprep.mubr.f32.mxu1 %v6421_v5 }
0x137d   :  { %6097 = vmatprep.subr.bf16.mxu1 %v6425_v32 }
0x137e   :  { %v3528_v18 = vpop.permute.xlu1 %3527 }
0x137f   :  { %v3530_v24 = vadd.f32 %v3528_v18, %v3520_v27 }
0x1381   :  { %5697 = vmatmul.mubr.msk.f32.vlgmr.msra.gmra.mrb[30].mxu0 %vm792_vm1, %v3530_v24 }
0x1382   :  { %6074 = vmatpush3.bf16.msra.mxu0 %v7427_v42  ;;  %v3819_v62 = vpop.permute.xlu1 %3818  ;;  %5705 = vmatprep.mubr.msk.f32.mxu0 %vm6423_vm2, %v6421_v5 }
0x1383   :  { %v3821_v9 = vadd.f32 %v3819_v62, %v3811_v8  ;;  %5241 = vmatmul.mubr.msk.f32.vlgmr.msra.gmra.mrb[32].mxu1 %vm792_vm1, %v3530_v24  ;;  %5703 = vmatprep.subr.mxu0 %v6421_v5 }
0x1384   :  { %6099 = vmatpush3.bf16.msra.mxu1 %v7374_v53  ;;  %5714 = vmatprep.mubr.msk.f32.mxu1 %vm6423_vm2, %v6421_v5 }
0x1385   :  { %5712 = vmatprep.subr.mxu1 %v6421_v5 }
0x1386   :  { %5704 = vmatpush3.msk.msra.mxu0 %vm689_vm10, %v7439_v45 }
0x1387   :  { %5706 = vmatmul.mubr.msk.f32.vlgmr.msra.gmra.mrb[32].mxu0 %vm685_vm15, %v3821_v9  ;;  %6076 = vmatprep.subr.bf16.mxu0 %v7490_v59 }
0x1388   :  { %5713 = vmatpush3.msk.msra.mxu1 %vm689_vm10, %v7382_v60  ;;  %6078 = vmatpush1.bf16.msra.mxu0 %v7501_v6 }
0x1389   :  { %5715 = vmatmul.mubr.msk.f32.vlgmr.msra.gmra.mrb[34].mxu1 %vm685_vm15, %v3821_v9  ;;  %6080 = vmatprep.subr.bf16.mxu0 %v7503_v23 }
0x138a   :  { %4056 = vmatprep.mubr.f32.mxu0 %v6421_v5  ;;  %6100 = vmatprep.subr.bf16.mxu1 %v6425_v32 }
0x138b   :  { %6103 = vmatpush3.bf16.msk.msra.mxu1 %vm6903_vm14, %v7419_v41  ;;  %5721 = vmatprep.mubr.msk.f32.mxu1 %vm6423_vm2, %v6421_v5 }
0x138c   :  { %6082 = vmatpush1.bf16.msra.mxu0 %v7519_v39  ;;  %6104 = vmatprep.subr.bf16.mxu1 %v6425_v32 }
0x138d   :  { %6084 = vmatprep.subr.bf16.mxu0 %v7522_v40 }
0x1390   :  { %6086 = vmatpush1.bf16.msra.mxu0 %v7537_v48 }
0x1391   :  { %6088 = vmatprep.subr.bf16.mxu0 %v7541_v52 }
0x1394   :  { %6090 = vmatpush1.bf16.msra.mxu0 %v7550_v4 }
0x1395   :  { %5251 = vmatprep.subr.msk.mxu0 %vm332_vm0, %v7557_v11 }
0x1398   :  { %5252 = vmatpush1.msk.msra.mxu0 %vm332_vm0, %v7577_v33 }
0x1399   :  { %6093 = vmatprep.subr.msk.bf16.mxu0 %vm6903_vm14, %v7579_v29 }
0x1454   :  { %v3888_v53 = vpop.f32.mrb[30].mxu0 }
0x1455   :  { %v5698_v60 = vpop.f32.mrb[31].mxu0 }
0x1456   :  { %v3674_v41 = vpop.f32.mrb[32].mxu1 }
0x1457   :  { %v3679_v57 = vadd.f32 %v3674_v41, %v7641_v28  ;;  %v3676_v61 = vpop.f32.mrb[33].mxu1 }
0x1458   :  { %v3680_v10 = vadd.f32 %v3676_v61, %v7644_v30 }
0x1459   :  { %6355 = vtanh.f32 %v3679_v57 }
0x145a   :  { %6357 = vtanh.f32 %v3680_v10  ;;  %v5242_v31 = vmul.f32 -1.442695, %v3680_v10  ;;  %v3961_v26 = vpop.f32.mrb[32].mxu0 }
0x145b   :  { %v3962_v43 = vadd.f32 %v3961_v26, %v3888_v53  ;;  %v5707_v37 = vpop.f32.mrb[33].mxu0 }
0x145c   :  { %6359 = vpow2.f32 %v5242_v31  ;;  %v4252_v47 = vpop.f32.mrb[34].mxu1 }
0x145d   :  { %v3965_v49 = vadd.f32 %v7463_v56, %v3962_v43  ;;  %v4256_v51 = vadd.f32 %v4252_v47, %v4185_v46  ;;  %v5716_v54 = vpop.f32.mrb[35].mxu1  ;;  %v3254_v43 = vrot.slane %v7667_v35, %v6873_v1  ;;  %v3259_v47 = vrot.slane %v7667_v35, %v6942_v34 }
0x145f   :  { %6361 = vtanh.f32 %v3965_v49  ;;  %v5250_v50 = vmul.f32 -1.442695, %v3965_v49  ;;  %v5260_v55 = vmul.f32 -1.442695, %v4256_v51 }
0x1460   :  { %6363 = vtanh.f32 %v4256_v51  ;;  %v3255_v51 = vsel %vm1199_vm3, %v3254_v43, 0.0 }
0x1461   :  { %6365 = vpow2.f32 %v5250_v50 }
0x1462   :  { %6367 = vpow2.f32 %v5260_v55 }
0x1463   :  { %v6356_v44 = vpop.eup %6355 }
0x1464   :  { %v6358_v58 = vpop.eup %6357  ;;  %3697 = vrot.lane.b32.xlu0 %v6356_v44, %s8171_s14 }
0x1465   :  { %3699 = vrot.lane.b32.xlu1 %v6358_v58, %s8171_s14 }
0x1466   :  { %v6360_v0 = vpop.eup %6359 }
0x1467   :  { %v3686_v12 = vadd.f32 1.0, %v6360_v0  ;;  %v3260_v0 = vsel %vm1205_vm4, %v3259_v47, %v3255_v51 }
0x1469   :  { %v6362_v13 = vpop.eup %6361  ;;  %6369 = vrcp.f32 %v3686_v12 }
0x146a   :  { %v6364_v14 = vpop.eup %6363  ;;  %3980 = vrot.lane.b32.xlu0 %v6362_v13, %s8169_s2 }
0x146b   :  { %v6366_v16 = vpop.eup %6365  ;;  %4271 = vrot.lane.b32.xlu1 %v6364_v14, %s8168_s30 }
0x146c   :  { %v6368_v19 = vpop.eup %6367  ;;  %v3970_v27 = vadd.f32 1.0, %v6366_v16 }
0x146d   :  { %v4261_v36 = vadd.f32 1.0, %v6368_v19 }
0x146e   :  { %6371 = vrcp.f32 %v3970_v27 }
0x146f   :  { %6373 = vrcp.f32 %v4261_v36 }
0x1473   :  { %v6370_v18 = vpop.eup %6369 }
0x1474   :  { %v3689_v24 = vsub.f32 1.0, %v6370_v18 }
0x1476   :  { %3691 = vrot.lane.b32.xlu0 %v3689_v24, %s8172_s7 }
0x1478   :  { %v6372_v8 = vpop.eup %6371 }
0x1479   :  { %v3973_v62 = vsub.f32 1.0, %v6372_v8  ;;  %v6374_v9 = vpop.eup %6373 }
0x147a   :  { %v4264_v53 = vsub.f32 1.0, %v6374_v9 }
0x147b   :  { %3975 = vrot.lane.b32.xlu0 %v3973_v62, %s8170_s24 }
0x147f   :  { %4266 = vrot.lane.b32.xlu0 %v4264_v53, %s8167_s0 }
0x14d6   :  { %v3698_v60 = vpop.permute.xlu0 %3697 }
0x14d7   :  { %v3700_v41 = vpop.permute.xlu1 %3699 }
0x14d8   :  { %v3701_v57 = vsel %vm549_vm9, %v3698_v60, %v3700_v41 }
0x14d9   :  { %v3703_v61 = vmul.f32 %v6370_v18, %v3701_v57 }
0x14db   :  { %3705 = vrot.lane.b32.xlu1 %v3703_v61, %s8172_s7 }
0x14dc   :  { %v3981_v10 = vpop.permute.xlu0 %3980 }
0x14dd   :  { %v3983_v25 = vmul.f32 %v6372_v8, %v3981_v10  ;;  %v4272_v22 = vpop.permute.xlu1 %4271 }
0x14de   :  { %v4274_v31 = vmul.f32 %v6374_v9, %v4272_v22 }
0x14df   :  { %3985 = vrot.lane.b32.xlu1 %v3983_v25, %s8170_s24 }
0x14e3   :  { %4276 = vrot.lane.b32.xlu1 %v4274_v31, %s8167_s0 }
0x14e8   :  { %v3692_v26 = vpop.permute.xlu0 %3691 }
0x14e9   :  { %v3694_v46 = vmul.f32 %v6356_v44, %v3692_v26 }
0x14ed   :  { %v3976_v37 = vpop.permute.xlu0 %3975 }
0x14ee   :  { %v3978_v50 = vmul.f32 %v6362_v13, %v3976_v37 }
0x14f1   :  { %v4267_v12 = vpop.permute.xlu0 %4266 }
0x14f2   :  { %v4269_v19 = vmul.f32 %v6364_v14, %v4267_v12 }
0x154d   :  { %v3706_v49 = vpop.permute.xlu1 %3705 }
0x154e   :  { %v3708_v54 = vadd.f32 %v3706_v49, %v3694_v46 }
0x1550   :  { %v3712_v55 = vrot.slane %v3708_v54, %v6873_v1  ;;  %v3717_v58 = vrot.slane %v3708_v54, %v6942_v34  ;;  %5253 = vmatmul.mubr.msk.f32.vlgmr.msra.gmra.mrb[34].mxu0 %vm549_vm9, %v3708_v54 }
0x1551   :  { %6096 = vmatpush1.bf16.msk.msra.mxu0 %vm6903_vm14, %v7581_v17  ;;  %v3986_v35 = vpop.permute.xlu1 %3985  ;;  %4130 = vmatprep.mubr.f32.mxu0 %v6421_v5 }
0x1552   :  { %v3713_v44 = vsel %vm676_vm11, %v3712_v55, %v3260_v0  ;;  %v3988_v13 = vadd.f32 %v3986_v35, %v3978_v50  ;;  %6129 = vmatprep.subr.bf16.mxu0 %v6425_v32  ;;  %vm2600_vm11 = vcmask 779264  }
0x1553   :  { %v7756_v16 = vsel %vm1664_vm5, %v3717_v58, %v3713_v44 }
0x1554   :  { %5722 = vmatmul.mubr.msk.f32.vlgmr.msra.gmra.mrb[36].mxu1 %vm792_vm1, %v3988_v13 }
0x1555   :  { %6106 = vmatpush3.bf16.msra.mxu1 %v7427_v42  ;;  %v4277_v27 = vpop.permute.xlu1 %4276  ;;  %5730 = vmatprep.mubr.msk.f32.mxu1 %vm6423_vm2, %v6421_v5 }
0x1556   :  { %v7762_v36 = vadd.f32 %v4277_v27, %v4269_v19  ;;  %5728 = vmatprep.subr.mxu1 %v6421_v5 }
0x1558   :  { %5256 = vmatmul.mubr.msk.f32.vlgmr.msra.gmra.mrb[34].mxu0 %vm792_vm1, %v3988_v13 }
0x1559   :  { %5729 = vmatpush3.msk.msra.mxu1 %vm689_vm10, %v7439_v45  ;;  %5751 = vmatprep.mubr.msk.f32.mxu0 %vm6423_vm2, %v6421_v5  ;;  %vm2598_vm10 = vcmask 228352  }
0x155a   :  { %5731 = vmatmul.mubr.msk.f32.vlgmr.msra.gmra.mrb[38].mxu1 %vm685_vm15, %v7762_v36  ;;  %6108 = vmatprep.subr.bf16.mxu1 %v7490_v59 }
0x155b   :  { %6110 = vmatpush1.bf16.msra.mxu1 %v7501_v6  ;;  %4514 = vmatprep.mubr.f32.mxu1 %v6421_v5 }
0x155c   :  { %6112 = vmatprep.subr.bf16.mxu1 %v7503_v23 }
0x155f   :  { %6114 = vmatpush1.bf16.msra.mxu1 %v7519_v39 }
0x1560   :  { %6116 = vmatprep.subr.bf16.mxu1 %v7522_v40 }
0x1563   :  { %6118 = vmatpush1.bf16.msra.mxu1 %v7537_v48 }
0x1564   :  { %6120 = vmatprep.subr.bf16.mxu1 %v7541_v52 }
0x1567   :  { %6122 = vmatpush1.bf16.msra.mxu1 %v7550_v4 }
0x1568   :  { %5266 = vmatprep.subr.msk.mxu1 %vm332_vm0, %v7557_v11 }
0x156b   :  { %5267 = vmatpush1.msk.msra.mxu1 %vm332_vm0, %v7577_v33 }
0x156c   :  { %6125 = vmatprep.subr.msk.bf16.mxu1 %vm6903_vm14, %v7579_v29 }
0x1627   :  { %v4346_v42 = vpop.f32.mrb[36].mxu1 }
0x1628   :  { %v5723_v45 = vpop.f32.mrb[37].mxu1 }
0x162b   :  { %v4132_v59 = vpop.f32.mrb[34].mxu0 }
0x162c   :  { %v4137_v6 = vadd.f32 %v4132_v59, %v7641_v28  ;;  %v4134_v23 = vpop.f32.mrb[35].mxu0 }
0x162d   :  { %v4138_v39 = vadd.f32 %v4134_v23, %v7644_v30  ;;  %v4419_v40 = vpop.f32.mrb[38].mxu1 }
0x162e   :  { %6375 = vtanh.f32 %v4137_v6  ;;  %v4420_v48 = vadd.f32 %v4419_v40, %v4346_v42  ;;  %v5732_v52 = vpop.f32.mrb[39].mxu1  ;;  %v4649_v42 = vld [vmem:[%s8120_s15 + $0x10] sm:$0xff]  ;;  %v4650_v6 = vld [vmem:[%s8120_s15 + $0x18] sm:$0xff]  ;;  %v4651_v40 = vld [vmem:[%s8120_s15 + $0x20] sm:$0xff] }
0x162f   :  { %6377 = vtanh.f32 %v4138_v39  ;;  %v5257_v4 = vmul.f32 -1.442695, %v4138_v39  ;;  %v6133_v39 = vpack.c.bf16 %v4650_v6, %v4649_v42  ;;  %v4756_v42 = vld [vmem:[%s8122_s17 + $0x80] sm:$0xff] }
0x1630   :  { %v4423_v11 = vadd.f32 %v7463_v56, %v4420_v48  ;;  %v4652_v48 = vld [vmem:[%s8120_s15 + $0x28] sm:$0xff] }
0x1631   :  { %6379 = vpow2.f32 %v5257_v4  ;;  %v6136_v52 = vpack.c.bf16 %v4652_v48, %v4651_v40  ;;  %v4653_v4 = vld [vmem:[%s8120_s15 + $0x30] sm:$0xff] }
0x1632   :  { %6381 = vtanh.f32 %v4423_v11  ;;  %v5265_v33 = vmul.f32 -1.442695, %v4423_v11  ;;  %v4654_v11 = vld [vmem:[%s8120_s15 + $0x38] sm:$0xff]  ;;  %v4750_v48 = vld [vmem:[%s8122_s17 + $0x50] sm:$0xff] }
0x1634   :  { %6383 = vpow2.f32 %v5265_v33  ;;  %v6139_v33 = vpack.c.bf16 %v4654_v11, %v4653_v4  ;;  %v4761_v11 = vld [vmem:[%s8122_s17 + $0xa8] sm:$0xff] }
0x1638   :  { %v6376_v29 = vpop.eup %6375 }
0x1639   :  { %v6378_v14 = vpop.eup %6377  ;;  %4155 = vrot.lane.b32.xlu0 %v6376_v29, %s8171_s14 }
0x163a   :  { %4157 = vrot.lane.b32.xlu1 %v6378_v14, %s8171_s14 }
0x163b   :  { %v6380_v18 = vpop.eup %6379 }
0x163c   :  { %v6382_v24 = vpop.eup %6381  ;;  %v4144_v8 = vadd.f32 1.0, %v6380_v18 }
0x163d   :  { %4438 = vrot.lane.b32.xlu0 %v6382_v24, %s8169_s2 }
0x163e   :  { %v6384_v62 = vpop.eup %6383  ;;  %6385 = vrcp.f32 %v4144_v8 }
0x163f   :  { %v4428_v9 = vadd.f32 1.0, %v6384_v62 }
0x1641   :  { %6387 = vrcp.f32 %v4428_v9 }
0x1648   :  { %v6386_v56 = vpop.eup %6385 }
0x1649   :  { %v4147_v53 = vsub.f32 1.0, %v6386_v56 }
0x164b   :  { %v6388_v60 = vpop.eup %6387  ;;  %4149 = vrot.lane.b32.xlu1 %v4147_v53, %s8172_s7  ;;  %v4741_v53 = vld [vmem:[%s8122_s17 + $0x8] sm:$0xff] }
0x164c   :  { %v4431_v41 = vsub.f32 1.0, %v6388_v60 }
0x164f   :  { %4433 = vrot.lane.b32.xlu1 %v4431_v41, %s8170_s24 }
0x16ab   :  { %v4156_v57 = vpop.permute.xlu0 %4155 }
0x16ac   :  { %v4158_v61 = vpop.permute.xlu1 %4157 }
0x16ad   :  { %v4159_v10 = vsel %vm549_vm9, %v4156_v57, %v4158_v61  ;;  %v4748_v57 = vld [vmem:[%s8122_s17 + $0x40] sm:$0xff] }
0x16ae   :  { %v4161_v25 = vmul.f32 %v6386_v56, %v4159_v10  ;;  %v4742_v10 = vld [vmem:[%s8122_s17 + $0x10] sm:$0xff] }
0x16af   :  { %v4439_v22 = vpop.permute.xlu0 %4438 }
0x16b0   :  { %4163 = vrot.lane.b32.xlu0 %v4161_v25, %s8172_s7  ;;  %v4441_v31 = vmul.f32 %v6388_v60, %v4439_v22  ;;  %v4746_v60 = vld [vmem:[%s8122_s17 + $0x30] sm:$0xff]  ;;  %v4747_v25 = vld [vmem:[%s8122_s17 + $0x38] sm:$0xff] }
0x16b1   :  { %v6141_v41 = vpack.c.bf16 %v4746_v60, %v4741_v53  ;;  %v6165_v22 = vpack.c.bf16 %v4747_v25, %v4742_v10  ;;  %v4786_v53 = vld [vmem:[%s8122_s17 + $0x170] sm:$0xf]  ;;  %v4788_v25 = vld [vmem:[%s8122_s17 + $0x180] sm:$0xf] }
0x16b4   :  { %4443 = vrot.lane.b32.xlu0 %v4441_v31, %s8170_s24  ;;  %v4753_v31 = vld [vmem:[%s8122_s17 + $0x68] sm:$0xff] }
0x16bd   :  { %v4150_v26 = vpop.permute.xlu1 %4149 }
0x16be   :  { %v4152_v43 = vmul.f32 %v6376_v29, %v4150_v26  ;;  %v4758_v26 = vld [vmem:[%s8122_s17 + $0x90] sm:$0xff] }
0x16c1   :  { %v4434_v51 = vpop.permute.xlu1 %4433 }
0x16c2   :  { %v4436_v58 = vmul.f32 %v6382_v24, %v4434_v51  ;;  %v4768_v51 = vld [vmem:[%s8122_s17 + $0xe0] sm:$0xff] }
0x1722   :  { %v4164_v37 = vpop.permute.xlu0 %4163 }
0x1723   :  { %v4166_v46 = vadd.f32 %v4164_v37, %v4152_v43  ;;  %v4752_v43 = vld [vmem:[%s8122_s17 + $0x60] sm:$0xff]  ;;  %v6167_v37 = vpack.c.bf16 %v4758_v26, %v4753_v31  ;;  %v4787_v26 = vld [vmem:[%s8122_s17 + $0x178] sm:$0xf] }
0x1725   :  { %v4170_v47 = vrot.slane %v4166_v46, %v6873_v1  ;;  %v4175_v49 = vrot.slane %v4166_v46, %v6942_v34  ;;  %5268 = vmatmul.mubr.msk.f32.vlgmr.msra.gmra.mrb[40].mxu1 %vm549_vm9, %v4166_v46  ;;  %v4757_v46 = vld [vmem:[%s8122_s17 + $0x88] sm:$0xff] }
0x1726   :  { %6128 = vmatpush1.bf16.msk.msra.mxu1 %vm6903_vm14, %v7581_v17  ;;  %4588 = vmatprep.mubr.f32.mxu1 %v6421_v5  ;;  %v4444_v55 = vpop.permute.xlu0 %4443 }
0x1727   :  { %v4171_v54 = vsel %vm2118_vm6, %v4170_v47, %v7756_v16  ;;  %v4446_v0 = vadd.f32 %v4444_v55, %v4436_v58  ;;  %v6169_v47 = vpack.c.bf16 %v4757_v46, %v4752_v43  ;;  %v4767_v55 = vld [vmem:[%s8122_s17 + $0xd8] sm:$0xff] }
0x1728   :  { %v7811_v50 = vsel %vm2124_vm7, %v4175_v49, %v4171_v54  ;;  %v4763_v49 = vld [vmem:[%s8122_s17 + $0xb8] sm:$0xff]  ;;  %v4762_v54 = vld [vmem:[%s8122_s17 + $0xb0] sm:$0xff] }
0x172d   :  { %5271 = vmatmul.mubr.msk.f32.vlgmr.msra.gmra.mrb[40].mxu1 %vm792_vm1, %v4446_v0 }
0x172e   :  { %4971 = vmatprep.mubr.f32.mxu1 %v6421_v5 }
0x1800   :  { %v4590_v12 = vpop.f32.mrb[40].mxu1 }
0x1801   :  { %v4595_v20 = vadd.f32 %v4590_v12, %v7641_v28  ;;  %v4592_v17 = vpop.f32.mrb[41].mxu1  ;;  %v4647_v28 = vld [vmem:[%s8120_s15] sm:$0xff] }
0x1802   :  { %v4596_v35 = vadd.f32 %v4592_v17, %v7644_v30  ;;  %v4648_v30 = vld [vmem:[%s8120_s15 + $0x8] sm:$0xff]  ;;  %v6173_v17 = vpack.c.bf16 %v4767_v55, %v4762_v54  ;;  %v4744_v54 = vld [vmem:[%s8122_s17 + $0x20] sm:$0xff] }
0x1803   :  { %6389 = vtanh.f32 %v4595_v20  ;;  %v6130_v59 = vpack.c.bf16 %v4648_v30, %v4647_v28  ;;  %v4740_v20 = vld [vmem:[%s8122_s17] sm:$0xff]  ;;  %v4777_v28 = vld [vmem:[%s8122_s17 + $0x128] sm:$0xff]  ;;  %v4751_v30 = vld [vmem:[%s8122_s17 + $0x58] sm:$0xff] }
0x1804   :  { %6391 = vtanh.f32 %v4596_v35  ;;  %v5272_v44 = vmul.f32 -1.442695, %v4596_v35  ;;  %v4773_v35 = vld [vmem:[%s8122_s17 + $0x108] sm:$0xff]  ;;  %v6145_v40 = vpack.c.bf16 %v4756_v42, %v4751_v30  ;;  %v4784_v30 = vld [vmem:[%s8122_s17 + $0x160] sm:$0xff] }
0x1805   :  { %6131 = vmatpush3.bf16.msra.mxu0 %v6130_v59  ;;  %v4789_v42 = vld [vmem:[%s8122_s17 + $0x188] sm:$0xf] }
0x1806   :  { %6393 = vpow2.f32 %v5272_v44  ;;  %6132 = vmatprep.subr.bf16.mxu0 %v6425_v32  ;;  %v4778_v44 = vld [vmem:[%s8122_s17 + $0x130] sm:$0xff] }
0x1809   :  { %6134 = vmatpush3.bf16.msra.mxu0 %v6133_v39 }
0x180a   :  { %6135 = vmatprep.subr.bf16.mxu0 %v6425_v32 }
0x180d   :  { %v7817_v13 = vpop.eup %6389  ;;  %6137 = vmatpush3.bf16.msra.mxu0 %v6136_v52  ;;  %v4755_v52 = vld [vmem:[%s8122_s17 + $0x78] sm:$0xff] }
0x180e   :  { %v6392_v16 = vpop.eup %6391  ;;  %4613 = vrot.lane.b32.xlu1 %v7817_v13, %s8171_s14  ;;  %6138 = vmatprep.subr.bf16.mxu0 %v6425_v32 }
0x180f   :  { %4615 = vrot.lane.b32.xlu0 %v6392_v16, %s8171_s14 }
0x1810   :  { %v6394_v19 = vpop.eup %6393 }
0x1811   :  { %v4602_v27 = vadd.f32 1.0, %v6394_v19  ;;  %6140 = vmatpush3.bf16.msra.mxu0 %v6139_v33  ;;  %v6175_v19 = vpack.c.bf16 %v4778_v44, %v4773_v35  ;;  %v6147_v33 = vpack.c.bf16 %v4755_v52, %v4750_v48  ;;  %v4759_v35 = vld [vmem:[%s8122_s17 + $0x98] sm:$0xff] }
0x1812   :  { %5749 = vmatprep.subr.mxu0 %v6421_v5 }
0x1813   :  { %6395 = vrcp.f32 %v4602_v27  ;;  %v4772_v27 = vld [vmem:[%s8122_s17 + $0x100] sm:$0xff] }
0x181d   :  { %v6396_v45 = vpop.eup %6395 }
0x181e   :  { %v4605_v23 = vsub.f32 1.0, %v6396_v45 }
0x1820   :  { %4607 = vrot.lane.b32.xlu1 %v4605_v23, %s8172_s7  ;;  %v6177_v23 = vpack.c.bf16 %v4777_v28, %v4772_v27  ;;  %v4774_v27 = vld [vmem:[%s8122_s17 + $0x110] sm:$0xff] }
0x1824   :  { %2590 = vrot.lane.b32.xlu1 %v7310_v7, %s8168_s30  ;;  %v4655_v7 = vld [vmem:[%s8120_s15 + $0x40] sm:$0xf] }
0x1825   :  { %5750 = vmatpush3.msk.msra.mxu0 %vm332_vm0, %v4655_v7 }
0x1826   :  { %6142 = vmatprep.subr.bf16.mxu0 %v6141_v41  ;;  %v4780_v41 = vld [vmem:[%s8122_s17 + $0x140] sm:$0xff] }
0x1828   :  { %2594 = vrot.lane.b32.xlu1 %v7323_v15, %s6433_s29 }
0x1880   :  { %v4614_v15 = vpop.permute.xlu1 %4613 }
0x1881   :  { %v4616_v29 = vpop.permute.xlu0 %4615 }
0x1882   :  { %v4617_v14 = vsel %vm549_vm9, %v4614_v15, %v4616_v29  ;;  %v4765_v15 = vld [vmem:[%s8122_s17 + $0xc8] sm:$0xff]  ;;  %v4771_v29 = vld [vmem:[%s8122_s17 + $0xf8] sm:$0xff] }
0x1883   :  { %v4619_v18 = vmul.f32 %v6396_v45, %v4617_v14  ;;  %v4776_v14 = vld [vmem:[%s8122_s17 + $0x120] sm:$0xff] }
0x1885   :  { %4621 = vrot.lane.b32.xlu0 %v4619_v18, %s8172_s7  ;;  %v6151_v18 = vpack.c.bf16 %v4765_v15, %v4760_v63 }
0x1889   :  { %4635 = vrot.lane.b32.xlu0 %v4446_v0, %s8168_s30  ;;  %v6171_v0 = vpack.c.bf16 %v4768_v51, %v4763_v49  ;;  %v5274_v51 = vld [vmem:[%s8121_s16] ss:$0 sm:$0xff] }
0x1892   :  { %v4608_v24 = vpop.permute.xlu1 %4607 }
0x1893   :  { %v4610_v58 = vmul.f32 %v7817_v13, %v4608_v24  ;;  %v4745_v13 = vld [vmem:[%s8122_s17 + $0x28] sm:$0xff]  ;;  %v6153_v24 = vpack.c.bf16 %v4776_v14, %v4771_v29 }
0x1894   :  { %v6143_v6 = vpack.c.bf16 %v4745_v13, %v4740_v20  ;;  %v4769_v13 = vld [vmem:[%s8122_s17 + $0xe8] sm:$0xff] }
0x1896   :  { %v2591_v8 = vpop.permute.xlu1 %2590 }
0x1897   :  { %v2597_v62 = vsel %vm685_vm15, %v7258_v38, %v2591_v8  ;;  %v4743_v38 = vld [vmem:[%s8122_s17 + $0x18] sm:$0xff]  ;;  %v4770_v8 = vld [vmem:[%s8122_s17 + $0xf0] sm:$0xff] }
0x1898   :  { %v6163_v61 = vpack.c.bf16 %v4748_v57, %v4743_v38  ;;  %v4785_v38 = vld [vmem:[%s8122_s17 + $0x168] sm:$0xf]  ;;  %v4783_v57 = vld [vmem:[%s8122_s17 + $0x158] sm:$0xff] }
0x1899   :  { %v6160_v10 = vpack.c.bf16 %v4785_v38, %v4780_v41  ;;  %v6179_v31 = vpack.c.bf16 %v4788_v25, %v4783_v57 }
0x189a   :  { %v2595_v9 = vpop.permute.xlu1 %2594  ;;  %6164 = vmatprep.subr.bf16.mxu1 %v6163_v61 }
0x189b   :  { %v2599_v56 = vsel %vm2598_vm10, %v2597_v62, %v2595_v9  ;;  %6166 = vmatpush1.bf16.msra.mxu1 %v6165_v22  ;;  %v4775_v62 = vld [vmem:[%s8122_s17 + $0x118] sm:$0xff]  ;;  %v4782_v22 = vld [vmem:[%s8122_s17 + $0x150] sm:$0xff] }
0x189c   :  { %2601 = vst.msk [vmem:[%s8128_s23] sm:$0x3] %vm2600_vm11, %v2599_v56  ;;  %6168 = vmatprep.subr.bf16.mxu1 %v6167_v37  ;;  %v6155_v9 = vpack.c.bf16 %v4775_v62, %v4770_v8  ;;  %v4781_v56 = vld [vmem:[%s8122_s17 + $0x148] sm:$0xff]  ;;  %v6182_v43 = vpack.c.bf16 %v4787_v26, %v4782_v22 }
0x189d   :  { %v6157_v60 = vpack.c.bf16 %v4786_v53, %v4781_v56 }
0x189f   :  { %6170 = vmatpush1.bf16.msra.mxu1 %v6169_v47 }
0x18a0   :  { %6172 = vmatprep.subr.bf16.mxu1 %v6171_v0 }
0x18a3   :  { %6174 = vmatpush1.bf16.msra.mxu1 %v6173_v17  ;;  %v4754_v17 = vld [vmem:[%s8122_s17 + $0x70] sm:$0xff] }
0x18a4   :  { %6176 = vmatprep.subr.bf16.mxu1 %v6175_v19  ;;  %v6189_v44 = vpack.c.bf16 %v4759_v35, %v4754_v17 }
0x18a7   :  { %6178 = vmatpush1.bf16.msra.mxu1 %v6177_v23 }
0x18f7   :  { %v4622_v12 = vpop.permute.xlu0 %4621 }
0x18f8   :  { %v4624_v16 = vadd.f32 %v4622_v12, %v4610_v58 }
0x18fa   :  { %v4628_v45 = vrot.slane %v4624_v16, %v6873_v1  ;;  %v4633_v59 = vrot.slane %v4624_v16, %v6942_v34  ;;  %4639 = vrot.lane.b32.xlu0 %v4624_v16, %s6433_s29  ;;  %v4764_v16 = vld [vmem:[%s8122_s17 + $0xc0] sm:$0xff] }
0x18fb   :  { %v4636_v37 = vpop.permute.xlu0 %4635  ;;  %v6192_v19 = vpack.c.bf16 %v4769_v13, %v4764_v16 }
0x18fc   :  { %v4629_v39 = vsel %vm2578_vm8, %v4628_v45, %v7811_v50  ;;  %v4766_v50 = vld [vmem:[%s8122_s17 + $0xd0] sm:$0xff]  ;;  %v4642_v46 = vsel %vm685_vm15, %v7762_v36, %v4636_v37  ;;  %v4749_v36 = vld [vmem:[%s8122_s17 + $0x48] sm:$0xff]  ;;  %v6198_v45 = vpack.c.bf16 %v4789_v42, %v4784_v30 }
0x18fd   :  { %v4634_v4 = vsel %vm2584_vm12, %v4633_v59, %v4629_v39  ;;  %v6149_v7 = vpack.c.bf16 %v4766_v50, %v4761_v11  ;;  %v6186_v12 = vpack.c.bf16 %v4749_v36, %v4744_v54  ;;  %v4790_v59 = vld [vmem:[%s8123_s18] sm:$0x1f] }
0x18fe   :  { %5752 = vmatmul.mubr.msk.f32.vlgmr.msra.gmra.mrb[36].mxu0 %vm549_vm9, %v4634_v4  ;;  %4646 = vst.msk [vmem:[#allocation2] sm:$0xff] %vm549_vm9, %v4634_v4  ;;  %vm7994_vm9 = vmpackc.low %vm332_vm0, %vm6427_vm13  ;;  %vm4817_vm0 = vcmask 621568   ;;  %v4803_v23 = vrot.slane %v4790_v59, %v7132_v3  ;;  %v4799_v39 = vrot.slane %v4790_v59, %v6942_v34 }
0x18ff   :  { %6144 = vmatpush1.bf16.msra.mxu0 %v6143_v6  ;;  %4900 = vmatprep.mubr.f32.mxu0 %v6421_v5  ;;  %v4795_v6 = vrot.slane %v4790_v59, %v6873_v1 }
0x1900   :  { %6146 = vmatprep.subr.bf16.mxu0 %v6145_v40  ;;  %6181 = vmatprep.subr.msk.bf16.mxu1 %vm7994_vm9, %v6179_v31  ;;  %v4807_v40 = vrot.slane %v4790_v59, %v7205_v21 }
0x1901   :  { %6184 = vmatpush1.bf16.msk.msra.mxu1 %vm7994_vm9, %v6182_v43 }
0x1903   :  { %6148 = vmatpush1.bf16.msra.mxu0 %v6147_v33 }
0x1904   :  { %6150 = vmatprep.subr.bf16.mxu0 %v6149_v7 }
0x1907   :  { %6152 = vmatpush1.bf16.msra.mxu0 %v6151_v18 }
0x1908   :  { %6154 = vmatprep.subr.bf16.mxu0 %v6153_v24 }
0x190b   :  { %6156 = vmatpush1.bf16.msra.mxu0 %v6155_v9 }
0x190c   :  { %6159 = vmatprep.subr.msk.bf16.mxu0 %vm7994_vm9, %v6157_v60 }
0x190f   :  { %6162 = vmatpush1.bf16.msk.msra.mxu0 %vm7994_vm9, %v6160_v10 }
0x1910   :  { %6185 = vmatprep.subr.bf16.mxu0 %v6425_v32 }
0x196c   :  { %v4640_v47 = vpop.permute.xlu0 %4639 }
0x196d   :  { %v4643_v49 = vsel %vm2598_vm10, %v4642_v46, %v4640_v47 }
0x196e   :  { %5273 = vst.msk [vmem:[%s8128_s23 + $0x2] sm:$0x3] %vm2600_vm11, %v4643_v49 }
0x19d1   :  { %v4735_v55 = vpop.f32.mrb[36].mxu0 }
0x19d2   :  { %v4736_v58 = vadd.f32 %v5274_v51, %v4735_v55  ;;  %v5753_v0 = vpop.f32.mrb[37].mxu0 }
0x19d4   :  { %v4739_v20 = vmax.f32 %v4736_v58, 0.0 }
0x19d6   :  { %5279 = vmatmul.mubr.msk.f32.vlgmr.msra.gmra.mrb[38].mxu0 %vm4817_vm0, %v4739_v20  ;;  %5282 = vmatmul.mubr.msk.f32.vlgmr.msra.gmra.mrb[42].mxu1 %vm4817_vm0, %v4739_v20 }
0x19d7   :  { %6187 = vmatpush3.bf16.msra.mxu0 %v6186_v12  ;;  %5774 = vmatprep.mubr.msk.f32.mxu0 %vm6423_vm2, %v6421_v5  ;;  %v4779_v5 = vld [vmem:[%s8122_s17 + $0x138] sm:$0xff] }
0x19d8   :  { %6188 = vmatprep.subr.bf16.mxu0 %v6425_v32  ;;  %v6195_v28 = vpack.c.bf16 %v4779_v5, %v4774_v27 }
0x19db   :  { %6190 = vmatpush3.bf16.msra.mxu0 %v6189_v44 }
0x19dc   :  { %6191 = vmatprep.subr.bf16.mxu0 %v6425_v32 }
0x19df   :  { %6193 = vmatpush3.bf16.msra.mxu0 %v6192_v19 }
0x19e0   :  { %6194 = vmatprep.subr.bf16.mxu0 %v6425_v32 }
0x19e3   :  { %6196 = vmatpush3.bf16.msra.mxu0 %v6195_v28 }
0x19e4   :  { %6197 = vmatprep.subr.bf16.mxu0 %v6425_v32 }
0x19e7   :  { %6200 = vmatpush3.bf16.msk.msra.mxu0 %vm7994_vm9, %v6198_v45 }
0x19ea   :  { %5775 = vmatmul.mubr.msk.f32.vlgmr.msra.gmra.mrb[40].mxu0 %vm4817_vm0, %v4739_v20 }
0x1aa9   :  { %v4902_v48 = vpop.f32.mrb[38].mxu0  ;;  %v4973_v52 = vpop.f32.mrb[42].mxu1 }
0x1aaa   :  { %v4903_v32 = vadd.f32 %v4902_v48, %v4795_v6  ;;  %v4974_v4 = vadd.f32 %v4973_v52, %v4803_v23  ;;  %v4904_v11 = vpop.f32.mrb[39].mxu0  ;;  %v4975_v50 = vpop.f32.mrb[43].mxu1 }
0x1aab   :  { %v4905_v33 = vadd.f32 %v4904_v11, %v4799_v39  ;;  %v4976_v7 = vadd.f32 %v4975_v50, %v4807_v40 }
0x1aac   :  { %5048 = vst [vmem:[%s8125_s20] sm:$0xff] %v4903_v32  ;;  %5050 = vst [vmem:[%s8125_s20 + $0x10] sm:$0xff] %v4974_v4 }
0x1aad   :  { %5049 = vst [vmem:[%s8125_s20 + $0x8] sm:$0xff] %v4905_v33  ;;  %5051 = vst [vmem:[%s8125_s20 + $0x18] sm:$0xff] %v4976_v7 }
0x1aae   :  { %6408 = shalt.err (!%p6405_p4)
}
0x1aaf   :  { %s6409_s22 = scalar_lea.hbm %s8124_s19, 128 }
0x1ab0   :  { %p6410_p5 = scmp.ne.s32.totalorder %s8124_s19, %s6409_s22  ;;  %p6413_p6 = scmp.lt.u32.totalorder %s6409_s22, %s8124_s19 }
0x1ab2   :  { %p6415_p7 = pnand %p6413_p6, %p6410_p5 }
0x1ab4   :  { %6418 = shalt.err (!%p6415_p7)
}
0x1ab5   :  { %5069 = dma.vmem_to_hbm [thread:$0]  %s5067_s9, 128, %s8124_s19, [#allocation3]   ;;  %v4811_v1 = vrot.slane %v4790_v59, %v6876_v2  ;;  %vm5052_vm2 = vcmask 23552   ;;  %vm5058_vm13 = vcmask 15360  }
0x1ab6   :  { %s8175_s15 = sld [smem:[#allocation13_spill]]  ;;  %s6435_s12 = smov 125  }
0x1ab7   :  { %s8176_s14 = sld [smem:[#allocation14_spill]] }
0x1abd   :  { %v5044_v34 = vpop.f32.mrb[40].mxu0 }
0x1abe   :  { %v5045_v3 = vadd.f32 %v5044_v34, %v4811_v1  ;;  %v5776_v21 = vpop.f32.mrb[41].mxu0 }
0x1ac0   :  { %5053 = vst.msk [vmem:[%s8175_s15] sm:$0xff] %vm5052_vm2, %v5045_v3  ;;  %5055 = vrot.lane.b32.xlu1 %v5045_v3, %s6435_s12 }
0x1b32   :  { %v5056_v63 = vpop.permute.xlu1 %5055 }
0x1b33   :  { %5059 = vst.msk [vmem:[%s8176_s14] sm:$0xff] %vm5058_vm13, %v5056_v63 }
0x1b34   :  { %6419 = dma.done.wait [#allocation3], 128  }
0x1b35   :  { %6420 = vsyncadd [#allocation3], 4294967168 }
0x1b36   :  { %5089 = vsyncpa [#allocation3], 1 }

</bundles_post_ra>
